<compile_context>
chip_gen: v7x
topology: tpu7x:2x2x1
jax: 0.10.0
libtpu: 0.0.40
codegen_flags: <defaults>
</compile_context>

<pallas_src>
import numpy as np
import jax
import jax.numpy as jnp
from jax import lax
from jax.experimental import pallas as pl
from jax.experimental.pallas import tpu as pltpu

# ----- small, self-consistent config (Config with scaled-down data dims) -----
B = 4            # batch size          (Config.batch_size, scaled down)
S = 8            # sequence length     (Config.max_length, scaled down)
H = 128          # hidden_dim          (matches Config.hidden_dim)
NHEAD = 8        # nhead (fixed by the module)
HD = H // NHEAD  # 16
FF = 256         # dim_feedforward     (matches the module)
P = 64           # projection_dim      (matches Config.projection_dim)
VOCAB = 128      # vocab_size          (scaled down, lane-aligned)
NLAYERS = 3      # num_layers (fixed by the module)
TOK = B * S      # 32 tokens
LN_EPS = 1e-5

OUT_ROWS = 8     # sublane-padded output rows  (B=4 -> 8)
OUT_COLS = 128   # lane-padded output columns  (P=64 -> 128)
CBLK = 128 // B  # lane stride per key position in the packed score layout (32)
assert B * CBLK == 128 and NHEAD <= CBLK

# ----- bias / LN slab lane offsets (all 128-aligned) -----
OFF_BQKV = 0
OFF_BO   = 3 * H            # 384
OFF_B1   = OFF_BO + H       # 512
OFF_B2   = OFF_B1 + FF      # 768
OFF_L1W  = OFF_B2 + H       # 896
OFF_L1B  = OFF_L1W + H      # 1024
OFF_L2W  = OFF_L1B + H      # 1152
OFF_L2B  = OFF_L2W + H      # 1280
BIAS_LANES = OFF_L2B + H    # 1408

# ----- advisory cost estimate for the XLA scheduler -----
_FLOPS = (
    2 * TOK * VOCAB * H
    + NLAYERS * 2 * TOK * (H * 3 * H + (B * H) * 128 + 128 * (B * H)
                           + H * H + H * FF + FF * H)
    + 2 * OUT_ROWS * H * OUT_COLS + 2 * OUT_ROWS * OUT_COLS * OUT_COLS
)
_TRANSC = NLAYERS * 2 * TOK * 128 + OUT_ROWS
_BYTES = (
    TOK * 4 + VOCAB * H * 2
    + NLAYERS * (H * (3 * H + H + FF) * 2 + FF * H * 2 + BIAS_LANES * 4)
    + 2 * (B * H) * 128 * 2
    + H * 2 * OUT_COLS * 2 + 2 * OUT_COLS * 4
    + OUT_ROWS * OUT_COLS * 4
)


def contrastive_kernel(ids_ref, emb_ref, wa_ref, w2_ref, bias_ref,
                       hs_ref, he_ref, wproj_ref, bproj_ref, out_ref):
    f32, bf16 = jnp.float32, jnp.bfloat16

    # ---- embedding lookup inside the kernel: one-hot @ table (MXU) ----
    # TODO(synk): ids >= VOCAB silently yield a zero embedding row (nn.Embedding
    # would raise); at real vocab sizes replace with a DMA row gather.
    ids = ids_ref[...]                                              # (TOK, 1) i32
    viota = jax.lax.broadcasted_iota(jnp.int32, (TOK, VOCAB), 1)
    onehot = jnp.where(ids == viota, 1.0, 0.0).astype(bf16)         # (TOK, VOCAB)
    x0 = jnp.dot(onehot, emb_ref[...], preferred_element_type=f32)  # (TOK, H) f32

    def layernorm(y, w, b):
        mu = jnp.mean(y, axis=-1, keepdims=True)
        d = y - mu
        var = jnp.mean(d * d, axis=-1, keepdims=True)
        return d * jax.lax.rsqrt(var + LN_EPS) * w + b

    def layer_body(l, x):
        # ---- fused QKV projection: one (TOK,H) @ (H,3H) bf16 matmul ----
        qkv = jnp.dot(x.astype(bf16), wa_ref[l, :, 0:3 * H],
                      preferred_element_type=f32) \
              + bias_ref[l, :, OFF_BQKV:OFF_BQKV + 3 * H]            # (TOK, 3H) f32
        q3 = qkv[:, 0 * H:1 * H].reshape(B, S, H)
        k3 = qkv[:, 1 * H:2 * H].reshape(B, S, H)
        v3 = qkv[:, 2 * H:3 * H].reshape(B, S, H)

        # ---- packed q*k products: lane block c holds q[t,:] * k[c*S+s(t),:] ----
        prod = jnp.concatenate(
            [(q3 * k3[c]).reshape(TOK, H).astype(bf16) for c in range(B)],
            axis=-1)                                                 # (TOK, B*H) bf16

        # ---- ONE block-diagonal score matmul -> packed (TOK, 128) scores ----
        # lane (c*CBLK + h) = scaled score of token t vs key position c, head h;
        # lanes with h >= NHEAD are exactly zero (zero columns in hs_bd).
        scores = jnp.dot(prod, hs_ref[...], preferred_element_type=f32)

        # ---- softmax over the B=4 key positions via XLU lane rotations ----
        m = jnp.maximum(scores, pltpu.roll(scores, shift=2 * CBLK, axis=1))
        m = jnp.maximum(m, pltpu.roll(m, shift=CBLK, axis=1))
        e = jnp.exp(scores - m)
        den = e + pltpu.roll(e, shift=2 * CBLK, axis=1)
        den = den + pltpu.roll(den, shift=CBLK, axis=1)
        probs = (e * pl.reciprocal(den, approx=True)).astype(bf16)   # (TOK, 128)

        # ---- ONE matmul broadcasting head probs onto head dims per key position,
        #      then weight V and reduce with 3 lane-aligned 128-wide adds ----
        pb = jnp.dot(probs, he_ref[...], preferred_element_type=f32)  # (TOK, B*H)
        ctx = (pb[:, 0:H].reshape(B, S, H) * v3[0]).reshape(TOK, H)
        for c in range(1, B):
            ctx = ctx + (pb[:, c * H:(c + 1) * H].reshape(B, S, H)
                         * v3[c]).reshape(TOK, H)

        # ---- out projection + residual + LN1 ----
        attn = jnp.dot(ctx.astype(bf16), wa_ref[l, :, 3 * H:4 * H],
                       preferred_element_type=f32) \
               + bias_ref[l, :, OFF_BO:OFF_BO + H]
        x = layernorm(x + attn,
                      bias_ref[l, :, OFF_L1W:OFF_L1W + H],
                      bias_ref[l, :, OFF_L1B:OFF_L1B + H])

        # ---- feed-forward + residual + LN2 ----
        h1 = jnp.maximum(
            jnp.dot(x.astype(bf16), wa_ref[l, :, 4 * H:4 * H + FF],
                    preferred_element_type=f32)
            + bias_ref[l, :, OFF_B1:OFF_B1 + FF], 0.0)
        h2 = jnp.dot(h1.astype(bf16), w2_ref[l],
                     preferred_element_type=f32) \
             + bias_ref[l, :, OFF_B2:OFF_B2 + H]
        x = layernorm(x + h2,
                      bias_ref[l, :, OFF_L2W:OFF_L2W + H],
                      bias_ref[l, :, OFF_L2B:OFF_L2B + H])
        return x

    # TODO(synk): dropout (p=0.1) omitted — eval-mode semantics.
    x = lax.fori_loop(0, NLAYERS, layer_body, x0, unroll=True)

    # ---- AdaptiveAvgPool1d(1) over the original token axis S, pad to 8 rows ----
    pooled = jnp.mean(x.reshape(B, S, H), axis=1)                    # (B, H)
    pooled = jnp.concatenate(
        [pooled, jnp.zeros((OUT_ROWS - B, H), f32)], axis=0)         # (8, H)

    # ---- projection head: Linear -> ReLU -> Linear (lanes padded 64 -> 128) ----
    pr = jnp.maximum(jnp.dot(pooled.astype(bf16), wproj_ref[:, 0:OUT_COLS],
                             preferred_element_type=f32)
                     + bproj_ref[:, 0:OUT_COLS], 0.0)
    pr = jnp.dot(pr.astype(bf16), wproj_ref[:, OUT_COLS:2 * OUT_COLS],
                 preferred_element_type=f32) + bproj_ref[:, OUT_COLS:2 * OUT_COLS]

    # ---- F.normalize(p=2, dim=1): padded lanes are exactly zero, so the norm
    #      over 128 lanes equals the norm over the real 64.  Padded rows 4..7
    #      hold don't-care values and are sliced away in the wrapper. ----
    ss = jnp.sum(pr * pr, axis=-1, keepdims=True)
    out_ref[...] = (pr * jax.lax.rsqrt(jnp.maximum(ss, 1e-24))).astype(out_ref.dtype)


def _build_head_mats():
    """Block-diagonal bf16 head-segment matrices for the fused attention matmuls.

    hs_bd[c*H + j, c*CBLK + head(j)] = 1/sqrt(HD)   (per-head score reduction)
    he_bd[c*CBLK + head(j), c*H + j] = 1            (head prob -> head-dim bcast)
    """
    heads = np.arange(H) // HD
    hs = np.zeros((B * H, 128), np.float32)
    he = np.zeros((128, B * H), np.float32)
    for c in range(B):
        hs[c * H + np.arange(H), c * CBLK + heads] = 1.0 / np.sqrt(HD)
        he[c * CBLK + heads, c * H + np.arange(H)] = 1.0
    return jnp.asarray(hs, jnp.bfloat16), jnp.asarray(he, jnp.bfloat16)


def init_params(key):
    ks = jax.random.split(key, 13)
    n = lambda k, shape: (0.05 * jax.random.normal(k, shape)).astype(jnp.float32)

    # ---- per-layer weight slab: [wqkv | wo | w1] along lanes, bf16 ----
    wqkv = n(ks[1], (NLAYERS, H, 3 * H))
    wo = n(ks[3], (NLAYERS, H, H))
    w1 = n(ks[5], (NLAYERS, H, FF))
    w_a = jnp.concatenate([wqkv, wo, w1], axis=-1).astype(jnp.bfloat16)  # (L,128,768)
    w2 = n(ks[7], (NLAYERS, FF, H)).astype(jnp.bfloat16)                 # (L,256,128)

    # ---- per-layer f32 bias / LN slab ----
    bias = jnp.concatenate([
        n(ks[2], (NLAYERS, 1, 3 * H)),               # bqkv
        n(ks[4], (NLAYERS, 1, H)),                   # bo
        n(ks[6], (NLAYERS, 1, FF)),                  # b1
        n(ks[8], (NLAYERS, 1, H)),                   # b2
        jnp.ones((NLAYERS, 1, H), jnp.float32),      # ln1 weight
        jnp.zeros((NLAYERS, 1, H), jnp.float32),     # ln1 bias
        jnp.ones((NLAYERS, 1, H), jnp.float32),      # ln2 weight
        jnp.zeros((NLAYERS, 1, H), jnp.float32),     # ln2 bias
    ], axis=-1)                                      # (L, 1, 1408)

    # ---- projection head, zero-padded to 128 output lanes ----
    wp1 = n(ks[9], (H, P))
    wp2 = n(ks[11], (P, P))
    wp1_pad = jnp.zeros((H, OUT_COLS), jnp.float32).at[:, :P].set(wp1)
    wp2_pad = jnp.zeros((OUT_COLS, OUT_COLS), jnp.float32).at[:P, :P].set(wp2)
    wproj = jnp.concatenate([wp1_pad, wp2_pad], axis=-1).astype(jnp.bfloat16)  # (128,256)
    bproj = jnp.concatenate([
        jnp.zeros((1, OUT_COLS), jnp.float32).at[:, :P].set(n(ks[10], (1, P))),
        jnp.zeros((1, OUT_COLS), jnp.float32).at[:, :P].set(n(ks[12], (1, P))),
    ], axis=-1)                                                                 # (1,256)

    hs_bd, he_bd = _build_head_mats()
    return dict(
        emb=n(ks[0], (VOCAB, H)).astype(jnp.bfloat16),
        w_a=w_a, w2=w2, bias=bias,
        wproj=wproj, bproj=bproj,
        hs_bd=hs_bd, he_bd=he_bd,
    )


@jax.jit
def contrastive_forward(input_ids, params):
    ids = input_ids.reshape(TOK, 1).astype(jnp.int32)
    args = (ids, params['emb'], params['w_a'], params['w2'], params['bias'],
            params['hs_bd'], params['he_bd'], params['wproj'], params['bproj'])
    out = pl.pallas_call(
        contrastive_kernel,
        out_shape=jax.ShapeDtypeStruct((OUT_ROWS, OUT_COLS), jnp.float32),
        in_specs=[pl.BlockSpec(memory_space=pltpu.MemorySpace.VMEM)] * len(args),
        out_specs=pl.BlockSpec(memory_space=pltpu.MemorySpace.VMEM),
        cost_estimate=pl.CostEstimate(flops=_FLOPS, transcendentals=_TRANSC,
                                      bytes_accessed=_BYTES),
    )(*args)
    return out[:B, :P]                 # strip sublane/lane padding


if __name__ == "__main__":
    key = jax.random.PRNGKey(0)
    k_ids, k_params = jax.random.split(key)
    input_ids = jax.random.randint(k_ids, (B, S), 0, VOCAB, dtype=jnp.int32)
    params = init_params(k_params)

    out = contrastive_forward(input_ids, params)
    out = jax.block_until_ready(out)

    assert out.shape == (B, P), out.shape
    norms = jnp.linalg.norm(out, axis=1)
    assert bool(jnp.all(jnp.isfinite(out)))
    assert bool(jnp.allclose(norms, 1.0, atol=1e-3)), norms
    print("KERNEL_OK")
</pallas_src>

<mosaic_0001>
module attributes {stable_mosaic.version = 11 : i64} {
  func.func @contrastive_kernel(%arg0: memref<32x1xi32, #tpu.memory_space<vmem>>, %arg1: memref<128x128xbf16, #tpu.memory_space<vmem>>, %arg2: memref<3x128x768xbf16, #tpu.memory_space<vmem>>, %arg3: memref<3x256x128xbf16, #tpu.memory_space<vmem>>, %arg4: memref<3x1x1408xf32, #tpu.memory_space<vmem>>, %arg5: memref<512x128xbf16, #tpu.memory_space<vmem>>, %arg6: memref<128x512xbf16, #tpu.memory_space<vmem>>, %arg7: memref<128x256xbf16, #tpu.memory_space<vmem>>, %arg8: memref<1x256xf32, #tpu.memory_space<vmem>>, %arg9: memref<8x128xf32, #tpu.memory_space<vmem>>) attributes {dimension_semantics = [], scalar_prefetch = 0 : i64, scratch_operands = 0 : i64, tpu.core_type = #tpu.core_type<tc>} {
    %c0 = arith.constant 0 : index
    %c0_0 = arith.constant 0 : index
    %0 = vector.load %arg0[%c0, %c0_0] : memref<32x1xi32, #tpu.memory_space<vmem>>, vector<32x1xi32>
    %1 = tpu.iota {dimensions = array<i32: 1>} : vector<32x128xi32>
    %2 = vector.broadcast %0 : vector<32x1xi32> to vector<32x128xi32>
    %3 = arith.cmpi eq, %2, %1 : vector<32x128xi32>
    %cst = arith.constant 1.000000e+00 : f32
    %cst_1 = arith.constant 0.000000e+00 : f32
    %4 = vector.broadcast %cst : f32 to vector<32x128xf32>
    %5 = vector.broadcast %cst_1 : f32 to vector<32x128xf32>
    %6 = arith.select %3, %4, %5 : vector<32x128xi1>, vector<32x128xf32>
    %7 = arith.truncf %6 : vector<32x128xf32> to vector<32x128xbf16>
    %c0_2 = arith.constant 0 : index
    %c0_3 = arith.constant 0 : index
    %8 = vector.load %arg1[%c0_2, %c0_3] : memref<128x128xbf16, #tpu.memory_space<vmem>>, vector<128x128xbf16>
    %cst_4 = arith.constant dense<0.000000e+00> : vector<32x128xf32>
    %9 = tpu.matmul %7, %8, %cst_4 {dimension_numbers = #tpu.dot_dimension_numbers<[1], [0], [0], [1], [0, 0, 1, 1], [], []>} : vector<32x128xbf16>, vector<128x128xbf16>, vector<32x128xf32> -> vector<32x128xf32>
    %c0_i32 = arith.constant 0 : i32
    %10 = arith.truncf %9 : vector<32x128xf32> to vector<32x128xbf16>
    %11 = arith.index_cast %c0_i32 : i32 to index
    %c0_5 = arith.constant 0 : index
    %c0_6 = arith.constant 0 : index
    %12 = vector.load %arg2[%11, %c0_5, %c0_6] : memref<3x128x768xbf16, #tpu.memory_space<vmem>>, vector<1x128x384xbf16>
    %13 = vector.shape_cast %12 : vector<1x128x384xbf16> to vector<128x384xbf16>
    %cst_7 = arith.constant dense<0.000000e+00> : vector<32x384xf32>
    %14 = tpu.matmul %10, %13, %cst_7 {dimension_numbers = #tpu.dot_dimension_numbers<[1], [0], [0], [1], [0, 0, 1, 1], [], []>} : vector<32x128xbf16>, vector<128x384xbf16>, vector<32x384xf32> -> vector<32x384xf32>
    %15 = arith.index_cast %c0_i32 : i32 to index
    %c0_8 = arith.constant 0 : index
    %c0_9 = arith.constant 0 : index
    %16 = vector.load %arg4[%15, %c0_8, %c0_9] : memref<3x1x1408xf32, #tpu.memory_space<vmem>>, vector<1x1x384xf32>
    %17 = vector.shape_cast %16 : vector<1x1x384xf32> to vector<1x384xf32>
    %18 = vector.broadcast %17 : vector<1x384xf32> to vector<32x384xf32>
    %19 = arith.addf %14, %18 : vector<32x384xf32>
    %20 = vector.extract_strided_slice %19 {offsets = [0, 0], sizes = [32, 128], strides = [1, 1]} : vector<32x384xf32> to vector<32x128xf32>
    %21 = vector.shape_cast %20 : vector<32x128xf32> to vector<4x8x128xf32>
    %22 = vector.extract_strided_slice %19 {offsets = [0, 128], sizes = [32, 128], strides = [1, 1]} : vector<32x384xf32> to vector<32x128xf32>
    %23 = vector.shape_cast %22 : vector<32x128xf32> to vector<4x8x128xf32>
    %24 = vector.extract_strided_slice %19 {offsets = [0, 256], sizes = [32, 128], strides = [1, 1]} : vector<32x384xf32> to vector<32x128xf32>
    %25 = vector.shape_cast %24 : vector<32x128xf32> to vector<4x8x128xf32>
    %26 = vector.extract_strided_slice %23 {offsets = [0, 0, 0], sizes = [1, 8, 128], strides = [1, 1, 1]} : vector<4x8x128xf32> to vector<1x8x128xf32>
    %27 = vector.shape_cast %26 : vector<1x8x128xf32> to vector<8x128xf32>
    %28 = vector.shape_cast %27 : vector<8x128xf32> to vector<1x8x128xf32>
    %29 = vector.broadcast %28 : vector<1x8x128xf32> to vector<4x8x128xf32>
    %30 = arith.mulf %21, %29 : vector<4x8x128xf32>
    %31 = vector.shape_cast %30 : vector<4x8x128xf32> to vector<32x128xf32>
    %32 = arith.truncf %31 : vector<32x128xf32> to vector<32x128xbf16>
    %33 = vector.extract_strided_slice %23 {offsets = [1, 0, 0], sizes = [1, 8, 128], strides = [1, 1, 1]} : vector<4x8x128xf32> to vector<1x8x128xf32>
    %34 = vector.shape_cast %33 : vector<1x8x128xf32> to vector<8x128xf32>
    %35 = vector.shape_cast %34 : vector<8x128xf32> to vector<1x8x128xf32>
    %36 = vector.broadcast %35 : vector<1x8x128xf32> to vector<4x8x128xf32>
    %37 = arith.mulf %21, %36 : vector<4x8x128xf32>
    %38 = vector.shape_cast %37 : vector<4x8x128xf32> to vector<32x128xf32>
    %39 = arith.truncf %38 : vector<32x128xf32> to vector<32x128xbf16>
    %40 = vector.extract_strided_slice %23 {offsets = [2, 0, 0], sizes = [1, 8, 128], strides = [1, 1, 1]} : vector<4x8x128xf32> to vector<1x8x128xf32>
    %41 = vector.shape_cast %40 : vector<1x8x128xf32> to vector<8x128xf32>
    %42 = vector.shape_cast %41 : vector<8x128xf32> to vector<1x8x128xf32>
    %43 = vector.broadcast %42 : vector<1x8x128xf32> to vector<4x8x128xf32>
    %44 = arith.mulf %21, %43 : vector<4x8x128xf32>
    %45 = vector.shape_cast %44 : vector<4x8x128xf32> to vector<32x128xf32>
    %46 = arith.truncf %45 : vector<32x128xf32> to vector<32x128xbf16>
    %47 = vector.extract_strided_slice %23 {offsets = [3, 0, 0], sizes = [1, 8, 128], strides = [1, 1, 1]} : vector<4x8x128xf32> to vector<1x8x128xf32>
    %48 = vector.shape_cast %47 : vector<1x8x128xf32> to vector<8x128xf32>
    %49 = vector.shape_cast %48 : vector<8x128xf32> to vector<1x8x128xf32>
    %50 = vector.broadcast %49 : vector<1x8x128xf32> to vector<4x8x128xf32>
    %51 = arith.mulf %21, %50 : vector<4x8x128xf32>
    %52 = vector.shape_cast %51 : vector<4x8x128xf32> to vector<32x128xf32>
    %53 = arith.truncf %52 : vector<32x128xf32> to vector<32x128xbf16>
    %54 = tpu.concatenate %32, %39, %46, %53 in 1 : vector<32x128xbf16>, vector<32x128xbf16>, vector<32x128xbf16>, vector<32x128xbf16> -> vector<32x512xbf16>
    %c0_10 = arith.constant 0 : index
    %c0_11 = arith.constant 0 : index
    %55 = vector.load %arg5[%c0_10, %c0_11] : memref<512x128xbf16, #tpu.memory_space<vmem>>, vector<512x128xbf16>
    %cst_12 = arith.constant dense<0.000000e+00> : vector<32x128xf32>
    %56 = tpu.matmul %54, %55, %cst_12 {dimension_numbers = #tpu.dot_dimension_numbers<[1], [0], [0], [1], [0, 0, 1, 1], [], []>} : vector<32x512xbf16>, vector<512x128xbf16>, vector<32x128xf32> -> vector<32x128xf32>
    %c64_i32 = arith.constant 64 : i32
    %57 = tpu.dynamic_rotate %56 by %c64_i32 dim 1 : vector<32x128xf32>, i32 -> vector<32x128xf32>
    %58 = arith.maximumf %56, %57 : vector<32x128xf32>
    %c32_i32 = arith.constant 32 : i32
    %59 = tpu.dynamic_rotate %58 by %c32_i32 dim 1 : vector<32x128xf32>, i32 -> vector<32x128xf32>
    %60 = arith.maximumf %58, %59 : vector<32x128xf32>
    %61 = arith.subf %56, %60 : vector<32x128xf32>
    %62 = math.exp %61 : vector<32x128xf32>
    %c64_i32_13 = arith.constant 64 : i32
    %63 = tpu.dynamic_rotate %62 by %c64_i32_13 dim 1 : vector<32x128xf32>, i32 -> vector<32x128xf32>
    %64 = arith.addf %62, %63 : vector<32x128xf32>
    %c32_i32_14 = arith.constant 32 : i32
    %65 = tpu.dynamic_rotate %64 by %c32_i32_14 dim 1 : vector<32x128xf32>, i32 -> vector<32x128xf32>
    %66 = arith.addf %64, %65 : vector<32x128xf32>
    %67 = tpu.reciprocal %66 {approx = true} : vector<32x128xf32> -> vector<32x128xf32>
    %68 = arith.mulf %62, %67 : vector<32x128xf32>
    %69 = arith.truncf %68 : vector<32x128xf32> to vector<32x128xbf16>
    %c0_15 = arith.constant 0 : index
    %c0_16 = arith.constant 0 : index
    %70 = vector.load %arg6[%c0_15, %c0_16] : memref<128x512xbf16, #tpu.memory_space<vmem>>, vector<128x512xbf16>
    %cst_17 = arith.constant dense<0.000000e+00> : vector<32x512xf32>
    %71 = tpu.matmul %69, %70, %cst_17 {dimension_numbers = #tpu.dot_dimension_numbers<[1], [0], [0], [1], [0, 0, 1, 1], [], []>} : vector<32x128xbf16>, vector<128x512xbf16>, vector<32x512xf32> -> vector<32x512xf32>
    %72 = vector.extract_strided_slice %71 {offsets = [0, 0], sizes = [32, 128], strides = [1, 1]} : vector<32x512xf32> to vector<32x128xf32>
    %73 = vector.shape_cast %72 : vector<32x128xf32> to vector<4x8x128xf32>
    %74 = vector.extract_strided_slice %25 {offsets = [0, 0, 0], sizes = [1, 8, 128], strides = [1, 1, 1]} : vector<4x8x128xf32> to vector<1x8x128xf32>
    %75 = vector.shape_cast %74 : vector<1x8x128xf32> to vector<8x128xf32>
    %76 = vector.shape_cast %75 : vector<8x128xf32> to vector<1x8x128xf32>
    %77 = vector.broadcast %76 : vector<1x8x128xf32> to vector<4x8x128xf32>
    %78 = arith.mulf %73, %77 : vector<4x8x128xf32>
    %79 = vector.shape_cast %78 : vector<4x8x128xf32> to vector<32x128xf32>
    %80 = vector.extract_strided_slice %71 {offsets = [0, 128], sizes = [32, 128], strides = [1, 1]} : vector<32x512xf32> to vector<32x128xf32>
    %81 = vector.shape_cast %80 : vector<32x128xf32> to vector<4x8x128xf32>
    %82 = vector.extract_strided_slice %25 {offsets = [1, 0, 0], sizes = [1, 8, 128], strides = [1, 1, 1]} : vector<4x8x128xf32> to vector<1x8x128xf32>
    %83 = vector.shape_cast %82 : vector<1x8x128xf32> to vector<8x128xf32>
    %84 = vector.shape_cast %83 : vector<8x128xf32> to vector<1x8x128xf32>
    %85 = vector.broadcast %84 : vector<1x8x128xf32> to vector<4x8x128xf32>
    %86 = arith.mulf %81, %85 : vector<4x8x128xf32>
    %87 = vector.shape_cast %86 : vector<4x8x128xf32> to vector<32x128xf32>
    %88 = arith.addf %79, %87 : vector<32x128xf32>
    %89 = vector.extract_strided_slice %71 {offsets = [0, 256], sizes = [32, 128], strides = [1, 1]} : vector<32x512xf32> to vector<32x128xf32>
    %90 = vector.shape_cast %89 : vector<32x128xf32> to vector<4x8x128xf32>
    %91 = vector.extract_strided_slice %25 {offsets = [2, 0, 0], sizes = [1, 8, 128], strides = [1, 1, 1]} : vector<4x8x128xf32> to vector<1x8x128xf32>
    %92 = vector.shape_cast %91 : vector<1x8x128xf32> to vector<8x128xf32>
    %93 = vector.shape_cast %92 : vector<8x128xf32> to vector<1x8x128xf32>
    %94 = vector.broadcast %93 : vector<1x8x128xf32> to vector<4x8x128xf32>
    %95 = arith.mulf %90, %94 : vector<4x8x128xf32>
    %96 = vector.shape_cast %95 : vector<4x8x128xf32> to vector<32x128xf32>
    %97 = arith.addf %88, %96 : vector<32x128xf32>
    %98 = vector.extract_strided_slice %71 {offsets = [0, 384], sizes = [32, 128], strides = [1, 1]} : vector<32x512xf32> to vector<32x128xf32>
    %99 = vector.shape_cast %98 : vector<32x128xf32> to vector<4x8x128xf32>
    %100 = vector.extract_strided_slice %25 {offsets = [3, 0, 0], sizes = [1, 8, 128], strides = [1, 1, 1]} : vector<4x8x128xf32> to vector<1x8x128xf32>
    %101 = vector.shape_cast %100 : vector<1x8x128xf32> to vector<8x128xf32>
    %102 = vector.shape_cast %101 : vector<8x128xf32> to vector<1x8x128xf32>
    %103 = vector.broadcast %102 : vector<1x8x128xf32> to vector<4x8x128xf32>
    %104 = arith.mulf %99, %103 : vector<4x8x128xf32>
    %105 = vector.shape_cast %104 : vector<4x8x128xf32> to vector<32x128xf32>
    %106 = arith.addf %97, %105 : vector<32x128xf32>
    %107 = arith.truncf %106 : vector<32x128xf32> to vector<32x128xbf16>
    %108 = arith.index_cast %c0_i32 : i32 to index
    %c0_18 = arith.constant 0 : index
    %c384 = arith.constant 384 : index
    %109 = vector.load %arg2[%108, %c0_18, %c384] : memref<3x128x768xbf16, #tpu.memory_space<vmem>>, vector<1x128x128xbf16>
    %110 = vector.shape_cast %109 : vector<1x128x128xbf16> to vector<128x128xbf16>
    %cst_19 = arith.constant dense<0.000000e+00> : vector<32x128xf32>
    %111 = tpu.matmul %107, %110, %cst_19 {dimension_numbers = #tpu.dot_dimension_numbers<[1], [0], [0], [1], [0, 0, 1, 1], [], []>} : vector<32x128xbf16>, vector<128x128xbf16>, vector<32x128xf32> -> vector<32x128xf32>
    %112 = arith.index_cast %c0_i32 : i32 to index
    %c0_20 = arith.constant 0 : index
    %c384_21 = arith.constant 384 : index
    %113 = vector.load %arg4[%112, %c0_20, %c384_21] : memref<3x1x1408xf32, #tpu.memory_space<vmem>>, vector<1x1x128xf32>
    %114 = vector.shape_cast %113 : vector<1x1x128xf32> to vector<1x128xf32>
    %115 = vector.broadcast %114 : vector<1x128xf32> to vector<32x128xf32>
    %116 = arith.addf %111, %115 : vector<32x128xf32>
    %117 = arith.addf %9, %116 : vector<32x128xf32>
    %118 = arith.index_cast %c0_i32 : i32 to index
    %c0_22 = arith.constant 0 : index
    %c896 = arith.constant 896 : index
    %119 = vector.load %arg4[%118, %c0_22, %c896] : memref<3x1x1408xf32, #tpu.memory_space<vmem>>, vector<1x1x128xf32>
    %120 = vector.shape_cast %119 : vector<1x1x128xf32> to vector<1x128xf32>
    %121 = arith.index_cast %c0_i32 : i32 to index
    %c0_23 = arith.constant 0 : index
    %c1024 = arith.constant 1024 : index
    %122 = vector.load %arg4[%121, %c0_23, %c1024] : memref<3x1x1408xf32, #tpu.memory_space<vmem>>, vector<1x1x128xf32>
    %123 = vector.shape_cast %122 : vector<1x1x128xf32> to vector<1x128xf32>
    %cst_24 = arith.constant dense<0.000000e+00> : vector<32xf32>
    %124 = vector.multi_reduction <add>, %117, %cst_24 [1] : vector<32x128xf32> to vector<32xf32>
    %125 = vector.shape_cast %124 : vector<32xf32> to vector<32x1xf32>
    %cst_25 = arith.constant 1.280000e+02 : f32
    %126 = vector.broadcast %cst_25 : f32 to vector<32x1xf32>
    %127 = arith.divf %125, %126 : vector<32x1xf32>
    %128 = vector.broadcast %127 : vector<32x1xf32> to vector<32x128xf32>
    %129 = arith.subf %117, %128 : vector<32x128xf32>
    %130 = arith.mulf %129, %129 : vector<32x128xf32>
    %cst_26 = arith.constant dense<0.000000e+00> : vector<32xf32>
    %131 = vector.multi_reduction <add>, %130, %cst_26 [1] : vector<32x128xf32> to vector<32xf32>
    %132 = vector.shape_cast %131 : vector<32xf32> to vector<32x1xf32>
    %cst_27 = arith.constant 1.280000e+02 : f32
    %133 = vector.broadcast %cst_27 : f32 to vector<32x1xf32>
    %134 = arith.divf %132, %133 : vector<32x1xf32>
    %cst_28 = arith.constant 9.99999974E-6 : f32
    %135 = vector.broadcast %cst_28 : f32 to vector<32x1xf32>
    %136 = arith.addf %134, %135 : vector<32x1xf32>
    %137 = math.rsqrt %136 : vector<32x1xf32>
    %138 = vector.broadcast %137 : vector<32x1xf32> to vector<32x128xf32>
    %139 = arith.mulf %129, %138 : vector<32x128xf32>
    %140 = vector.broadcast %120 : vector<1x128xf32> to vector<32x128xf32>
    %141 = arith.mulf %139, %140 : vector<32x128xf32>
    %142 = vector.broadcast %123 : vector<1x128xf32> to vector<32x128xf32>
    %143 = arith.addf %141, %142 : vector<32x128xf32>
    %144 = arith.truncf %143 : vector<32x128xf32> to vector<32x128xbf16>
    %145 = arith.index_cast %c0_i32 : i32 to index
    %c0_29 = arith.constant 0 : index
    %c512 = arith.constant 512 : index
    %146 = vector.load %arg2[%145, %c0_29, %c512] : memref<3x128x768xbf16, #tpu.memory_space<vmem>>, vector<1x128x256xbf16>
    %147 = vector.shape_cast %146 : vector<1x128x256xbf16> to vector<128x256xbf16>
    %cst_30 = arith.constant dense<0.000000e+00> : vector<32x256xf32>
    %148 = tpu.matmul %144, %147, %cst_30 {dimension_numbers = #tpu.dot_dimension_numbers<[1], [0], [0], [1], [0, 0, 1, 1], [], []>} : vector<32x128xbf16>, vector<128x256xbf16>, vector<32x256xf32> -> vector<32x256xf32>
    %149 = arith.index_cast %c0_i32 : i32 to index
    %c0_31 = arith.constant 0 : index
    %c512_32 = arith.constant 512 : index
    %150 = vector.load %arg4[%149, %c0_31, %c512_32] : memref<3x1x1408xf32, #tpu.memory_space<vmem>>, vector<1x1x256xf32>
    %151 = vector.shape_cast %150 : vector<1x1x256xf32> to vector<1x256xf32>
    %152 = vector.broadcast %151 : vector<1x256xf32> to vector<32x256xf32>
    %153 = arith.addf %148, %152 : vector<32x256xf32>
    %cst_33 = arith.constant 0.000000e+00 : f32
    %154 = vector.broadcast %cst_33 : f32 to vector<32x256xf32>
    %155 = arith.maximumf %153, %154 : vector<32x256xf32>
    %156 = arith.truncf %155 : vector<32x256xf32> to vector<32x256xbf16>
    %157 = arith.index_cast %c0_i32 : i32 to index
    %c0_34 = arith.constant 0 : index
    %c0_35 = arith.constant 0 : index
    %158 = vector.load %arg3[%157, %c0_34, %c0_35] : memref<3x256x128xbf16, #tpu.memory_space<vmem>>, vector<1x256x128xbf16>
    %159 = vector.shape_cast %158 : vector<1x256x128xbf16> to vector<256x128xbf16>
    %cst_36 = arith.constant dense<0.000000e+00> : vector<32x128xf32>
    %160 = tpu.matmul %156, %159, %cst_36 {dimension_numbers = #tpu.dot_dimension_numbers<[1], [0], [0], [1], [0, 0, 1, 1], [], []>} : vector<32x256xbf16>, vector<256x128xbf16>, vector<32x128xf32> -> vector<32x128xf32>
    %161 = arith.index_cast %c0_i32 : i32 to index
    %c0_37 = arith.constant 0 : index
    %c768 = arith.constant 768 : index
    %162 = vector.load %arg4[%161, %c0_37, %c768] : memref<3x1x1408xf32, #tpu.memory_space<vmem>>, vector<1x1x128xf32>
    %163 = vector.shape_cast %162 : vector<1x1x128xf32> to vector<1x128xf32>
    %164 = vector.broadcast %163 : vector<1x128xf32> to vector<32x128xf32>
    %165 = arith.addf %160, %164 : vector<32x128xf32>
    %166 = arith.addf %143, %165 : vector<32x128xf32>
    %167 = arith.index_cast %c0_i32 : i32 to index
    %c0_38 = arith.constant 0 : index
    %c1152 = arith.constant 1152 : index
    %168 = vector.load %arg4[%167, %c0_38, %c1152] : memref<3x1x1408xf32, #tpu.memory_space<vmem>>, vector<1x1x128xf32>
    %169 = vector.shape_cast %168 : vector<1x1x128xf32> to vector<1x128xf32>
    %170 = arith.index_cast %c0_i32 : i32 to index
    %c0_39 = arith.constant 0 : index
    %c1280 = arith.constant 1280 : index
    %171 = vector.load %arg4[%170, %c0_39, %c1280] : memref<3x1x1408xf32, #tpu.memory_space<vmem>>, vector<1x1x128xf32>
    %172 = vector.shape_cast %171 : vector<1x1x128xf32> to vector<1x128xf32>
    %cst_40 = arith.constant dense<0.000000e+00> : vector<32xf32>
    %173 = vector.multi_reduction <add>, %166, %cst_40 [1] : vector<32x128xf32> to vector<32xf32>
    %174 = vector.shape_cast %173 : vector<32xf32> to vector<32x1xf32>
    %cst_41 = arith.constant 1.280000e+02 : f32
    %175 = vector.broadcast %cst_41 : f32 to vector<32x1xf32>
    %176 = arith.divf %174, %175 : vector<32x1xf32>
    %177 = vector.broadcast %176 : vector<32x1xf32> to vector<32x128xf32>
    %178 = arith.subf %166, %177 : vector<32x128xf32>
    %179 = arith.mulf %178, %178 : vector<32x128xf32>
    %cst_42 = arith.constant dense<0.000000e+00> : vector<32xf32>
    %180 = vector.multi_reduction <add>, %179, %cst_42 [1] : vector<32x128xf32> to vector<32xf32>
    %181 = vector.shape_cast %180 : vector<32xf32> to vector<32x1xf32>
    %cst_43 = arith.constant 1.280000e+02 : f32
    %182 = vector.broadcast %cst_43 : f32 to vector<32x1xf32>
    %183 = arith.divf %181, %182 : vector<32x1xf32>
    %cst_44 = arith.constant 9.99999974E-6 : f32
    %184 = vector.broadcast %cst_44 : f32 to vector<32x1xf32>
    %185 = arith.addf %183, %184 : vector<32x1xf32>
    %186 = math.rsqrt %185 : vector<32x1xf32>
    %187 = vector.broadcast %186 : vector<32x1xf32> to vector<32x128xf32>
    %188 = arith.mulf %178, %187 : vector<32x128xf32>
    %189 = vector.broadcast %169 : vector<1x128xf32> to vector<32x128xf32>
    %190 = arith.mulf %188, %189 : vector<32x128xf32>
    %191 = vector.broadcast %172 : vector<1x128xf32> to vector<32x128xf32>
    %192 = arith.addf %190, %191 : vector<32x128xf32>
    %c1_i32 = arith.constant 1 : i32
    %193 = arith.truncf %192 : vector<32x128xf32> to vector<32x128xbf16>
    %194 = arith.index_cast %c1_i32 : i32 to index
    %c0_45 = arith.constant 0 : index
    %c0_46 = arith.constant 0 : index
    %195 = vector.load %arg2[%194, %c0_45, %c0_46] : memref<3x128x768xbf16, #tpu.memory_space<vmem>>, vector<1x128x384xbf16>
    %196 = vector.shape_cast %195 : vector<1x128x384xbf16> to vector<128x384xbf16>
    %cst_47 = arith.constant dense<0.000000e+00> : vector<32x384xf32>
    %197 = tpu.matmul %193, %196, %cst_47 {dimension_numbers = #tpu.dot_dimension_numbers<[1], [0], [0], [1], [0, 0, 1, 1], [], []>} : vector<32x128xbf16>, vector<128x384xbf16>, vector<32x384xf32> -> vector<32x384xf32>
    %198 = arith.index_cast %c1_i32 : i32 to index
    %c0_48 = arith.constant 0 : index
    %c0_49 = arith.constant 0 : index
    %199 = vector.load %arg4[%198, %c0_48, %c0_49] : memref<3x1x1408xf32, #tpu.memory_space<vmem>>, vector<1x1x384xf32>
    %200 = vector.shape_cast %199 : vector<1x1x384xf32> to vector<1x384xf32>
    %201 = vector.broadcast %200 : vector<1x384xf32> to vector<32x384xf32>
    %202 = arith.addf %197, %201 : vector<32x384xf32>
    %203 = vector.extract_strided_slice %202 {offsets = [0, 0], sizes = [32, 128], strides = [1, 1]} : vector<32x384xf32> to vector<32x128xf32>
    %204 = vector.shape_cast %203 : vector<32x128xf32> to vector<4x8x128xf32>
    %205 = vector.extract_strided_slice %202 {offsets = [0, 128], sizes = [32, 128], strides = [1, 1]} : vector<32x384xf32> to vector<32x128xf32>
    %206 = vector.shape_cast %205 : vector<32x128xf32> to vector<4x8x128xf32>
    %207 = vector.extract_strided_slice %202 {offsets = [0, 256], sizes = [32, 128], strides = [1, 1]} : vector<32x384xf32> to vector<32x128xf32>
    %208 = vector.shape_cast %207 : vector<32x128xf32> to vector<4x8x128xf32>
    %209 = vector.extract_strided_slice %206 {offsets = [0, 0, 0], sizes = [1, 8, 128], strides = [1, 1, 1]} : vector<4x8x128xf32> to vector<1x8x128xf32>
    %210 = vector.shape_cast %209 : vector<1x8x128xf32> to vector<8x128xf32>
    %211 = vector.shape_cast %210 : vector<8x128xf32> to vector<1x8x128xf32>
    %212 = vector.broadcast %211 : vector<1x8x128xf32> to vector<4x8x128xf32>
    %213 = arith.mulf %204, %212 : vector<4x8x128xf32>
    %214 = vector.shape_cast %213 : vector<4x8x128xf32> to vector<32x128xf32>
    %215 = arith.truncf %214 : vector<32x128xf32> to vector<32x128xbf16>
    %216 = vector.extract_strided_slice %206 {offsets = [1, 0, 0], sizes = [1, 8, 128], strides = [1, 1, 1]} : vector<4x8x128xf32> to vector<1x8x128xf32>
    %217 = vector.shape_cast %216 : vector<1x8x128xf32> to vector<8x128xf32>
    %218 = vector.shape_cast %217 : vector<8x128xf32> to vector<1x8x128xf32>
    %219 = vector.broadcast %218 : vector<1x8x128xf32> to vector<4x8x128xf32>
    %220 = arith.mulf %204, %219 : vector<4x8x128xf32>
    %221 = vector.shape_cast %220 : vector<4x8x128xf32> to vector<32x128xf32>
    %222 = arith.truncf %221 : vector<32x128xf32> to vector<32x128xbf16>
    %223 = vector.extract_strided_slice %206 {offsets = [2, 0, 0], sizes = [1, 8, 128], strides = [1, 1, 1]} : vector<4x8x128xf32> to vector<1x8x128xf32>
    %224 = vector.shape_cast %223 : vector<1x8x128xf32> to vector<8x128xf32>
    %225 = vector.shape_cast %224 : vector<8x128xf32> to vector<1x8x128xf32>
    %226 = vector.broadcast %225 : vector<1x8x128xf32> to vector<4x8x128xf32>
    %227 = arith.mulf %204, %226 : vector<4x8x128xf32>
    %228 = vector.shape_cast %227 : vector<4x8x128xf32> to vector<32x128xf32>
    %229 = arith.truncf %228 : vector<32x128xf32> to vector<32x128xbf16>
    %230 = vector.extract_strided_slice %206 {offsets = [3, 0, 0], sizes = [1, 8, 128], strides = [1, 1, 1]} : vector<4x8x128xf32> to vector<1x8x128xf32>
    %231 = vector.shape_cast %230 : vector<1x8x128xf32> to vector<8x128xf32>
    %232 = vector.shape_cast %231 : vector<8x128xf32> to vector<1x8x128xf32>
    %233 = vector.broadcast %232 : vector<1x8x128xf32> to vector<4x8x128xf32>
    %234 = arith.mulf %204, %233 : vector<4x8x128xf32>
    %235 = vector.shape_cast %234 : vector<4x8x128xf32> to vector<32x128xf32>
    %236 = arith.truncf %235 : vector<32x128xf32> to vector<32x128xbf16>
    %237 = tpu.concatenate %215, %222, %229, %236 in 1 : vector<32x128xbf16>, vector<32x128xbf16>, vector<32x128xbf16>, vector<32x128xbf16> -> vector<32x512xbf16>
    %c0_50 = arith.constant 0 : index
    %c0_51 = arith.constant 0 : index
    %238 = vector.load %arg5[%c0_50, %c0_51] : memref<512x128xbf16, #tpu.memory_space<vmem>>, vector<512x128xbf16>
    %cst_52 = arith.constant dense<0.000000e+00> : vector<32x128xf32>
    %239 = tpu.matmul %237, %238, %cst_52 {dimension_numbers = #tpu.dot_dimension_numbers<[1], [0], [0], [1], [0, 0, 1, 1], [], []>} : vector<32x512xbf16>, vector<512x128xbf16>, vector<32x128xf32> -> vector<32x128xf32>
    %c64_i32_53 = arith.constant 64 : i32
    %240 = tpu.dynamic_rotate %239 by %c64_i32_53 dim 1 : vector<32x128xf32>, i32 -> vector<32x128xf32>
    %241 = arith.maximumf %239, %240 : vector<32x128xf32>
    %c32_i32_54 = arith.constant 32 : i32
    %242 = tpu.dynamic_rotate %241 by %c32_i32_54 dim 1 : vector<32x128xf32>, i32 -> vector<32x128xf32>
    %243 = arith.maximumf %241, %242 : vector<32x128xf32>
    %244 = arith.subf %239, %243 : vector<32x128xf32>
    %245 = math.exp %244 : vector<32x128xf32>
    %c64_i32_55 = arith.constant 64 : i32
    %246 = tpu.dynamic_rotate %245 by %c64_i32_55 dim 1 : vector<32x128xf32>, i32 -> vector<32x128xf32>
    %247 = arith.addf %245, %246 : vector<32x128xf32>
    %c32_i32_56 = arith.constant 32 : i32
    %248 = tpu.dynamic_rotate %247 by %c32_i32_56 dim 1 : vector<32x128xf32>, i32 -> vector<32x128xf32>
    %249 = arith.addf %247, %248 : vector<32x128xf32>
    %250 = tpu.reciprocal %249 {approx = true} : vector<32x128xf32> -> vector<32x128xf32>
    %251 = arith.mulf %245, %250 : vector<32x128xf32>
    %252 = arith.truncf %251 : vector<32x128xf32> to vector<32x128xbf16>
    %c0_57 = arith.constant 0 : index
    %c0_58 = arith.constant 0 : index
    %253 = vector.load %arg6[%c0_57, %c0_58] : memref<128x512xbf16, #tpu.memory_space<vmem>>, vector<128x512xbf16>
    %cst_59 = arith.constant dense<0.000000e+00> : vector<32x512xf32>
    %254 = tpu.matmul %252, %253, %cst_59 {dimension_numbers = #tpu.dot_dimension_numbers<[1], [0], [0], [1], [0, 0, 1, 1], [], []>} : vector<32x128xbf16>, vector<128x512xbf16>, vector<32x512xf32> -> vector<32x512xf32>
    %255 = vector.extract_strided_slice %254 {offsets = [0, 0], sizes = [32, 128], strides = [1, 1]} : vector<32x512xf32> to vector<32x128xf32>
    %256 = vector.shape_cast %255 : vector<32x128xf32> to vector<4x8x128xf32>
    %257 = vector.extract_strided_slice %208 {offsets = [0, 0, 0], sizes = [1, 8, 128], strides = [1, 1, 1]} : vector<4x8x128xf32> to vector<1x8x128xf32>
    %258 = vector.shape_cast %257 : vector<1x8x128xf32> to vector<8x128xf32>
    %259 = vector.shape_cast %258 : vector<8x128xf32> to vector<1x8x128xf32>
    %260 = vector.broadcast %259 : vector<1x8x128xf32> to vector<4x8x128xf32>
    %261 = arith.mulf %256, %260 : vector<4x8x128xf32>
    %262 = vector.shape_cast %261 : vector<4x8x128xf32> to vector<32x128xf32>
    %263 = vector.extract_strided_slice %254 {offsets = [0, 128], sizes = [32, 128], strides = [1, 1]} : vector<32x512xf32> to vector<32x128xf32>
    %264 = vector.shape_cast %263 : vector<32x128xf32> to vector<4x8x128xf32>
    %265 = vector.extract_strided_slice %208 {offsets = [1, 0, 0], sizes = [1, 8, 128], strides = [1, 1, 1]} : vector<4x8x128xf32> to vector<1x8x128xf32>
    %266 = vector.shape_cast %265 : vector<1x8x128xf32> to vector<8x128xf32>
    %267 = vector.shape_cast %266 : vector<8x128xf32> to vector<1x8x128xf32>
    %268 = vector.broadcast %267 : vector<1x8x128xf32> to vector<4x8x128xf32>
    %269 = arith.mulf %264, %268 : vector<4x8x128xf32>
    %270 = vector.shape_cast %269 : vector<4x8x128xf32> to vector<32x128xf32>
    %271 = arith.addf %262, %270 : vector<32x128xf32>
    %272 = vector.extract_strided_slice %254 {offsets = [0, 256], sizes = [32, 128], strides = [1, 1]} : vector<32x512xf32> to vector<32x128xf32>
    %273 = vector.shape_cast %272 : vector<32x128xf32> to vector<4x8x128xf32>
    %274 = vector.extract_strided_slice %208 {offsets = [2, 0, 0], sizes = [1, 8, 128], strides = [1, 1, 1]} : vector<4x8x128xf32> to vector<1x8x128xf32>
    %275 = vector.shape_cast %274 : vector<1x8x128xf32> to vector<8x128xf32>
    %276 = vector.shape_cast %275 : vector<8x128xf32> to vector<1x8x128xf32>
    %277 = vector.broadcast %276 : vector<1x8x128xf32> to vector<4x8x128xf32>
    %278 = arith.mulf %273, %277 : vector<4x8x128xf32>
    %279 = vector.shape_cast %278 : vector<4x8x128xf32> to vector<32x128xf32>
    %280 = arith.addf %271, %279 : vector<32x128xf32>
    %281 = vector.extract_strided_slice %254 {offsets = [0, 384], sizes = [32, 128], strides = [1, 1]} : vector<32x512xf32> to vector<32x128xf32>
    %282 = vector.shape_cast %281 : vector<32x128xf32> to vector<4x8x128xf32>
    %283 = vector.extract_strided_slice %208 {offsets = [3, 0, 0], sizes = [1, 8, 128], strides = [1, 1, 1]} : vector<4x8x128xf32> to vector<1x8x128xf32>
    %284 = vector.shape_cast %283 : vector<1x8x128xf32> to vector<8x128xf32>
    %285 = vector.shape_cast %284 : vector<8x128xf32> to vector<1x8x128xf32>
    %286 = vector.broadcast %285 : vector<1x8x128xf32> to vector<4x8x128xf32>
    %287 = arith.mulf %282, %286 : vector<4x8x128xf32>
    %288 = vector.shape_cast %287 : vector<4x8x128xf32> to vector<32x128xf32>
    %289 = arith.addf %280, %288 : vector<32x128xf32>
    %290 = arith.truncf %289 : vector<32x128xf32> to vector<32x128xbf16>
    %291 = arith.index_cast %c1_i32 : i32 to index
    %c0_60 = arith.constant 0 : index
    %c384_61 = arith.constant 384 : index
    %292 = vector.load %arg2[%291, %c0_60, %c384_61] : memref<3x128x768xbf16, #tpu.memory_space<vmem>>, vector<1x128x128xbf16>
    %293 = vector.shape_cast %292 : vector<1x128x128xbf16> to vector<128x128xbf16>
    %cst_62 = arith.constant dense<0.000000e+00> : vector<32x128xf32>
    %294 = tpu.matmul %290, %293, %cst_62 {dimension_numbers = #tpu.dot_dimension_numbers<[1], [0], [0], [1], [0, 0, 1, 1], [], []>} : vector<32x128xbf16>, vector<128x128xbf16>, vector<32x128xf32> -> vector<32x128xf32>
    %295 = arith.index_cast %c1_i32 : i32 to index
    %c0_63 = arith.constant 0 : index
    %c384_64 = arith.constant 384 : index
    %296 = vector.load %arg4[%295, %c0_63, %c384_64] : memref<3x1x1408xf32, #tpu.memory_space<vmem>>, vector<1x1x128xf32>
    %297 = vector.shape_cast %296 : vector<1x1x128xf32> to vector<1x128xf32>
    %298 = vector.broadcast %297 : vector<1x128xf32> to vector<32x128xf32>
    %299 = arith.addf %294, %298 : vector<32x128xf32>
    %300 = arith.addf %192, %299 : vector<32x128xf32>
    %301 = arith.index_cast %c1_i32 : i32 to index
    %c0_65 = arith.constant 0 : index
    %c896_66 = arith.constant 896 : index
    %302 = vector.load %arg4[%301, %c0_65, %c896_66] : memref<3x1x1408xf32, #tpu.memory_space<vmem>>, vector<1x1x128xf32>
    %303 = vector.shape_cast %302 : vector<1x1x128xf32> to vector<1x128xf32>
    %304 = arith.index_cast %c1_i32 : i32 to index
    %c0_67 = arith.constant 0 : index
    %c1024_68 = arith.constant 1024 : index
    %305 = vector.load %arg4[%304, %c0_67, %c1024_68] : memref<3x1x1408xf32, #tpu.memory_space<vmem>>, vector<1x1x128xf32>
    %306 = vector.shape_cast %305 : vector<1x1x128xf32> to vector<1x128xf32>
    %cst_69 = arith.constant dense<0.000000e+00> : vector<32xf32>
    %307 = vector.multi_reduction <add>, %300, %cst_69 [1] : vector<32x128xf32> to vector<32xf32>
    %308 = vector.shape_cast %307 : vector<32xf32> to vector<32x1xf32>
    %cst_70 = arith.constant 1.280000e+02 : f32
    %309 = vector.broadcast %cst_70 : f32 to vector<32x1xf32>
    %310 = arith.divf %308, %309 : vector<32x1xf32>
    %311 = vector.broadcast %310 : vector<32x1xf32> to vector<32x128xf32>
    %312 = arith.subf %300, %311 : vector<32x128xf32>
    %313 = arith.mulf %312, %312 : vector<32x128xf32>
    %cst_71 = arith.constant dense<0.000000e+00> : vector<32xf32>
    %314 = vector.multi_reduction <add>, %313, %cst_71 [1] : vector<32x128xf32> to vector<32xf32>
    %315 = vector.shape_cast %314 : vector<32xf32> to vector<32x1xf32>
    %cst_72 = arith.constant 1.280000e+02 : f32
    %316 = vector.broadcast %cst_72 : f32 to vector<32x1xf32>
    %317 = arith.divf %315, %316 : vector<32x1xf32>
    %cst_73 = arith.constant 9.99999974E-6 : f32
    %318 = vector.broadcast %cst_73 : f32 to vector<32x1xf32>
    %319 = arith.addf %317, %318 : vector<32x1xf32>
    %320 = math.rsqrt %319 : vector<32x1xf32>
    %321 = vector.broadcast %320 : vector<32x1xf32> to vector<32x128xf32>
    %322 = arith.mulf %312, %321 : vector<32x128xf32>
    %323 = vector.broadcast %303 : vector<1x128xf32> to vector<32x128xf32>
    %324 = arith.mulf %322, %323 : vector<32x128xf32>
    %325 = vector.broadcast %306 : vector<1x128xf32> to vector<32x128xf32>
    %326 = arith.addf %324, %325 : vector<32x128xf32>
    %327 = arith.truncf %326 : vector<32x128xf32> to vector<32x128xbf16>
    %328 = arith.index_cast %c1_i32 : i32 to index
    %c0_74 = arith.constant 0 : index
    %c512_75 = arith.constant 512 : index
    %329 = vector.load %arg2[%328, %c0_74, %c512_75] : memref<3x128x768xbf16, #tpu.memory_space<vmem>>, vector<1x128x256xbf16>
    %330 = vector.shape_cast %329 : vector<1x128x256xbf16> to vector<128x256xbf16>
    %cst_76 = arith.constant dense<0.000000e+00> : vector<32x256xf32>
    %331 = tpu.matmul %327, %330, %cst_76 {dimension_numbers = #tpu.dot_dimension_numbers<[1], [0], [0], [1], [0, 0, 1, 1], [], []>} : vector<32x128xbf16>, vector<128x256xbf16>, vector<32x256xf32> -> vector<32x256xf32>
    %332 = arith.index_cast %c1_i32 : i32 to index
    %c0_77 = arith.constant 0 : index
    %c512_78 = arith.constant 512 : index
    %333 = vector.load %arg4[%332, %c0_77, %c512_78] : memref<3x1x1408xf32, #tpu.memory_space<vmem>>, vector<1x1x256xf32>
    %334 = vector.shape_cast %333 : vector<1x1x256xf32> to vector<1x256xf32>
    %335 = vector.broadcast %334 : vector<1x256xf32> to vector<32x256xf32>
    %336 = arith.addf %331, %335 : vector<32x256xf32>
    %cst_79 = arith.constant 0.000000e+00 : f32
    %337 = vector.broadcast %cst_79 : f32 to vector<32x256xf32>
    %338 = arith.maximumf %336, %337 : vector<32x256xf32>
    %339 = arith.truncf %338 : vector<32x256xf32> to vector<32x256xbf16>
    %340 = arith.index_cast %c1_i32 : i32 to index
    %c0_80 = arith.constant 0 : index
    %c0_81 = arith.constant 0 : index
    %341 = vector.load %arg3[%340, %c0_80, %c0_81] : memref<3x256x128xbf16, #tpu.memory_space<vmem>>, vector<1x256x128xbf16>
    %342 = vector.shape_cast %341 : vector<1x256x128xbf16> to vector<256x128xbf16>
    %cst_82 = arith.constant dense<0.000000e+00> : vector<32x128xf32>
    %343 = tpu.matmul %339, %342, %cst_82 {dimension_numbers = #tpu.dot_dimension_numbers<[1], [0], [0], [1], [0, 0, 1, 1], [], []>} : vector<32x256xbf16>, vector<256x128xbf16>, vector<32x128xf32> -> vector<32x128xf32>
    %344 = arith.index_cast %c1_i32 : i32 to index
    %c0_83 = arith.constant 0 : index
    %c768_84 = arith.constant 768 : index
    %345 = vector.load %arg4[%344, %c0_83, %c768_84] : memref<3x1x1408xf32, #tpu.memory_space<vmem>>, vector<1x1x128xf32>
    %346 = vector.shape_cast %345 : vector<1x1x128xf32> to vector<1x128xf32>
    %347 = vector.broadcast %346 : vector<1x128xf32> to vector<32x128xf32>
    %348 = arith.addf %343, %347 : vector<32x128xf32>
    %349 = arith.addf %326, %348 : vector<32x128xf32>
    %350 = arith.index_cast %c1_i32 : i32 to index
    %c0_85 = arith.constant 0 : index
    %c1152_86 = arith.constant 1152 : index
    %351 = vector.load %arg4[%350, %c0_85, %c1152_86] : memref<3x1x1408xf32, #tpu.memory_space<vmem>>, vector<1x1x128xf32>
    %352 = vector.shape_cast %351 : vector<1x1x128xf32> to vector<1x128xf32>
    %353 = arith.index_cast %c1_i32 : i32 to index
    %c0_87 = arith.constant 0 : index
    %c1280_88 = arith.constant 1280 : index
    %354 = vector.load %arg4[%353, %c0_87, %c1280_88] : memref<3x1x1408xf32, #tpu.memory_space<vmem>>, vector<1x1x128xf32>
    %355 = vector.shape_cast %354 : vector<1x1x128xf32> to vector<1x128xf32>
    %cst_89 = arith.constant dense<0.000000e+00> : vector<32xf32>
    %356 = vector.multi_reduction <add>, %349, %cst_89 [1] : vector<32x128xf32> to vector<32xf32>
    %357 = vector.shape_cast %356 : vector<32xf32> to vector<32x1xf32>
    %cst_90 = arith.constant 1.280000e+02 : f32
    %358 = vector.broadcast %cst_90 : f32 to vector<32x1xf32>
    %359 = arith.divf %357, %358 : vector<32x1xf32>
    %360 = vector.broadcast %359 : vector<32x1xf32> to vector<32x128xf32>
    %361 = arith.subf %349, %360 : vector<32x128xf32>
    %362 = arith.mulf %361, %361 : vector<32x128xf32>
    %cst_91 = arith.constant dense<0.000000e+00> : vector<32xf32>
    %363 = vector.multi_reduction <add>, %362, %cst_91 [1] : vector<32x128xf32> to vector<32xf32>
    %364 = vector.shape_cast %363 : vector<32xf32> to vector<32x1xf32>
    %cst_92 = arith.constant 1.280000e+02 : f32
    %365 = vector.broadcast %cst_92 : f32 to vector<32x1xf32>
    %366 = arith.divf %364, %365 : vector<32x1xf32>
    %cst_93 = arith.constant 9.99999974E-6 : f32
    %367 = vector.broadcast %cst_93 : f32 to vector<32x1xf32>
    %368 = arith.addf %366, %367 : vector<32x1xf32>
    %369 = math.rsqrt %368 : vector<32x1xf32>
    %370 = vector.broadcast %369 : vector<32x1xf32> to vector<32x128xf32>
    %371 = arith.mulf %361, %370 : vector<32x128xf32>
    %372 = vector.broadcast %352 : vector<1x128xf32> to vector<32x128xf32>
    %373 = arith.mulf %371, %372 : vector<32x128xf32>
    %374 = vector.broadcast %355 : vector<1x128xf32> to vector<32x128xf32>
    %375 = arith.addf %373, %374 : vector<32x128xf32>
    %c2_i32 = arith.constant 2 : i32
    %376 = arith.truncf %375 : vector<32x128xf32> to vector<32x128xbf16>
    %377 = arith.index_cast %c2_i32 : i32 to index
    %c0_94 = arith.constant 0 : index
    %c0_95 = arith.constant 0 : index
    %378 = vector.load %arg2[%377, %c0_94, %c0_95] : memref<3x128x768xbf16, #tpu.memory_space<vmem>>, vector<1x128x384xbf16>
    %379 = vector.shape_cast %378 : vector<1x128x384xbf16> to vector<128x384xbf16>
    %cst_96 = arith.constant dense<0.000000e+00> : vector<32x384xf32>
    %380 = tpu.matmul %376, %379, %cst_96 {dimension_numbers = #tpu.dot_dimension_numbers<[1], [0], [0], [1], [0, 0, 1, 1], [], []>} : vector<32x128xbf16>, vector<128x384xbf16>, vector<32x384xf32> -> vector<32x384xf32>
    %381 = arith.index_cast %c2_i32 : i32 to index
    %c0_97 = arith.constant 0 : index
    %c0_98 = arith.constant 0 : index
    %382 = vector.load %arg4[%381, %c0_97, %c0_98] : memref<3x1x1408xf32, #tpu.memory_space<vmem>>, vector<1x1x384xf32>
    %383 = vector.shape_cast %382 : vector<1x1x384xf32> to vector<1x384xf32>
    %384 = vector.broadcast %383 : vector<1x384xf32> to vector<32x384xf32>
    %385 = arith.addf %380, %384 : vector<32x384xf32>
    %386 = vector.extract_strided_slice %385 {offsets = [0, 0], sizes = [32, 128], strides = [1, 1]} : vector<32x384xf32> to vector<32x128xf32>
    %387 = vector.shape_cast %386 : vector<32x128xf32> to vector<4x8x128xf32>
    %388 = vector.extract_strided_slice %385 {offsets = [0, 128], sizes = [32, 128], strides = [1, 1]} : vector<32x384xf32> to vector<32x128xf32>
    %389 = vector.shape_cast %388 : vector<32x128xf32> to vector<4x8x128xf32>
    %390 = vector.extract_strided_slice %385 {offsets = [0, 256], sizes = [32, 128], strides = [1, 1]} : vector<32x384xf32> to vector<32x128xf32>
    %391 = vector.shape_cast %390 : vector<32x128xf32> to vector<4x8x128xf32>
    %392 = vector.extract_strided_slice %389 {offsets = [0, 0, 0], sizes = [1, 8, 128], strides = [1, 1, 1]} : vector<4x8x128xf32> to vector<1x8x128xf32>
    %393 = vector.shape_cast %392 : vector<1x8x128xf32> to vector<8x128xf32>
    %394 = vector.shape_cast %393 : vector<8x128xf32> to vector<1x8x128xf32>
    %395 = vector.broadcast %394 : vector<1x8x128xf32> to vector<4x8x128xf32>
    %396 = arith.mulf %387, %395 : vector<4x8x128xf32>
    %397 = vector.shape_cast %396 : vector<4x8x128xf32> to vector<32x128xf32>
    %398 = arith.truncf %397 : vector<32x128xf32> to vector<32x128xbf16>
    %399 = vector.extract_strided_slice %389 {offsets = [1, 0, 0], sizes = [1, 8, 128], strides = [1, 1, 1]} : vector<4x8x128xf32> to vector<1x8x128xf32>
    %400 = vector.shape_cast %399 : vector<1x8x128xf32> to vector<8x128xf32>
    %401 = vector.shape_cast %400 : vector<8x128xf32> to vector<1x8x128xf32>
    %402 = vector.broadcast %401 : vector<1x8x128xf32> to vector<4x8x128xf32>
    %403 = arith.mulf %387, %402 : vector<4x8x128xf32>
    %404 = vector.shape_cast %403 : vector<4x8x128xf32> to vector<32x128xf32>
    %405 = arith.truncf %404 : vector<32x128xf32> to vector<32x128xbf16>
    %406 = vector.extract_strided_slice %389 {offsets = [2, 0, 0], sizes = [1, 8, 128], strides = [1, 1, 1]} : vector<4x8x128xf32> to vector<1x8x128xf32>
    %407 = vector.shape_cast %406 : vector<1x8x128xf32> to vector<8x128xf32>
    %408 = vector.shape_cast %407 : vector<8x128xf32> to vector<1x8x128xf32>
    %409 = vector.broadcast %408 : vector<1x8x128xf32> to vector<4x8x128xf32>
    %410 = arith.mulf %387, %409 : vector<4x8x128xf32>
    %411 = vector.shape_cast %410 : vector<4x8x128xf32> to vector<32x128xf32>
    %412 = arith.truncf %411 : vector<32x128xf32> to vector<32x128xbf16>
    %413 = vector.extract_strided_slice %389 {offsets = [3, 0, 0], sizes = [1, 8, 128], strides = [1, 1, 1]} : vector<4x8x128xf32> to vector<1x8x128xf32>
    %414 = vector.shape_cast %413 : vector<1x8x128xf32> to vector<8x128xf32>
    %415 = vector.shape_cast %414 : vector<8x128xf32> to vector<1x8x128xf32>
    %416 = vector.broadcast %415 : vector<1x8x128xf32> to vector<4x8x128xf32>
    %417 = arith.mulf %387, %416 : vector<4x8x128xf32>
    %418 = vector.shape_cast %417 : vector<4x8x128xf32> to vector<32x128xf32>
    %419 = arith.truncf %418 : vector<32x128xf32> to vector<32x128xbf16>
    %420 = tpu.concatenate %398, %405, %412, %419 in 1 : vector<32x128xbf16>, vector<32x128xbf16>, vector<32x128xbf16>, vector<32x128xbf16> -> vector<32x512xbf16>
    %c0_99 = arith.constant 0 : index
    %c0_100 = arith.constant 0 : index
    %421 = vector.load %arg5[%c0_99, %c0_100] : memref<512x128xbf16, #tpu.memory_space<vmem>>, vector<512x128xbf16>
    %cst_101 = arith.constant dense<0.000000e+00> : vector<32x128xf32>
    %422 = tpu.matmul %420, %421, %cst_101 {dimension_numbers = #tpu.dot_dimension_numbers<[1], [0], [0], [1], [0, 0, 1, 1], [], []>} : vector<32x512xbf16>, vector<512x128xbf16>, vector<32x128xf32> -> vector<32x128xf32>
    %c64_i32_102 = arith.constant 64 : i32
    %423 = tpu.dynamic_rotate %422 by %c64_i32_102 dim 1 : vector<32x128xf32>, i32 -> vector<32x128xf32>
    %424 = arith.maximumf %422, %423 : vector<32x128xf32>
    %c32_i32_103 = arith.constant 32 : i32
    %425 = tpu.dynamic_rotate %424 by %c32_i32_103 dim 1 : vector<32x128xf32>, i32 -> vector<32x128xf32>
    %426 = arith.maximumf %424, %425 : vector<32x128xf32>
    %427 = arith.subf %422, %426 : vector<32x128xf32>
    %428 = math.exp %427 : vector<32x128xf32>
    %c64_i32_104 = arith.constant 64 : i32
    %429 = tpu.dynamic_rotate %428 by %c64_i32_104 dim 1 : vector<32x128xf32>, i32 -> vector<32x128xf32>
    %430 = arith.addf %428, %429 : vector<32x128xf32>
    %c32_i32_105 = arith.constant 32 : i32
    %431 = tpu.dynamic_rotate %430 by %c32_i32_105 dim 1 : vector<32x128xf32>, i32 -> vector<32x128xf32>
    %432 = arith.addf %430, %431 : vector<32x128xf32>
    %433 = tpu.reciprocal %432 {approx = true} : vector<32x128xf32> -> vector<32x128xf32>
    %434 = arith.mulf %428, %433 : vector<32x128xf32>
    %435 = arith.truncf %434 : vector<32x128xf32> to vector<32x128xbf16>
    %c0_106 = arith.constant 0 : index
    %c0_107 = arith.constant 0 : index
    %436 = vector.load %arg6[%c0_106, %c0_107] : memref<128x512xbf16, #tpu.memory_space<vmem>>, vector<128x512xbf16>
    %cst_108 = arith.constant dense<0.000000e+00> : vector<32x512xf32>
    %437 = tpu.matmul %435, %436, %cst_108 {dimension_numbers = #tpu.dot_dimension_numbers<[1], [0], [0], [1], [0, 0, 1, 1], [], []>} : vector<32x128xbf16>, vector<128x512xbf16>, vector<32x512xf32> -> vector<32x512xf32>
    %438 = vector.extract_strided_slice %437 {offsets = [0, 0], sizes = [32, 128], strides = [1, 1]} : vector<32x512xf32> to vector<32x128xf32>
    %439 = vector.shape_cast %438 : vector<32x128xf32> to vector<4x8x128xf32>
    %440 = vector.extract_strided_slice %391 {offsets = [0, 0, 0], sizes = [1, 8, 128], strides = [1, 1, 1]} : vector<4x8x128xf32> to vector<1x8x128xf32>
    %441 = vector.shape_cast %440 : vector<1x8x128xf32> to vector<8x128xf32>
    %442 = vector.shape_cast %441 : vector<8x128xf32> to vector<1x8x128xf32>
    %443 = vector.broadcast %442 : vector<1x8x128xf32> to vector<4x8x128xf32>
    %444 = arith.mulf %439, %443 : vector<4x8x128xf32>
    %445 = vector.shape_cast %444 : vector<4x8x128xf32> to vector<32x128xf32>
    %446 = vector.extract_strided_slice %437 {offsets = [0, 128], sizes = [32, 128], strides = [1, 1]} : vector<32x512xf32> to vector<32x128xf32>
    %447 = vector.shape_cast %446 : vector<32x128xf32> to vector<4x8x128xf32>
    %448 = vector.extract_strided_slice %391 {offsets = [1, 0, 0], sizes = [1, 8, 128], strides = [1, 1, 1]} : vector<4x8x128xf32> to vector<1x8x128xf32>
    %449 = vector.shape_cast %448 : vector<1x8x128xf32> to vector<8x128xf32>
    %450 = vector.shape_cast %449 : vector<8x128xf32> to vector<1x8x128xf32>
    %451 = vector.broadcast %450 : vector<1x8x128xf32> to vector<4x8x128xf32>
    %452 = arith.mulf %447, %451 : vector<4x8x128xf32>
    %453 = vector.shape_cast %452 : vector<4x8x128xf32> to vector<32x128xf32>
    %454 = arith.addf %445, %453 : vector<32x128xf32>
    %455 = vector.extract_strided_slice %437 {offsets = [0, 256], sizes = [32, 128], strides = [1, 1]} : vector<32x512xf32> to vector<32x128xf32>
    %456 = vector.shape_cast %455 : vector<32x128xf32> to vector<4x8x128xf32>
    %457 = vector.extract_strided_slice %391 {offsets = [2, 0, 0], sizes = [1, 8, 128], strides = [1, 1, 1]} : vector<4x8x128xf32> to vector<1x8x128xf32>
    %458 = vector.shape_cast %457 : vector<1x8x128xf32> to vector<8x128xf32>
    %459 = vector.shape_cast %458 : vector<8x128xf32> to vector<1x8x128xf32>
    %460 = vector.broadcast %459 : vector<1x8x128xf32> to vector<4x8x128xf32>
    %461 = arith.mulf %456, %460 : vector<4x8x128xf32>
    %462 = vector.shape_cast %461 : vector<4x8x128xf32> to vector<32x128xf32>
    %463 = arith.addf %454, %462 : vector<32x128xf32>
    %464 = vector.extract_strided_slice %437 {offsets = [0, 384], sizes = [32, 128], strides = [1, 1]} : vector<32x512xf32> to vector<32x128xf32>
    %465 = vector.shape_cast %464 : vector<32x128xf32> to vector<4x8x128xf32>
    %466 = vector.extract_strided_slice %391 {offsets = [3, 0, 0], sizes = [1, 8, 128], strides = [1, 1, 1]} : vector<4x8x128xf32> to vector<1x8x128xf32>
    %467 = vector.shape_cast %466 : vector<1x8x128xf32> to vector<8x128xf32>
    %468 = vector.shape_cast %467 : vector<8x128xf32> to vector<1x8x128xf32>
    %469 = vector.broadcast %468 : vector<1x8x128xf32> to vector<4x8x128xf32>
    %470 = arith.mulf %465, %469 : vector<4x8x128xf32>
    %471 = vector.shape_cast %470 : vector<4x8x128xf32> to vector<32x128xf32>
    %472 = arith.addf %463, %471 : vector<32x128xf32>
    %473 = arith.truncf %472 : vector<32x128xf32> to vector<32x128xbf16>
    %474 = arith.index_cast %c2_i32 : i32 to index
    %c0_109 = arith.constant 0 : index
    %c384_110 = arith.constant 384 : index
    %475 = vector.load %arg2[%474, %c0_109, %c384_110] : memref<3x128x768xbf16, #tpu.memory_space<vmem>>, vector<1x128x128xbf16>
    %476 = vector.shape_cast %475 : vector<1x128x128xbf16> to vector<128x128xbf16>
    %cst_111 = arith.constant dense<0.000000e+00> : vector<32x128xf32>
    %477 = tpu.matmul %473, %476, %cst_111 {dimension_numbers = #tpu.dot_dimension_numbers<[1], [0], [0], [1], [0, 0, 1, 1], [], []>} : vector<32x128xbf16>, vector<128x128xbf16>, vector<32x128xf32> -> vector<32x128xf32>
    %478 = arith.index_cast %c2_i32 : i32 to index
    %c0_112 = arith.constant 0 : index
    %c384_113 = arith.constant 384 : index
    %479 = vector.load %arg4[%478, %c0_112, %c384_113] : memref<3x1x1408xf32, #tpu.memory_space<vmem>>, vector<1x1x128xf32>
    %480 = vector.shape_cast %479 : vector<1x1x128xf32> to vector<1x128xf32>
    %481 = vector.broadcast %480 : vector<1x128xf32> to vector<32x128xf32>
    %482 = arith.addf %477, %481 : vector<32x128xf32>
    %483 = arith.addf %375, %482 : vector<32x128xf32>
    %484 = arith.index_cast %c2_i32 : i32 to index
    %c0_114 = arith.constant 0 : index
    %c896_115 = arith.constant 896 : index
    %485 = vector.load %arg4[%484, %c0_114, %c896_115] : memref<3x1x1408xf32, #tpu.memory_space<vmem>>, vector<1x1x128xf32>
    %486 = vector.shape_cast %485 : vector<1x1x128xf32> to vector<1x128xf32>
    %487 = arith.index_cast %c2_i32 : i32 to index
    %c0_116 = arith.constant 0 : index
    %c1024_117 = arith.constant 1024 : index
    %488 = vector.load %arg4[%487, %c0_116, %c1024_117] : memref<3x1x1408xf32, #tpu.memory_space<vmem>>, vector<1x1x128xf32>
    %489 = vector.shape_cast %488 : vector<1x1x128xf32> to vector<1x128xf32>
    %cst_118 = arith.constant dense<0.000000e+00> : vector<32xf32>
    %490 = vector.multi_reduction <add>, %483, %cst_118 [1] : vector<32x128xf32> to vector<32xf32>
    %491 = vector.shape_cast %490 : vector<32xf32> to vector<32x1xf32>
    %cst_119 = arith.constant 1.280000e+02 : f32
    %492 = vector.broadcast %cst_119 : f32 to vector<32x1xf32>
    %493 = arith.divf %491, %492 : vector<32x1xf32>
    %494 = vector.broadcast %493 : vector<32x1xf32> to vector<32x128xf32>
    %495 = arith.subf %483, %494 : vector<32x128xf32>
    %496 = arith.mulf %495, %495 : vector<32x128xf32>
    %cst_120 = arith.constant dense<0.000000e+00> : vector<32xf32>
    %497 = vector.multi_reduction <add>, %496, %cst_120 [1] : vector<32x128xf32> to vector<32xf32>
    %498 = vector.shape_cast %497 : vector<32xf32> to vector<32x1xf32>
    %cst_121 = arith.constant 1.280000e+02 : f32
    %499 = vector.broadcast %cst_121 : f32 to vector<32x1xf32>
    %500 = arith.divf %498, %499 : vector<32x1xf32>
    %cst_122 = arith.constant 9.99999974E-6 : f32
    %501 = vector.broadcast %cst_122 : f32 to vector<32x1xf32>
    %502 = arith.addf %500, %501 : vector<32x1xf32>
    %503 = math.rsqrt %502 : vector<32x1xf32>
    %504 = vector.broadcast %503 : vector<32x1xf32> to vector<32x128xf32>
    %505 = arith.mulf %495, %504 : vector<32x128xf32>
    %506 = vector.broadcast %486 : vector<1x128xf32> to vector<32x128xf32>
    %507 = arith.mulf %505, %506 : vector<32x128xf32>
    %508 = vector.broadcast %489 : vector<1x128xf32> to vector<32x128xf32>
    %509 = arith.addf %507, %508 : vector<32x128xf32>
    %510 = arith.truncf %509 : vector<32x128xf32> to vector<32x128xbf16>
    %511 = arith.index_cast %c2_i32 : i32 to index
    %c0_123 = arith.constant 0 : index
    %c512_124 = arith.constant 512 : index
    %512 = vector.load %arg2[%511, %c0_123, %c512_124] : memref<3x128x768xbf16, #tpu.memory_space<vmem>>, vector<1x128x256xbf16>
    %513 = vector.shape_cast %512 : vector<1x128x256xbf16> to vector<128x256xbf16>
    %cst_125 = arith.constant dense<0.000000e+00> : vector<32x256xf32>
    %514 = tpu.matmul %510, %513, %cst_125 {dimension_numbers = #tpu.dot_dimension_numbers<[1], [0], [0], [1], [0, 0, 1, 1], [], []>} : vector<32x128xbf16>, vector<128x256xbf16>, vector<32x256xf32> -> vector<32x256xf32>
    %515 = arith.index_cast %c2_i32 : i32 to index
    %c0_126 = arith.constant 0 : index
    %c512_127 = arith.constant 512 : index
    %516 = vector.load %arg4[%515, %c0_126, %c512_127] : memref<3x1x1408xf32, #tpu.memory_space<vmem>>, vector<1x1x256xf32>
    %517 = vector.shape_cast %516 : vector<1x1x256xf32> to vector<1x256xf32>
    %518 = vector.broadcast %517 : vector<1x256xf32> to vector<32x256xf32>
    %519 = arith.addf %514, %518 : vector<32x256xf32>
    %cst_128 = arith.constant 0.000000e+00 : f32
    %520 = vector.broadcast %cst_128 : f32 to vector<32x256xf32>
    %521 = arith.maximumf %519, %520 : vector<32x256xf32>
    %522 = arith.truncf %521 : vector<32x256xf32> to vector<32x256xbf16>
    %523 = arith.index_cast %c2_i32 : i32 to index
    %c0_129 = arith.constant 0 : index
    %c0_130 = arith.constant 0 : index
    %524 = vector.load %arg3[%523, %c0_129, %c0_130] : memref<3x256x128xbf16, #tpu.memory_space<vmem>>, vector<1x256x128xbf16>
    %525 = vector.shape_cast %524 : vector<1x256x128xbf16> to vector<256x128xbf16>
    %cst_131 = arith.constant dense<0.000000e+00> : vector<32x128xf32>
    %526 = tpu.matmul %522, %525, %cst_131 {dimension_numbers = #tpu.dot_dimension_numbers<[1], [0], [0], [1], [0, 0, 1, 1], [], []>} : vector<32x256xbf16>, vector<256x128xbf16>, vector<32x128xf32> -> vector<32x128xf32>
    %527 = arith.index_cast %c2_i32 : i32 to index
    %c0_132 = arith.constant 0 : index
    %c768_133 = arith.constant 768 : index
    %528 = vector.load %arg4[%527, %c0_132, %c768_133] : memref<3x1x1408xf32, #tpu.memory_space<vmem>>, vector<1x1x128xf32>
    %529 = vector.shape_cast %528 : vector<1x1x128xf32> to vector<1x128xf32>
    %530 = vector.broadcast %529 : vector<1x128xf32> to vector<32x128xf32>
    %531 = arith.addf %526, %530 : vector<32x128xf32>
    %532 = arith.addf %509, %531 : vector<32x128xf32>
    %533 = arith.index_cast %c2_i32 : i32 to index
    %c0_134 = arith.constant 0 : index
    %c1152_135 = arith.constant 1152 : index
    %534 = vector.load %arg4[%533, %c0_134, %c1152_135] : memref<3x1x1408xf32, #tpu.memory_space<vmem>>, vector<1x1x128xf32>
    %535 = vector.shape_cast %534 : vector<1x1x128xf32> to vector<1x128xf32>
    %536 = arith.index_cast %c2_i32 : i32 to index
    %c0_136 = arith.constant 0 : index
    %c1280_137 = arith.constant 1280 : index
    %537 = vector.load %arg4[%536, %c0_136, %c1280_137] : memref<3x1x1408xf32, #tpu.memory_space<vmem>>, vector<1x1x128xf32>
    %538 = vector.shape_cast %537 : vector<1x1x128xf32> to vector<1x128xf32>
    %cst_138 = arith.constant dense<0.000000e+00> : vector<32xf32>
    %539 = vector.multi_reduction <add>, %532, %cst_138 [1] : vector<32x128xf32> to vector<32xf32>
    %540 = vector.shape_cast %539 : vector<32xf32> to vector<32x1xf32>
    %cst_139 = arith.constant 1.280000e+02 : f32
    %541 = vector.broadcast %cst_139 : f32 to vector<32x1xf32>
    %542 = arith.divf %540, %541 : vector<32x1xf32>
    %543 = vector.broadcast %542 : vector<32x1xf32> to vector<32x128xf32>
    %544 = arith.subf %532, %543 : vector<32x128xf32>
    %545 = arith.mulf %544, %544 : vector<32x128xf32>
    %cst_140 = arith.constant dense<0.000000e+00> : vector<32xf32>
    %546 = vector.multi_reduction <add>, %545, %cst_140 [1] : vector<32x128xf32> to vector<32xf32>
    %547 = vector.shape_cast %546 : vector<32xf32> to vector<32x1xf32>
    %cst_141 = arith.constant 1.280000e+02 : f32
    %548 = vector.broadcast %cst_141 : f32 to vector<32x1xf32>
    %549 = arith.divf %547, %548 : vector<32x1xf32>
    %cst_142 = arith.constant 9.99999974E-6 : f32
    %550 = vector.broadcast %cst_142 : f32 to vector<32x1xf32>
    %551 = arith.addf %549, %550 : vector<32x1xf32>
    %552 = math.rsqrt %551 : vector<32x1xf32>
    %553 = vector.broadcast %552 : vector<32x1xf32> to vector<32x128xf32>
    %554 = arith.mulf %544, %553 : vector<32x128xf32>
    %555 = vector.broadcast %535 : vector<1x128xf32> to vector<32x128xf32>
    %556 = arith.mulf %554, %555 : vector<32x128xf32>
    %557 = vector.broadcast %538 : vector<1x128xf32> to vector<32x128xf32>
    %558 = arith.addf %556, %557 : vector<32x128xf32>
    %c3_i32 = arith.constant 3 : i32
    %559 = vector.shape_cast %558 : vector<32x128xf32> to vector<4x8x128xf32>
    %cst_143 = arith.constant dense<0.000000e+00> : vector<4x128xf32>
    %560 = vector.multi_reduction <add>, %559, %cst_143 [1] : vector<4x8x128xf32> to vector<4x128xf32>
    %cst_144 = arith.constant 8.000000e+00 : f32
    %561 = vector.broadcast %cst_144 : f32 to vector<4x128xf32>
    %562 = arith.divf %560, %561 : vector<4x128xf32>
    %cst_145 = arith.constant 0.000000e+00 : f32
    %563 = vector.broadcast %cst_145 : f32 to vector<4x128xf32>
    %564 = tpu.concatenate %562, %563 in 0 : vector<4x128xf32>, vector<4x128xf32> -> vector<8x128xf32>
    %565 = arith.truncf %564 : vector<8x128xf32> to vector<8x128xbf16>
    %c0_146 = arith.constant 0 : index
    %c0_147 = arith.constant 0 : index
    %566 = vector.load %arg7[%c0_146, %c0_147] : memref<128x256xbf16, #tpu.memory_space<vmem>>, vector<128x128xbf16>
    %cst_148 = arith.constant dense<0.000000e+00> : vector<8x128xf32>
    %567 = tpu.matmul %565, %566, %cst_148 {dimension_numbers = #tpu.dot_dimension_numbers<[1], [0], [0], [1], [0, 0, 1, 1], [], []>} : vector<8x128xbf16>, vector<128x128xbf16>, vector<8x128xf32> -> vector<8x128xf32>
    %c0_149 = arith.constant 0 : index
    %c0_150 = arith.constant 0 : index
    %568 = vector.load %arg8[%c0_149, %c0_150] : memref<1x256xf32, #tpu.memory_space<vmem>>, vector<1x128xf32>
    %569 = vector.broadcast %568 : vector<1x128xf32> to vector<8x128xf32>
    %570 = arith.addf %567, %569 : vector<8x128xf32>
    %cst_151 = arith.constant 0.000000e+00 : f32
    %571 = vector.broadcast %cst_151 : f32 to vector<8x128xf32>
    %572 = arith.maximumf %570, %571 : vector<8x128xf32>
    %573 = arith.truncf %572 : vector<8x128xf32> to vector<8x128xbf16>
    %c0_152 = arith.constant 0 : index
    %c128 = arith.constant 128 : index
    %574 = vector.load %arg7[%c0_152, %c128] : memref<128x256xbf16, #tpu.memory_space<vmem>>, vector<128x128xbf16>
    %cst_153 = arith.constant dense<0.000000e+00> : vector<8x128xf32>
    %575 = tpu.matmul %573, %574, %cst_153 {dimension_numbers = #tpu.dot_dimension_numbers<[1], [0], [0], [1], [0, 0, 1, 1], [], []>} : vector<8x128xbf16>, vector<128x128xbf16>, vector<8x128xf32> -> vector<8x128xf32>
    %c0_154 = arith.constant 0 : index
    %c128_155 = arith.constant 128 : index
    %576 = vector.load %arg8[%c0_154, %c128_155] : memref<1x256xf32, #tpu.memory_space<vmem>>, vector<1x128xf32>
    %577 = vector.broadcast %576 : vector<1x128xf32> to vector<8x128xf32>
    %578 = arith.addf %575, %577 : vector<8x128xf32>
    %579 = arith.mulf %578, %578 : vector<8x128xf32>
    %cst_156 = arith.constant dense<0.000000e+00> : vector<8xf32>
    %580 = vector.multi_reduction <add>, %579, %cst_156 [1] : vector<8x128xf32> to vector<8xf32>
    %581 = vector.shape_cast %580 : vector<8xf32> to vector<8x1xf32>
    %cst_157 = arith.constant 1.000000e-24 : f32
    %582 = vector.broadcast %cst_157 : f32 to vector<8x1xf32>
    %583 = arith.maximumf %581, %582 : vector<8x1xf32>
    %584 = math.rsqrt %583 : vector<8x1xf32>
    %585 = vector.broadcast %584 : vector<8x1xf32> to vector<8x128xf32>
    %586 = arith.mulf %578, %585 : vector<8x128xf32>
    %c0_158 = arith.constant 0 : index
    %c0_159 = arith.constant 0 : index
    %587 = vector.load %arg9[%c0_158, %c0_159] : memref<8x128xf32, #tpu.memory_space<vmem>>, vector<8x128xf32>
    tpu.vector_store %arg9[%c0_158, %c0_159], %586 {strides = array<i32>} : memref<8x128xf32, #tpu.memory_space<vmem>>, vector<8x128xf32>,
    return
  }
}

</mosaic_0001>

<bundles_post_ra>
// kernel: contrastive_forward.1
= control target key start
LH: loop header
LB: loop body
LE: loop exit
PB: predicated region body
PF: predicated region fallthrough
CT: control target
= control target key end

     0   :  { %14 = vsyncpa [#allocation3], 0  ;;  %s6901_s0 = inlined_call_operand.vmem [shape: s32[32,1], index: 0, kind: input, shape index: {}]   ;;  %s6902_s1 = inlined_call_operand.hbm [shape: bf16[128,128], index: 1, kind: input, shape index: {}]   ;;  %s6903_s2 = inlined_call_operand.hbm [shape: bf16[3,128,768], index: 2, kind: input, shape index: {}]   ;;  %s6904_s3 = inlined_call_operand.hbm [shape: bf16[3,256,128], index: 3, kind: input, shape index: {}]   ;;  %s6905_s4 = inlined_call_operand.vmem [shape: f32[3,1,1408], index: 4, kind: input, shape index: {}]   ;;  %s6906_s5 = inlined_call_operand.hbm [shape: bf16[512,128], index: 5, kind: input, shape index: {}]   ;;  %s6907_s6 = inlined_call_operand.hbm [shape: bf16[128,512], index: 6, kind: input, shape index: {}]   ;;  %s6908_s7 = inlined_call_operand.hbm [shape: bf16[128,256], index: 7, kind: input, shape index: {}]   ;;  %s6909_s8 = inlined_call_operand.vmem [shape: f32[1,256], index: 8, kind: input, shape index: {}]   ;;  %s6910_s9 = inlined_call_operand.vmem [shape: f32[8,128], index: 9, kind: output, shape index: {}]  }
   0x1   :  { %15 = vsyncpa [#allocation5], 0 }
   0x2   :  { %16 = vsyncpa [#allocation8], 0 }
   0x3   :  { %17 = vsyncpa [#allocation11], 0  ;;  %s6251_s30 = smov [#allocation4]   ;;  %s6111_s13 = scalar_lea.hbm %s6903_s2, 18432 }
   0x4   :  { %s37_s10 = sshll.u32 %s6251_s30, 4  ;;  %p6112_p0 = scmp.ne.s32.totalorder %s6903_s2, %s6111_s13  ;;  %s38_s10 = int_to_ptr.vmem [resolvable:$true] %s37_s10 }
   0x5   :  { %p6115_p1 = scmp.lt.u32.totalorder %s6111_s13, %s6903_s2 }
   0x7   :  { %p6117_p2 = pnand %p6115_p1, %p6112_p0 }
   0x9   :  { %6120 = shalt.err (!%p6117_p2)
}
   0xa   :  { %s6121_s18 = scalar_lea.vmem %s38_s10, 18432  ;;  %p6126_p4 = scmp.lt.s32.totalorder %s38_s10, %s38_s10 }
   0xb   :  { %p6122_p3 = scmp.ne.s32.totalorder %s38_s10, %s6121_s18  ;;  %p6127_p5 = scmp.lt.s32.totalorder %s6121_s18, %s6121_s18 }
   0xd   :  { %p6128_p6 = por %p6127_p5, %p6126_p4 }
   0xf   :  { %p6129_p7 = pnand %p6128_p6, %p6122_p3 }
  0x11   :  { %6132 = shalt.err (!%p6129_p7)
}
  0x12   :  { %s6252_s19 = smov 384   ;;  %s6253_s20 = smov 24  }
  0x13   :  { %43 = dma.hbm_to_vmem [thread:$0]  %s6903_s2, 18432, %s38_s10, [#allocation5], %s6252_s19, %s6252_s19, %s6253_s20  }
  0x14   :  { %s6254_s23 = smov [#allocation7]   ;;  %s6255_s25 = smov [#allocation2]  }
  0x15   :  { %s63_s24 = sshll.u32 %s6254_s23, 4  ;;  %s25_s26 = sshll.u32 %s6255_s25, 4  ;;  %s64_s24 = int_to_ptr.vmem [resolvable:$true] %s63_s24  ;;  %s26_s26 = int_to_ptr.vmem [resolvable:$true] %s25_s26 }
  0x16   :  { %s6133_s29 = scalar_lea.hbm %s6906_s5, 4096 }
  0x17   :  { %p6134_p8 = scmp.ne.s32.totalorder %s6906_s5, %s6133_s29  ;;  %p6137_p9 = scmp.lt.u32.totalorder %s6133_s29, %s6906_s5 }
  0x19   :  { %p6139_p10 = pnand %p6137_p9, %p6134_p8 }
  0x1b   :  { %6142 = shalt.err (!%p6139_p10)
}
  0x1c   :  { %s6143_s2 = scalar_lea.vmem %s64_s24, 4096  ;;  %p6148_p12 = scmp.lt.s32.totalorder %s64_s24, %s64_s24 }
  0x1d   :  { %p6144_p11 = scmp.ne.s32.totalorder %s64_s24, %s6143_s2  ;;  %p6149_p13 = scmp.lt.s32.totalorder %s6143_s2, %s6143_s2 }
  0x1f   :  { %p6150_p0 = por %p6149_p13, %p6148_p12 }
  0x21   :  { %p6151_p1 = pnand %p6150_p0, %p6144_p11 }
  0x23   :  { %6154 = shalt.err (!%p6151_p1)
}
  0x24   :  { %s6256_s10 = smov 64   ;;  %s6257_s14 = smov 4  }
  0x25   :  { %69 = dma.hbm_to_vmem [thread:$0]  %s6906_s5, 4096, %s64_s24, [#allocation8], %s6256_s10, %s6256_s10, %s6257_s14  }
  0x26   :  { %s6155_s19 = scalar_lea.hbm %s6902_s1, 1024 }
  0x27   :  { %p6156_p2 = scmp.ne.s32.totalorder %s6902_s1, %s6155_s19  ;;  %p6159_p3 = scmp.lt.u32.totalorder %s6155_s19, %s6902_s1 }
  0x29   :  { %p6161_p4 = pnand %p6159_p3, %p6156_p2 }
  0x2b   :  { %6164 = shalt.err (!%p6161_p4)
}
  0x2c   :  { %s6165_s25 = scalar_lea.vmem %s26_s26, 1024  ;;  %p6170_p6 = scmp.lt.s32.totalorder %s26_s26, %s26_s26 }
  0x2d   :  { %p6166_p5 = scmp.ne.s32.totalorder %s26_s26, %s6165_s25  ;;  %p6171_p7 = scmp.lt.s32.totalorder %s6165_s25, %s6165_s25 }
  0x2f   :  { %p6172_p8 = por %p6171_p7, %p6170_p6 }
  0x31   :  { %p6173_p9 = pnand %p6172_p8, %p6166_p5 }
  0x33   :  { %6176 = shalt.err (!%p6173_p9)
}
  0x34   :  { %31 = dma.hbm_to_vmem [thread:$0]  %s6902_s1, 1024, %s26_s26, [#allocation3], %s6256_s10, %s6256_s10, %s6257_s14  }
  0x35   :  { %s6258_s27 = smov [#allocation6]   ;;  %s6259_s29 = smov [#allocation9]  }
  0x36   :  { %s49_s28 = sshll.u32 %s6258_s27, 4  ;;  %s75_s30 = sshll.u32 %s6259_s29, 4  ;;  %s50_s28 = int_to_ptr.vmem [resolvable:$true] %s49_s28  ;;  %s76_s30 = int_to_ptr.vmem [resolvable:$true] %s75_s30 }
  0x37   :  { %s6177_s13 = scalar_lea.hbm %s6904_s3, 6144 }
  0x38   :  { %p6178_p10 = scmp.ne.s32.totalorder %s6904_s3, %s6177_s13  ;;  %p6181_p11 = scmp.lt.u32.totalorder %s6177_s13, %s6904_s3 }
  0x3a   :  { %p6183_p12 = pnand %p6181_p11, %p6178_p10 }
  0x3c   :  { %6186 = shalt.err (!%p6183_p12)
}
  0x3d   :  { %s6187_s1 = scalar_lea.vmem %s50_s28, 6144  ;;  %p6192_p0 = scmp.lt.s32.totalorder %s50_s28, %s50_s28 }
  0x3e   :  { %p6188_p13 = scmp.ne.s32.totalorder %s50_s28, %s6187_s1  ;;  %p6193_p1 = scmp.lt.s32.totalorder %s6187_s1, %s6187_s1 }
  0x40   :  { %p6194_p2 = por %p6193_p1, %p6192_p0 }
  0x42   :  { %p6195_p3 = pnand %p6194_p2, %p6188_p13 }
  0x44   :  { %6198 = shalt.err (!%p6195_p3)
}
  0x45   :  { %55 = dma.hbm_to_vmem [thread:$0]  %s6904_s3, 6144, %s50_s28, [#allocation5], %s6256_s10, %s6256_s10, %s6257_s14  }
  0x46   :  { %s6199_s21 = scalar_lea.hbm %s6907_s6, 4096 }
  0x47   :  { %p6200_p4 = scmp.ne.s32.totalorder %s6907_s6, %s6199_s21  ;;  %p6203_p5 = scmp.lt.u32.totalorder %s6199_s21, %s6907_s6 }
  0x49   :  { %p6205_p6 = pnand %p6203_p5, %p6200_p4 }
  0x4b   :  { %6208 = shalt.err (!%p6205_p6)
}
  0x4c   :  { %s6209_s24 = scalar_lea.vmem %s76_s30, 4096  ;;  %p6214_p8 = scmp.lt.s32.totalorder %s76_s30, %s76_s30 }
  0x4d   :  { %p6210_p7 = scmp.ne.s32.totalorder %s76_s30, %s6209_s24  ;;  %p6215_p9 = scmp.lt.s32.totalorder %s6209_s24, %s6209_s24 }
  0x4f   :  { %p6216_p10 = por %p6215_p9, %p6214_p8 }
  0x51   :  { %p6217_p11 = pnand %p6216_p10, %p6210_p7 }
  0x53   :  { %6220 = shalt.err (!%p6217_p11)
}
  0x54   :  { %s6260_s3 = smov 256   ;;  %s6261_s14 = smov 16  }
  0x55   :  { %81 = dma.hbm_to_vmem [thread:$0]  %s6907_s6, 4096, %s76_s30, [#allocation8], %s6260_s3, %s6260_s3, %s6261_s14  }
  0x56   :  { %s6262_s29 = smov [#allocation10]   ;;  %s6221_s2 = scalar_lea.hbm %s6908_s7, 2048 }
  0x57   :  { %s87_s11 = sshll.u32 %s6262_s29, 4  ;;  %p6222_p12 = scmp.ne.s32.totalorder %s6908_s7, %s6221_s2  ;;  %s88_s11 = int_to_ptr.vmem [resolvable:$true] %s87_s11 }
  0x58   :  { %p6225_p13 = scmp.lt.u32.totalorder %s6221_s2, %s6908_s7 }
  0x5a   :  { %p6227_p0 = pnand %p6225_p13, %p6222_p12 }
  0x5c   :  { %6230 = shalt.err (!%p6227_p0)
}
  0x5d   :  { %s6231_s26 = scalar_lea.vmem %s88_s11, 2048  ;;  %p6236_p2 = scmp.lt.s32.totalorder %s88_s11, %s88_s11 }
  0x5e   :  { %p6232_p1 = scmp.ne.s32.totalorder %s88_s11, %s6231_s26  ;;  %p6237_p3 = scmp.lt.s32.totalorder %s6231_s26, %s6231_s26 }
  0x60   :  { %p6238_p4 = por %p6237_p3, %p6236_p2 }
  0x62   :  { %p6239_p5 = pnand %p6238_p4, %p6232_p1 }
  0x64   :  { %6242 = shalt.err (!%p6239_p5)
}
  0x65   :  { %s6263_s6 = smov 128   ;;  %s6264_s30 = smov 8  }
  0x66   :  { %93 = dma.hbm_to_vmem [thread:$0]  %s6908_s7, 2048, %s88_s11, [#allocation11], %s6263_s6, %s6263_s6, %s6264_s30  }
  0x67   :  { %6243 = dma.done.wait [#allocation3], 1024  }
  0x68   :  { %6244 = vsyncadd [#allocation3], 4294966272 }
  0x69   :  { %6245 = dma.done.wait [#allocation5], 24576  }
  0x6a   :  { %6246 = vsyncadd [#allocation5], 4294942720 }
  0x6b   :  { %6247 = dma.done.wait [#allocation8], 8192  }
  0x6c   :  { %6248 = vsyncadd [#allocation8], 4294959104 }
  0x6d   :  { %6249 = dma.done.wait [#allocation11], 2048  }
  0x6e   :  { %6250 = vsyncadd [#allocation11], 4294965248  ;;  %v6265_v0 = vmov 0   ;;  %v117_v1 = vld [vmem:[%s6901_s0 + $0x10] sm:$0xff]  ;;  %v115_v2 = vld [vmem:[%s6901_s0] sm:$0xff]  ;;  %v119_v28 = vlaneseq  ;;  %s6267_s14 = smov 32  }
  0x6f   :  { %5540 = vset.pattern.permute.xlu1 %v6265_v0  ;;  %5539 = vset.pattern.permute.xlu0 %v6265_v0  ;;  %v118_v3 = vld [vmem:[%s6901_s0 + $0x18] sm:$0xff]  ;;  %v116_v4 = vld [vmem:[%s6901_s0 + $0x8] sm:$0xff]  ;;  %v5541_v5 = vld [vmem:[#allocation2] sm:$0xff]   ;;  %v6266_v35 = vmov 1.0|1.0   ;;  %vm6269_vm6 = vmmov 0  }
  0x70   :  { %467 = vmatprep.mubr.bf16.mxu1 %v6265_v0  ;;  %128 = vperm.xlu1 %5540, %v117_v1   ;;  %v5542_v6 = vld [vmem:[#allocation2 + $0x8] sm:$0xff]   ;;  %v5543_v7 = vld [vmem:[#allocation2 + $0x10] sm:$0xff]   ;;  %v5549_v8 = vld [vmem:[#allocation4 + $0x4] ss:$24 sps:$4 sm:$0xff]   ;;  %v120_v31 = vand.u32 127, %v119_v28  ;;  %vm4428_vm7 = vcmask 1041409  }
  0x71   :  { %122 = vperm.xlu0 %5539, %v115_v2   ;;  %5340 = vmatprep.subr.bf16.mxu0 %v5541_v5  ;;  %v5551_v9 = vld [vmem:[#allocation4] ss:$24 sps:$4 sm:$0xff]   ;;  %v5553_v11 = vld [vmem:[#allocation4 + $0x34] ss:$24 sps:$4 sm:$0xff]   ;;  %v5555_v12 = vld [vmem:[#allocation4 + $0x30] ss:$24 sps:$4 sm:$0xff]  }
  0x72   :  { %5341 = vmatpush3.bf16.msra.mxu0 %v5541_v5  ;;  %v5544_v10 = vld [vmem:[#allocation2 + $0x18] sm:$0xff]   ;;  %435 = vmatprep.subr.bf16.mxu1 %v5549_v8  ;;  %v5545_v14 = vld [vmem:[#allocation2 + $0x20] sm:$0xff]   ;;  %v5546_v16 = vld [vmem:[#allocation2 + $0x28] sm:$0xff]   ;;  %vm4430_vm8 = vcmask 1042434   ;;  %vm4432_vm9 = vcmask 1043459   ;;  %vm4435_vm10 = vcmask 1043456  }
  0x73   :  { %5342 = vmatprep.subr.bf16.mxu0 %v5542_v6  ;;  %436 = vmatpush1.bf16.msra.mxu1 %v5551_v9  ;;  %v5557_v13 = vld [vmem:[#allocation4 + $0x64] ss:$24 sps:$4 sm:$0xff]   ;;  %v5559_v15 = vld [vmem:[#allocation4 + $0x60] ss:$24 sps:$4 sm:$0xff]   ;;  %v5561_v17 = vld [vmem:[#allocation4 + $0x94] ss:$24 sps:$4 sm:$0xff]  }
  0x74   :  { %131 = vperm.xlu1 %5540, %v118_v3   ;;  %437 = vmatprep.subr.bf16.mxu1 %v5553_v11  ;;  %v5563_v18 = vld [vmem:[#allocation4 + $0x90] ss:$24 sps:$4 sm:$0xff]   ;;  %v5565_v20 = vld [vmem:[#allocation4 + $0xc4] ss:$24 sps:$4 sm:$0xff]   ;;  %v5567_v21 = vld [vmem:[#allocation4 + $0xc0] ss:$24 sps:$4 sm:$0xff]  }
  0x75   :  { %125 = vperm.xlu0 %5539, %v116_v4   ;;  %v5547_v19 = vld [vmem:[#allocation2 + $0x30] sm:$0xff]   ;;  %v5548_v22 = vld [vmem:[#allocation2 + $0x38] sm:$0xff]   ;;  %v5552_v25 = vld [vmem:[#allocation4 + $0x8] ss:$24 sps:$4 sm:$0xff]  }
  0x76   :  { %5343 = vmatpush3.bf16.msra.mxu0 %v5542_v6  ;;  %v5569_v23 = vld [vmem:[#allocation4 + $0xf4] ss:$24 sps:$4 sm:$0xff]   ;;  %v5571_v24 = vld [vmem:[#allocation4 + $0xf0] ss:$24 sps:$4 sm:$0xff]   ;;  %v5573_v26 = vld [vmem:[#allocation4 + $0x124] ss:$24 sps:$4 sm:$0xff]  }
  0x77   :  { %5344 = vmatprep.subr.bf16.mxu0 %v5543_v7  ;;  %438 = vmatpush1.bf16.msra.mxu1 %v5555_v12  ;;  %v5575_v27 = vld [vmem:[#allocation4 + $0x120] ss:$24 sps:$4 sm:$0xff]   ;;  %v5577_v41 = vld [vmem:[#allocation4 + $0x154] ss:$24 sps:$4 sm:$0xff]   ;;  %v5579_v42 = vld [vmem:[#allocation4 + $0x150] ss:$24 sps:$4 sm:$0xff]  }
  0x78   :  { %439 = vmatprep.subr.bf16.mxu1 %v5557_v13  ;;  %v5556_v34 = vld [vmem:[#allocation4 + $0x38] ss:$24 sps:$4 sm:$0xff]   ;;  %v5560_v36 = vld [vmem:[#allocation4 + $0x68] ss:$24 sps:$4 sm:$0xff]   ;;  %vm4988_vm11 = vmpackc.low %vm4435_vm10, %vm4435_vm10 }
  0x79   :  { %v5564_v37 = vld [vmem:[#allocation4 + $0x98] ss:$24 sps:$4 sm:$0xff]   ;;  %v5568_v38 = vld [vmem:[#allocation4 + $0xc8] ss:$24 sps:$4 sm:$0xff]  }
  0x7a   :  { %5345 = vmatpush3.bf16.msra.mxu0 %v5543_v7  ;;  %v5572_v39 = vld [vmem:[#allocation4 + $0xf8] ss:$24 sps:$4 sm:$0xff]   ;;  %v5576_v40 = vld [vmem:[#allocation4 + $0x128] ss:$24 sps:$4 sm:$0xff]  }
  0x7b   :  { %5346 = vmatprep.subr.bf16.mxu0 %v5544_v10  ;;  %440 = vmatpush1.bf16.msra.mxu1 %v5559_v15  ;;  %v5580_v43 = vld [vmem:[#allocation4 + $0x158] ss:$24 sps:$4 sm:$0xff]   ;;  %v5581_v44 = vld [vmem:[#allocation7 + $0x40] sm:$0xff]   ;;  %v5583_v54 = vld [vmem:[#allocation7 + $0x48] sm:$0xff]  }
  0x7c   :  { %441 = vmatprep.subr.bf16.mxu1 %v5561_v17  ;;  %v5586_v45 = vld [vmem:[#allocation7 + $0xc0] sm:$0xff]   ;;  %v5590_v55 = vld [vmem:[#allocation7 + $0xc8] sm:$0xff]   ;;  %v5585_v58 = vld [vmem:[#allocation7 + $0x50] sm:$0xff]  }
  0x7d   :  { %v5582_v52 = vld [vmem:[#allocation7] sm:$0xff]   ;;  %v5584_v56 = vld [vmem:[#allocation7 + $0x8] sm:$0xff]   ;;  %v5594_v59 = vld [vmem:[#allocation7 + $0xd0] sm:$0xff]  }
  0x7e   :  { %5347 = vmatpush3.bf16.msra.mxu0 %v5544_v10  ;;  %v5588_v53 = vld [vmem:[#allocation7 + $0x80] sm:$0xff]   ;;  %v5592_v57 = vld [vmem:[#allocation7 + $0x88] sm:$0xff]   ;;  %v5587_v60 = vld [vmem:[#allocation7 + $0x10] sm:$0xff]  }
  0x7f   :  { %5348 = vmatprep.subr.bf16.mxu0 %v5545_v14  ;;  %442 = vmatpush1.bf16.msra.mxu1 %v5563_v18  ;;  %v5596_v61 = vld [vmem:[#allocation7 + $0x90] sm:$0xff]   ;;  %v5589_v62 = vld [vmem:[#allocation7 + $0x58] sm:$0xff]   ;;  %v5593_v2 = vld [vmem:[#allocation7 + $0x60] sm:$0xff]  }
  0x80   :  { %443 = vmatprep.subr.bf16.mxu1 %v5565_v20  ;;  %v5598_v63 = vld [vmem:[#allocation7 + $0xd8] sm:$0xff]   ;;  %v5595_v3 = vld [vmem:[#allocation7 + $0x20] sm:$0xff]   ;;  %v5597_v4 = vld [vmem:[#allocation7 + $0x68] sm:$0xff]  }
  0x81   :  { %v5591_v1 = vld [vmem:[#allocation7 + $0x18] sm:$0xff]   ;;  %v5599_v5 = vld [vmem:[#allocation7 + $0x28] sm:$0xff]   ;;  %v5601_v7 = vld [vmem:[#allocation7 + $0x70] sm:$0xff]  }
  0x82   :  { %5349 = vmatpush3.bf16.msra.mxu0 %v5545_v14  ;;  %v5600_v6 = vld [vmem:[#allocation7 + $0x98] sm:$0xff]   ;;  %v5602_v8 = vld [vmem:[#allocation7 + $0xe0] sm:$0xff]   ;;  %v5603_v9 = vld [vmem:[#allocation7 + $0x30] sm:$0xff]  }
  0x83   :  { %5350 = vmatprep.subr.bf16.mxu0 %v5546_v16  ;;  %444 = vmatpush1.bf16.msra.mxu1 %v5567_v21  ;;  %v5604_v10 = vld [vmem:[#allocation7 + $0xa0] sm:$0xff]   ;;  %v5605_v11 = vld [vmem:[#allocation7 + $0x78] sm:$0xff]   ;;  %v5606_v12 = vld [vmem:[#allocation7 + $0xe8] sm:$0xff]  }
  0x84   :  { %445 = vmatprep.subr.bf16.mxu1 %v5569_v23  ;;  %v5607_v13 = vld [vmem:[#allocation7 + $0x38] sm:$0xff]   ;;  %v5608_v14 = vld [vmem:[#allocation7 + $0xa8] sm:$0xff]   ;;  %v5609_v15 = vld [vmem:[#allocation7 + $0xf0] sm:$0xff]  }
  0x85   :  { %v5611_v17 = vld [vmem:[#allocation7 + $0xf8] sm:$0xff]  }
  0x86   :  { %5351 = vmatpush3.bf16.msra.mxu0 %v5546_v16  ;;  %v5610_v16 = vld [vmem:[#allocation7 + $0xb0] sm:$0xff]   ;;  %v5612_v18 = vld [vmem:[#allocation7 + $0xb8] sm:$0xff]  }
  0x87   :  { %5352 = vmatprep.subr.bf16.mxu0 %v5547_v19  ;;  %446 = vmatpush1.bf16.msra.mxu1 %v5571_v24 }
  0x88   :  { %447 = vmatprep.subr.bf16.mxu1 %v5573_v26 }
  0x8a   :  { %5353 = vmatpush3.bf16.msra.mxu0 %v5547_v19  ;;  %v6431_v19 = vshrl.u32 %v119_v28, 7 }
  0x8b   :  { %5354 = vmatprep.subr.bf16.mxu0 %v5548_v22  ;;  %448 = vmatpush1.bf16.msra.mxu1 %v5575_v27 }
  0x8c   :  { %449 = vmatprep.subr.bf16.mxu1 %v5577_v41  ;;  %v6434_v20 = vsub.s32 0, %v6431_v19  ;;  %v6437_v21 = vsub.s32 1, %v6431_v19 }
  0x8e   :  { %5355 = vmatpush3.bf16.msra.mxu0 %v5548_v22  ;;  %v6442_v22 = vld [vmem:[%s6905_s4] sm:$0x7] }
  0x8f   :  { %5360 = vmatprep.subr.bf16.mxu0 %v5552_v25  ;;  %450 = vmatpush1.bf16.msra.mxu1 %v5579_v42  ;;  %v295_v23 = vrot.slane %v6442_v22, %v6434_v20  ;;  %v299_v24 = vrot.slane %v6442_v22, %v6437_v21 }
  0x90   :  { %5020 = vmatprep.subr.bf16.mxu1 %v5581_v44 }
  0xef   :  { %v129_v29 = vpop.permute.xlu1 %128 }
  0xf0   :  { %v123_v30 = vpop.permute.xlu0 %122  ;;  %vm135_vm0 = vcmp.eq.s32.totalorder %v129_v29, %v120_v31 }
  0xf1   :  { %vm133_vm4 = vcmp.eq.s32.totalorder %v123_v30, %v120_v31 }
  0xf3   :  { %v132_v32 = vpop.permute.xlu1 %131 }
  0xf4   :  { %v126_v33 = vpop.permute.xlu0 %125  ;;  %vm136_vm1 = vcmp.eq.s32.totalorder %v132_v32, %v120_v31 }
  0xf5   :  { %vm134_vm2 = vcmp.eq.s32.totalorder %v126_v33, %v120_v31  ;;  %vm4687_vm3 = vmpackc.low %vm136_vm1, %vm135_vm0 }
  0xf6   :  { %vm4685_vm5 = vmpackc.low %vm134_vm2, %vm133_vm4 }
  0xf7   :  { %5356 = vmatprep.mubr.msk.bf16.mxu0 %vm4685_vm5, %v6266_v35 }
  0xf8   :  { %5357 = vmatmul.mubr.msk.bf16.vlgmr.msra.gmra.mrb[0].mxu0 %vm4687_vm3, %v6266_v35 }
  0xf9   :  { %5361 = vmatpush3.bf16.msra.mxu0 %v5552_v25 }
  0xfa   :  { %5362 = vmatprep.subr.bf16.mxu0 %v5556_v34 }
  0xfd   :  { %5363 = vmatpush3.bf16.msra.mxu0 %v5556_v34 }
  0xfe   :  { %5364 = vmatprep.subr.bf16.mxu0 %v5560_v36 }
 0x101   :  { %5365 = vmatpush3.bf16.msra.mxu0 %v5560_v36 }
 0x102   :  { %5366 = vmatprep.subr.bf16.mxu0 %v5564_v37 }
 0x105   :  { %5367 = vmatpush3.bf16.msra.mxu0 %v5564_v37 }
 0x106   :  { %5368 = vmatprep.subr.bf16.mxu0 %v5568_v38 }
 0x109   :  { %5369 = vmatpush3.bf16.msra.mxu0 %v5568_v38 }
 0x10a   :  { %5370 = vmatprep.subr.bf16.mxu0 %v5572_v39 }
 0x10d   :  { %5371 = vmatpush3.bf16.msra.mxu0 %v5572_v39 }
 0x10e   :  { %5372 = vmatprep.subr.bf16.mxu0 %v5576_v40 }
 0x111   :  { %5373 = vmatpush3.bf16.msra.mxu0 %v5576_v40 }
 0x112   :  { %5374 = vmatprep.subr.bf16.mxu0 %v5580_v43 }
 0x115   :  { %5375 = vmatpush3.bf16.msra.mxu0 %v5580_v43 }
 0x116   :  { %5048 = vmatprep.subr.bf16.mxu0 %v5586_v45 }
 0x1cb   :  { %v6417_v46 = vpop.f32.mrb[0].mxu0 }
 0x1cc   :  { %v6419_v47 = vpop.f32.mrb[1].mxu0 }
 0x1cd   :  { %v6421_v48 = vpop.f32.mrb[2].mxu0 }
 0x1ce   :  { %v257_v49 = vpack.c.bf16 %v6421_v48, %v6417_v46  ;;  %v6425_v50 = vpop.f32.mrb[3].mxu0 }
 0x1cf   :  { %v256_v51 = vpack.c.bf16 %v6425_v50, %v6419_v47 }
 0x1d1   :  { %468 = vmatmul.mubr.bf16.vlgmr.msra.gmra.mrb[0].mxu1 %v256_v51  ;;  %5376 = vmatprep.mubr.bf16.mxu0 %v256_v51 }
 0x1d2   :  { %5377 = vmatmul.mubr.bf16.vlgmr.msra.gmra.mrb[4].mxu0 %v257_v49  ;;  %477 = vmatprep.mubr.bf16.mxu1 %v6265_v0 }
 0x1d3   :  { %5021 = vmatpush3.bf16.msra.mxu1 %v5582_v52  ;;  %5049 = vmatpush3.bf16.msra.mxu0 %v5588_v53 }
 0x1d4   :  { %5022 = vmatprep.subr.bf16.mxu1 %v5583_v54  ;;  %5050 = vmatprep.subr.bf16.mxu0 %v5590_v55 }
 0x1d7   :  { %5023 = vmatpush3.bf16.msra.mxu1 %v5584_v56  ;;  %5051 = vmatpush3.bf16.msra.mxu0 %v5592_v57 }
 0x1d8   :  { %5024 = vmatprep.subr.bf16.mxu1 %v5585_v58  ;;  %5052 = vmatprep.subr.bf16.mxu0 %v5594_v59 }
 0x1d9   :  { %478 = vmatmul.mubr.bf16.gmra.mrb[4].mxu1 %v257_v49 }
 0x1db   :  { %5025 = vmatpush3.bf16.msra.mxu1 %v5587_v60  ;;  %5053 = vmatpush3.bf16.msra.mxu0 %v5596_v61 }
 0x1dc   :  { %5026 = vmatprep.subr.bf16.mxu1 %v5589_v62  ;;  %5054 = vmatprep.subr.bf16.mxu0 %v5598_v63 }
 0x1df   :  { %5027 = vmatpush3.bf16.msra.mxu1 %v5591_v1  ;;  %5055 = vmatpush3.bf16.msra.mxu0 %v5600_v6 }
 0x1e0   :  { %5028 = vmatprep.subr.bf16.mxu1 %v5593_v2  ;;  %5056 = vmatprep.subr.bf16.mxu0 %v5602_v8 }
 0x1e3   :  { %5029 = vmatpush3.bf16.msra.mxu1 %v5595_v3  ;;  %5057 = vmatpush3.bf16.msra.mxu0 %v5604_v10 }
 0x1e4   :  { %5030 = vmatprep.subr.bf16.mxu1 %v5597_v4  ;;  %5058 = vmatprep.subr.bf16.mxu0 %v5606_v12 }
 0x1e7   :  { %5031 = vmatpush3.bf16.msra.mxu1 %v5599_v5  ;;  %5059 = vmatpush3.bf16.msra.mxu0 %v5608_v14 }
 0x1e8   :  { %5032 = vmatprep.subr.bf16.mxu1 %v5601_v7  ;;  %5060 = vmatprep.subr.bf16.mxu0 %v5609_v15 }
 0x1eb   :  { %5033 = vmatpush3.bf16.msra.mxu1 %v5603_v9  ;;  %5061 = vmatpush3.bf16.msra.mxu0 %v5610_v16 }
 0x1ec   :  { %5034 = vmatprep.subr.bf16.mxu1 %v5605_v11  ;;  %5062 = vmatprep.subr.bf16.mxu0 %v5611_v17 }
 0x1ef   :  { %5035 = vmatpush3.bf16.msra.mxu1 %v5607_v13  ;;  %5063 = vmatpush3.bf16.msra.mxu0 %v5612_v18 }
 0x2a4   :  { %v469_v25 = vpop.f32.mrb[0].mxu1 }
 0x2a5   :  { %v470_v26 = vadd.f32 %v469_v25, %v295_v23  ;;  %v471_v27 = vpop.f32.mrb[1].mxu1  ;;  %v6448_v28 = vpop.f32.mrb[4].mxu0 }
 0x2a6   :  { %v472_v29 = vadd.f32 %v471_v27, %v299_v24  ;;  %v473_v30 = vpop.f32.mrb[2].mxu1  ;;  %v6450_v31 = vpop.f32.mrb[5].mxu0 }
 0x2a7   :  { %v474_v32 = vadd.f32 %v473_v30, %v295_v23  ;;  %v475_v33 = vpop.f32.mrb[3].mxu1  ;;  %v6452_v34 = vpop.f32.mrb[6].mxu0 }
 0x2a8   :  { %v537_v35 = vmul.f32 %v472_v29, %v470_v26  ;;  %v476_v36 = vadd.f32 %v475_v33, %v299_v24  ;;  %v6454_v37 = vpop.f32.mrb[7].mxu0 }
 0x2a9   :  { %v538_v38 = vmul.f32 %v474_v32, %v472_v29 }
 0x2aa   :  { %v543_v39 = vmul.f32 %v476_v36, %v470_v26  ;;  %v544_v40 = vmul.f32 %v476_v36, %v474_v32 }
 0x2ab   :  { %v541_v41 = vpack.c.bf16 %v538_v38, %v537_v35 }
 0x2ac   :  { %v479_v42 = vpop.f32.mrb[4].mxu1  ;;  %v547_v43 = vpack.c.bf16 %v544_v40, %v543_v39 }
 0x2ad   :  { %v480_v44 = vadd.f32 %v479_v42, %v295_v23  ;;  %v481_v45 = vpop.f32.mrb[5].mxu1 }
 0x2ae   :  { %v482_v49 = vadd.f32 %v481_v45, %v299_v24  ;;  %v483_v51 = vpop.f32.mrb[6].mxu1  ;;  %849 = vmatprep.mubr.bf16.mxu1 %v547_v43 }
 0x2af   :  { %v484_v52 = vadd.f32 %v483_v51, %v295_v23  ;;  %v485_v53 = vpop.f32.mrb[7].mxu1  ;;  %850 = vmatmul.mubr.bf16.vlgmr.msra.gmra.mrb[8].mxu1 %v541_v41  ;;  %v545_v54 = vmul.f32 %v480_v44, %v476_v36  ;;  %v539_v55 = vmul.f32 %v480_v44, %v472_v29 }
 0x2b0   :  { %v549_v56 = vmul.f32 %v482_v49, %v470_v26  ;;  %v550_v57 = vmul.f32 %v482_v49, %v474_v32  ;;  %v486_v58 = vadd.f32 %v485_v53, %v299_v24  ;;  %v551_v59 = vmul.f32 %v482_v49, %v480_v44 }
 0x2b1   :  { %v546_v60 = vmul.f32 %v484_v52, %v476_v36  ;;  %v540_v61 = vmul.f32 %v484_v52, %v472_v29  ;;  %v552_v62 = vmul.f32 %v484_v52, %v482_v49 }
 0x2b2   :  { %v555_v63 = vmul.f32 %v486_v58, %v470_v26  ;;  %v556_v1 = vmul.f32 %v486_v58, %v474_v32  ;;  %v553_v2 = vpack.c.bf16 %v550_v57, %v549_v56  ;;  %v557_v3 = vmul.f32 %v486_v58, %v480_v44 }
 0x2b3   :  { %v548_v4 = vpack.c.bf16 %v546_v60, %v545_v54  ;;  %v542_v5 = vpack.c.bf16 %v540_v61, %v539_v55  ;;  %v558_v6 = vmul.f32 %v486_v58, %v484_v52  ;;  %v554_v7 = vpack.c.bf16 %v552_v62, %v551_v59 }
 0x2b4   :  { %v559_v8 = vpack.c.bf16 %v556_v1, %v555_v63 }
 0x2b5   :  { %857 = vmatprep.mubr.bf16.mxu1 %v548_v4  ;;  %v560_v9 = vpack.c.bf16 %v558_v6, %v557_v3 }
 0x2b6   :  { %898 = vmatprep.mubr.bf16.mxu0 %v559_v8 }
 0x2b7   :  { %858 = vmatmul.mubr.bf16.gmra.mrb[12].mxu1 %v542_v5  ;;  %899 = vmatmul.mubr.bf16.vlgmr.msra.gmra.mrb[8].mxu0 %v553_v2 }
 0x2b8   :  { %906 = vmatprep.mubr.bf16.mxu0 %v560_v9  ;;  %1209 = vmatprep.mubr.bf16.mxu1 %v6265_v0 }
 0x2bf   :  { %907 = vmatmul.mubr.bf16.gmra.mrb[12].mxu0 %v554_v7 }
 0x2c0   :  { %1262 = vmatprep.mubr.bf16.mxu0 %v6265_v0 }
 0x382   :  { %v5036_v10 = vpop.f32.mrb[8].mxu1 }
 0x383   :  { %v5037_v11 = vpop.f32.mrb[9].mxu1 }
 0x384   :  { %v5038_v12 = vadd.f32 %v5037_v11, %v5036_v10  ;;  %v5039_v13 = vpop.f32.mrb[10].mxu1 }
 0x385   :  { %v5040_v14 = vpop.f32.mrb[11].mxu1 }
 0x386   :  { %v5041_v15 = vadd.f32 %v5040_v14, %v5039_v13  ;;  %v5615_v13 = vld [vmem:[#allocation9 + $0x4] ss:$16 sps:$4 sm:$0xff]   ;;  %v5616_v14 = vld [vmem:[#allocation9 + $0x8] ss:$16 sps:$4 sm:$0xff]  }
 0x387   :  { %1177 = vmatprep.subr.bf16.mxu1 %v5615_v13 }
 0x38a   :  { %v5042_v16 = vpop.f32.mrb[12].mxu1  ;;  %v5064_v17 = vpop.f32.mrb[8].mxu0 }
 0x38b   :  { %v5043_v18 = vpop.f32.mrb[13].mxu1  ;;  %v5065_v23 = vpop.f32.mrb[9].mxu0 }
 0x38c   :  { %v5044_v24 = vadd.f32 %v5043_v18, %v5042_v16  ;;  %v5066_v25 = vadd.f32 %v5065_v23, %v5064_v17  ;;  %v5045_v26 = vpop.f32.mrb[14].mxu1  ;;  %v5067_v27 = vpop.f32.mrb[10].mxu0  ;;  %v5621_v16 = vld [vmem:[#allocation9 + $0x24] ss:$16 sps:$4 sm:$0xff]   ;;  %v5624_v18 = vld [vmem:[#allocation9 + $0x2c] ss:$16 sps:$4 sm:$0xff]  }
 0x38d   :  { %v5046_v29 = vpop.f32.mrb[15].mxu1  ;;  %v5068_v30 = vpop.f32.mrb[11].mxu0  ;;  %v5619_v23 = vld [vmem:[#allocation9 + $0x20] ss:$16 sps:$4 sm:$0xff]  }
 0x38e   :  { %v901_v32 = vadd.f32 %v5066_v25, %v5038_v12  ;;  %v5047_v33 = vadd.f32 %v5046_v29, %v5045_v26  ;;  %v5069_v35 = vadd.f32 %v5068_v30, %v5067_v27  ;;  %v5613_v12 = vld [vmem:[#allocation9] ss:$16 sps:$4 sm:$0xff]   ;;  %v5627_v25 = vld [vmem:[#allocation9 + $0x44] ss:$16 sps:$4 sm:$0xff]   ;;  %v5630_v26 = vld [vmem:[#allocation9 + $0x4c] ss:$16 sps:$4 sm:$0xff]  }
 0x38f   :  { %1178 = vmatpush1.bf16.msra.mxu1 %v5613_v12  ;;  %v5625_v29 = vld [vmem:[#allocation9 + $0x40] ss:$16 sps:$4 sm:$0xff]   ;;  %v5628_v30 = vld [vmem:[#allocation9 + $0x48] ss:$16 sps:$4 sm:$0xff]  }
 0x390   :  { %v904_v36 = vadd.f32 %v5069_v35, %v5041_v15  ;;  %915 = vrot.lane.b32.xlu0 %v901_v32, %s6256_s10  ;;  %v5618_v15 = vld [vmem:[#allocation9 + $0xc] ss:$16 sps:$4 sm:$0xff]   ;;  %1179 = vmatprep.subr.bf16.mxu1 %v5621_v16 }
 0x391   :  { %1230 = vmatprep.subr.bf16.mxu0 %v5618_v15 }
 0x392   :  { %v5070_v38 = vpop.f32.mrb[12].mxu0  ;;  %917 = vrot.lane.b32.xlu1 %v904_v36, %s6256_s10  ;;  %1231 = vmatpush1.bf16.msra.mxu0 %v5616_v14 }
 0x393   :  { %v5071_v39 = vpop.f32.mrb[13].mxu0  ;;  %1232 = vmatprep.subr.bf16.mxu0 %v5624_v18  ;;  %1180 = vmatpush1.bf16.msra.mxu1 %v5619_v23 }
 0x394   :  { %v5072_v40 = vadd.f32 %v5071_v39, %v5070_v38  ;;  %v5073_v41 = vpop.f32.mrb[14].mxu0  ;;  %1181 = vmatprep.subr.bf16.mxu1 %v5627_v25  ;;  %v5634_v38 = vld [vmem:[#allocation9 + $0x68] ss:$16 sps:$4 sm:$0xff]   ;;  %v5639_v39 = vld [vmem:[#allocation9 + $0x84] ss:$16 sps:$4 sm:$0xff]  }
 0x395   :  { %v5074_v42 = vpop.f32.mrb[15].mxu0 }
 0x396   :  { %v909_v43 = vadd.f32 %v5072_v40, %v5044_v24  ;;  %v5075_v44 = vadd.f32 %v5074_v42, %v5073_v41  ;;  %v5622_v24 = vld [vmem:[#allocation9 + $0x28] ss:$16 sps:$4 sm:$0xff]   ;;  %v5642_v40 = vld [vmem:[#allocation9 + $0x8c] ss:$16 sps:$4 sm:$0xff]   ;;  %v5637_v41 = vld [vmem:[#allocation9 + $0x80] ss:$16 sps:$4 sm:$0xff]  }
 0x397   :  { %1233 = vmatpush1.bf16.msra.mxu0 %v5622_v24  ;;  %1182 = vmatpush1.bf16.msra.mxu1 %v5625_v29  ;;  %v5640_v42 = vld [vmem:[#allocation9 + $0x88] ss:$16 sps:$4 sm:$0xff]   ;;  %v5662_v24 = vld [vmem:[#allocation4 + $0x3c] ss:$24 sps:$4 sm:$0xff]   ;;  %v5663_v29 = vld [vmem:[#allocation4 + $0x6c] ss:$24 sps:$4 sm:$0xff]  }
 0x398   :  { %v912_v45 = vadd.f32 %v5075_v44, %v5047_v33  ;;  %919 = vrot.lane.b32.xlu0 %v909_v43, %s6256_s10  ;;  %v5636_v33 = vld [vmem:[#allocation9 + $0x6c] ss:$16 sps:$4 sm:$0xff]   ;;  %1234 = vmatprep.subr.bf16.mxu0 %v5630_v26 }
 0x399   :  { %v5648_v44 = vld [vmem:[#allocation9 + $0xac] ss:$16 sps:$4 sm:$0xff]  }
 0x39a   :  { %921 = vrot.lane.b32.xlu1 %v912_v45, %s6256_s10 }
 0x39b   :  { %1235 = vmatpush1.bf16.msra.mxu0 %v5628_v30 }
 0x39c   :  { %1236 = vmatprep.subr.bf16.mxu0 %v5636_v33  ;;  %v5665_v33 = vld [vmem:[#allocation4 + $0xcc] ss:$24 sps:$4 sm:$0xff]  }
 0x39f   :  { %1237 = vmatpush1.bf16.msra.mxu0 %v5634_v38  ;;  %v6498_v38 = vsub.s32 2, %v6431_v19 }
 0x3a0   :  { %1238 = vmatprep.subr.bf16.mxu0 %v5642_v40 }
 0x3a3   :  { %1239 = vmatpush1.bf16.msra.mxu0 %v5640_v42 }
 0x3a4   :  { %1240 = vmatprep.subr.bf16.mxu0 %v5648_v44 }
 0x402   :  { %v916_v49 = vpop.permute.xlu0 %915 }
 0x403   :  { %v923_v51 = vmax.f32 %v901_v32, %v916_v49  ;;  %v5646_v49 = vld [vmem:[#allocation9 + $0xa8] ss:$16 sps:$4 sm:$0xff]  }
 0x404   :  { %v918_v52 = vpop.permute.xlu1 %917  ;;  %1241 = vmatpush1.bf16.msra.mxu0 %v5646_v49 }
 0x405   :  { %v924_v53 = vmax.f32 %v904_v36, %v918_v52  ;;  %927 = vrot.lane.b32.xlu0 %v923_v51, %s6267_s14  ;;  %v5651_v52 = vld [vmem:[#allocation9 + $0xc4] ss:$16 sps:$4 sm:$0xff]  }
 0x407   :  { %929 = vrot.lane.b32.xlu1 %v924_v53, %s6267_s14 }
 0x40a   :  { %v920_v54 = vpop.permute.xlu0 %919 }
 0x40b   :  { %v925_v55 = vmax.f32 %v909_v43, %v920_v54 }
 0x40c   :  { %v922_v56 = vpop.permute.xlu1 %921 }
 0x40d   :  { %v926_v57 = vmax.f32 %v912_v45, %v922_v56  ;;  %931 = vrot.lane.b32.xlu0 %v925_v55, %s6267_s14  ;;  %v5652_v56 = vld [vmem:[#allocation9 + $0xc8] ss:$16 sps:$4 sm:$0xff]  }
 0x40f   :  { %933 = vrot.lane.b32.xlu1 %v926_v57, %s6267_s14 }
 0x477   :  { %v928_v58 = vpop.permute.xlu0 %927 }
 0x478   :  { %v935_v59 = vmax.f32 %v923_v51, %v928_v58 }
 0x479   :  { %v930_v60 = vpop.permute.xlu1 %929 }
 0x47a   :  { %v939_v61 = vsub.f32 %v901_v32, %v935_v59  ;;  %v936_v62 = vmax.f32 %v924_v53, %v930_v60  ;;  %v5633_v32 = vld [vmem:[#allocation9 + $0x64] ss:$16 sps:$4 sm:$0xff]   ;;  %v5654_v53 = vld [vmem:[#allocation9 + $0xcc] ss:$16 sps:$4 sm:$0xff]  }
 0x47b   :  { %1183 = vmatprep.subr.bf16.mxu1 %v5633_v32  ;;  %1242 = vmatprep.subr.bf16.mxu0 %v5654_v53  ;;  %v5657_v59 = vld [vmem:[#allocation9 + $0xe4] ss:$16 sps:$4 sm:$0xff]   ;;  %v5660_v60 = vld [vmem:[#allocation9 + $0xec] ss:$16 sps:$4 sm:$0xff]  }
 0x47c   :  { %v943_v63 = vmul.f32 1.442695, %v939_v61  ;;  %v940_v1 = vsub.f32 %v904_v36, %v936_v62  ;;  %v5631_v36 = vld [vmem:[#allocation9 + $0x60] ss:$16 sps:$4 sm:$0xff]   ;;  %1243 = vmatpush1.bf16.msra.mxu0 %v5652_v56  ;;  %v5658_v62 = vld [vmem:[#allocation9 + $0xe8] ss:$16 sps:$4 sm:$0xff]  }
 0x47d   :  { %1184 = vmatpush1.bf16.msra.mxu1 %v5631_v36  ;;  %v5655_v61 = vld [vmem:[#allocation9 + $0xe0] ss:$16 sps:$4 sm:$0xff]   ;;  %1244 = vmatprep.subr.bf16.mxu0 %v5660_v60  ;;  %v5666_v36 = vld [vmem:[#allocation4 + $0xfc] ss:$24 sps:$4 sm:$0xff]  }
 0x47e   :  { %5885 = vpow2.f32 %v943_v63  ;;  %v945_v2 = vmul.f32 1.442695, %v940_v1  ;;  %1185 = vmatprep.subr.bf16.mxu1 %v5639_v39  ;;  %v303_v39 = vrot.slane %v6442_v22, %v6498_v38 }
 0x47f   :  { %v932_v3 = vpop.permute.xlu0 %931 }
 0x480   :  { %5887 = vpow2.f32 %v945_v2  ;;  %v937_v4 = vmax.f32 %v925_v55, %v932_v3  ;;  %v5649_v55 = vld [vmem:[#allocation9 + $0xc0] ss:$16 sps:$4 sm:$0xff]   ;;  %1245 = vmatpush1.bf16.msra.mxu0 %v5658_v62  ;;  %v531_v40 = vadd.f32 %v6448_v28, %v303_v39  ;;  %v534_v42 = vadd.f32 %v6452_v34, %v303_v39 }
 0x481   :  { %v934_v5 = vpop.permute.xlu1 %933  ;;  %1186 = vmatpush1.bf16.msra.mxu1 %v5637_v41  ;;  %v523_v41 = vadd.f32 %v6450_v31, %v303_v39 }
 0x482   :  { %v941_v6 = vsub.f32 %v909_v43, %v937_v4  ;;  %v938_v7 = vmax.f32 %v926_v57, %v934_v5  ;;  %v5645_v43 = vld [vmem:[#allocation9 + $0xa4] ss:$16 sps:$4 sm:$0xff]  }
 0x483   :  { %1187 = vmatprep.subr.bf16.mxu1 %v5645_v43  ;;  %v5661_v4 = vld [vmem:[#allocation4 + $0xc] ss:$24 sps:$4 sm:$0xff]   ;;  %v526_v43 = vadd.f32 %v6454_v37, %v303_v39 }
 0x484   :  { %v947_v8 = vmul.f32 1.442695, %v941_v6  ;;  %v942_v9 = vsub.f32 %v912_v45, %v938_v7  ;;  %v5643_v45 = vld [vmem:[#allocation9 + $0xa0] ss:$16 sps:$4 sm:$0xff]  }
 0x485   :  { %1188 = vmatpush1.bf16.msra.mxu1 %v5643_v45 }
 0x486   :  { %5889 = vpow2.f32 %v947_v8  ;;  %v949_v10 = vmul.f32 1.442695, %v942_v9  ;;  %1189 = vmatprep.subr.bf16.mxu1 %v5651_v52 }
 0x488   :  { %v6466_v11 = vpop.eup %5885  ;;  %5891 = vpow2.f32 %v949_v10 }
 0x489   :  { %951 = vrot.lane.b32.xlu0 %v6466_v11, %s6256_s10  ;;  %1190 = vmatpush1.bf16.msra.mxu1 %v5649_v55 }
 0x48a   :  { %v6470_v17 = vpop.eup %5887  ;;  %1191 = vmatprep.subr.bf16.mxu1 %v5657_v59 }
 0x48b   :  { %953 = vrot.lane.b32.xlu1 %v6470_v17, %s6256_s10 }
 0x48d   :  { %1192 = vmatpush1.bf16.msra.mxu1 %v5655_v61 }
 0x48e   :  { %5380 = vmatprep.subr.bf16.mxu1 %v5661_v4 }
 0x490   :  { %v6474_v27 = vpop.eup %5889 }
 0x491   :  { %955 = vrot.lane.b32.xlu0 %v6474_v27, %s6256_s10 }
 0x492   :  { %v6478_v35 = vpop.eup %5891 }
 0x493   :  { %957 = vrot.lane.b32.xlu1 %v6478_v35, %s6256_s10 }
 0x4fb   :  { %v952_v51 = vpop.permute.xlu0 %951 }
 0x4fc   :  { %v959_v54 = vadd.f32 %v6466_v11, %v952_v51 }
 0x4fd   :  { %v954_v57 = vpop.permute.xlu1 %953 }
 0x4fe   :  { %v960_v58 = vadd.f32 %v6470_v17, %v954_v57  ;;  %963 = vrot.lane.b32.xlu0 %v959_v54, %s6267_s14 }
 0x500   :  { %965 = vrot.lane.b32.xlu1 %v960_v58, %s6267_s14 }
 0x503   :  { %v956_v63 = vpop.permute.xlu0 %955 }
 0x504   :  { %v961_v1 = vadd.f32 %v6474_v27, %v956_v63 }
 0x505   :  { %v958_v2 = vpop.permute.xlu1 %957 }
 0x506   :  { %v962_v3 = vadd.f32 %v6478_v35, %v958_v2  ;;  %967 = vrot.lane.b32.xlu0 %v961_v1, %s6267_s14 }
 0x508   :  { %969 = vrot.lane.b32.xlu1 %v962_v3, %s6267_s14 }
 0x570   :  { %v964_v5 = vpop.permute.xlu0 %963 }
 0x571   :  { %v971_v6 = vadd.f32 %v964_v5, %v959_v54 }
 0x572   :  { %v966_v7 = vpop.permute.xlu1 %965 }
 0x573   :  { %5893 = vrcp.f32 %v971_v6  ;;  %v972_v8 = vadd.f32 %v966_v7, %v960_v58 }
 0x575   :  { %5895 = vrcp.f32 %v972_v8 }
 0x578   :  { %v968_v9 = vpop.permute.xlu0 %967 }
 0x579   :  { %v973_v10 = vadd.f32 %v968_v9, %v961_v1 }
 0x57a   :  { %v970_v12 = vpop.permute.xlu1 %969 }
 0x57b   :  { %5897 = vrcp.f32 %v973_v10  ;;  %v974_v13 = vadd.f32 %v970_v12, %v962_v3 }
 0x57d   :  { %v5894_v14 = vpop.eup %5893  ;;  %5899 = vrcp.f32 %v974_v13 }
 0x57e   :  { %v979_v16 = vmul.f32 %v5894_v14, %v6466_v11 }
 0x57f   :  { %v5896_v15 = vpop.eup %5895 }
 0x580   :  { %v980_v18 = vmul.f32 %v5896_v15, %v6470_v17  ;;  %v5664_v17 = vld [vmem:[#allocation4 + $0x9c] ss:$24 sps:$4 sm:$0xff]  }
 0x582   :  { %v983_v23 = vpack.c.bf16 %v980_v18, %v979_v16 }
 0x584   :  { %1210 = vmatmul.mubr.bf16.vlgmr.msra.gmra.mrb[16].mxu1 %v983_v23  ;;  %1263 = vmatmul.mubr.bf16.vlgmr.msra.gmra.mrb[16].mxu0 %v983_v23 }
 0x585   :  { %v5898_v25 = vpop.eup %5897  ;;  %1219 = vmatprep.mubr.bf16.mxu1 %v6265_v0  ;;  %1272 = vmatprep.mubr.bf16.mxu0 %v6265_v0 }
 0x586   :  { %5381 = vmatpush3.bf16.msra.mxu1 %v5661_v4  ;;  %v981_v30 = vmul.f32 %v5898_v25, %v6474_v27  ;;  %v5667_v27 = vld [vmem:[#allocation4 + $0x12c] ss:$24 sps:$4 sm:$0xff]  }
 0x587   :  { %v5900_v26 = vpop.eup %5899  ;;  %5382 = vmatprep.subr.bf16.mxu1 %v5662_v24 }
 0x588   :  { %v982_v32 = vmul.f32 %v5900_v26, %v6478_v35  ;;  %v5668_v35 = vld [vmem:[#allocation4 + $0x15c] ss:$24 sps:$4 sm:$0xff]  }
 0x58a   :  { %v984_v11 = vpack.c.bf16 %v982_v32, %v981_v30  ;;  %5383 = vmatpush3.bf16.msra.mxu1 %v5662_v24 }
 0x58b   :  { %5384 = vmatprep.subr.bf16.mxu1 %v5663_v29 }
 0x58c   :  { %1220 = vmatmul.mubr.bf16.gmra.mrb[20].mxu1 %v984_v11  ;;  %1273 = vmatmul.mubr.bf16.gmra.mrb[20].mxu0 %v984_v11 }
 0x58d   :  { %1646 = vmatprep.mubr.bf16.mxu0 %v6265_v0 }
 0x58e   :  { %5385 = vmatpush3.bf16.msra.mxu1 %v5663_v29 }
 0x58f   :  { %5386 = vmatprep.subr.bf16.mxu1 %v5664_v17 }
 0x592   :  { %5387 = vmatpush3.bf16.msra.mxu1 %v5664_v17  ;;  %v4777_v17 = vld [vmem:[%s6905_s4 + $0x3] ss:$0 sm:$0xff] }
 0x593   :  { %5388 = vmatprep.subr.bf16.mxu1 %v5665_v33 }
 0x596   :  { %5389 = vmatpush3.bf16.msra.mxu1 %v5665_v33 }
 0x597   :  { %5390 = vmatprep.subr.bf16.mxu1 %v5666_v36 }
 0x59a   :  { %5391 = vmatpush3.bf16.msra.mxu1 %v5666_v36 }
 0x59b   :  { %5392 = vmatprep.subr.bf16.mxu1 %v5667_v27 }
 0x59e   :  { %5393 = vmatpush3.bf16.msra.mxu1 %v5667_v27 }
 0x59f   :  { %5394 = vmatprep.subr.bf16.mxu1 %v5668_v35 }
 0x5a2   :  { %5395 = vmatpush3.bf16.msra.mxu1 %v5668_v35 }
 0x657   :  { %v1211_v44 = vpop.f32.mrb[16].mxu1  ;;  %v1264_v45 = vpop.f32.mrb[16].mxu0 }
 0x658   :  { %v1283_v49 = vmul.f32 %v1211_v44, %v523_v41  ;;  %v1295_v51 = vmul.f32 %v1264_v45, %v531_v40  ;;  %v1213_v52 = vpop.f32.mrb[17].mxu1  ;;  %v1266_v53 = vpop.f32.mrb[17].mxu0 }
 0x659   :  { %v1287_v54 = vmul.f32 %v1213_v52, %v526_v43  ;;  %v1303_v19 = vmul.f32 %v1266_v53, %v534_v42  ;;  %v1215_v55 = vpop.f32.mrb[18].mxu1  ;;  %v1268_v56 = vpop.f32.mrb[18].mxu0  ;;  %v5671_v52 = vld [vmem:[#allocation4 + $0x14] ss:$24 sps:$4 sm:$0xff]   ;;  %v5674_v53 = vld [vmem:[#allocation4 + $0x44] ss:$24 sps:$4 sm:$0xff]  }
 0x65a   :  { %v1284_v57 = vmul.f32 %v1215_v55, %v523_v41  ;;  %v1296_v22 = vmul.f32 %v1268_v56, %v531_v40  ;;  %v1217_v58 = vpop.f32.mrb[19].mxu1  ;;  %v1270_v28 = vpop.f32.mrb[19].mxu0  ;;  %1614 = vmatprep.subr.bf16.mxu0 %v5671_v52 }
 0x65b   :  { %v1291_v59 = vadd.f32 %v1287_v54, %v1283_v49  ;;  %v1288_v31 = vmul.f32 %v1217_v58, %v526_v43  ;;  %v1304_v60 = vmul.f32 %v1270_v28, %v534_v42  ;;  %v5672_v54 = vld [vmem:[#allocation4 + $0x40] ss:$24 sps:$4 sm:$0xff]  }
 0x65d   :  { %v1299_v34 = vadd.f32 %v1295_v51, %v1291_v59  ;;  %v1292_v61 = vadd.f32 %v1288_v31, %v1284_v57  ;;  %v5669_v51 = vld [vmem:[#allocation4 + $0x10] ss:$24 sps:$4 sm:$0xff]  }
 0x65e   :  { %1615 = vmatpush1.bf16.msra.mxu0 %v5669_v51 }
 0x65f   :  { %v1307_v37 = vadd.f32 %v1303_v19, %v1299_v34  ;;  %v1300_v62 = vadd.f32 %v1296_v22, %v1292_v61  ;;  %v1221_v63 = vpop.f32.mrb[20].mxu1  ;;  %v1274_v1 = vpop.f32.mrb[20].mxu0  ;;  %1616 = vmatprep.subr.bf16.mxu0 %v5674_v53  ;;  %v4787_v53 = vld [vmem:[%s6905_s4 + $0x8] ss:$0 sm:$0xff] }
 0x660   :  { %v1285_v2 = vmul.f32 %v1221_v63, %v523_v41  ;;  %v1297_v3 = vmul.f32 %v1274_v1, %v531_v40  ;;  %v1223_v4 = vpop.f32.mrb[21].mxu1  ;;  %v1276_v5 = vpop.f32.mrb[21].mxu0  ;;  %v5680_v63 = vld [vmem:[#allocation4 + $0xa4] ss:$24 sps:$4 sm:$0xff]   ;;  %v5678_v1 = vld [vmem:[#allocation4 + $0xa0] ss:$24 sps:$4 sm:$0xff]  }
 0x661   :  { %v1308_v6 = vadd.f32 %v1304_v60, %v1300_v62  ;;  %v1289_v7 = vmul.f32 %v1223_v4, %v526_v43  ;;  %v1305_v8 = vmul.f32 %v1276_v5, %v534_v42  ;;  %v1225_v9 = vpop.f32.mrb[22].mxu1  ;;  %v1278_v10 = vpop.f32.mrb[22].mxu0  ;;  %v5675_v62 = vld [vmem:[#allocation4 + $0x70] ss:$24 sps:$4 sm:$0xff]   ;;  %v5686_v4 = vld [vmem:[#allocation4 + $0x104] ss:$24 sps:$4 sm:$0xff]  }
 0x662   :  { %v1286_v12 = vmul.f32 %v1225_v9, %v523_v41  ;;  %v1298_v13 = vmul.f32 %v1278_v10, %v531_v40  ;;  %v1227_v14 = vpop.f32.mrb[23].mxu1  ;;  %v1280_v15 = vpop.f32.mrb[23].mxu0  ;;  %1617 = vmatpush1.bf16.msra.mxu0 %v5672_v54  ;;  %v5684_v5 = vld [vmem:[#allocation4 + $0x100] ss:$24 sps:$4 sm:$0xff]   ;;  %v5692_v9 = vld [vmem:[#allocation4 + $0x164] ss:$24 sps:$4 sm:$0xff]  }
 0x663   :  { %v1293_v16 = vadd.f32 %v1289_v7, %v1285_v2  ;;  %v1290_v18 = vmul.f32 %v1227_v14, %v526_v43  ;;  %v1306_v23 = vmul.f32 %v1280_v15, %v534_v42  ;;  %v1311_v24 = vpack.c.bf16 %v1308_v6, %v1307_v37  ;;  %v5677_v37 = vld [vmem:[#allocation4 + $0x74] ss:$24 sps:$4 sm:$0xff]   ;;  %v5687_v7 = vld [vmem:[#allocation4 + $0x130] ss:$24 sps:$4 sm:$0xff]   ;;  %v5693_v10 = vld [vmem:[#allocation6 + $0x40] sm:$0xff]  }
 0x664   :  { %1618 = vmatprep.subr.bf16.mxu0 %v5677_v37  ;;  %v5683_v2 = vld [vmem:[#allocation4 + $0xd4] ss:$24 sps:$4 sm:$0xff]   ;;  %5086 = vmatprep.subr.bf16.mxu1 %v5693_v10  ;;  %v1522_v37 = vld [vmem:[%s6905_s4 + $0x4] sm:$0x3] }
 0x665   :  { %v1301_v25 = vadd.f32 %v1297_v3, %v1293_v16  ;;  %v1294_v26 = vadd.f32 %v1290_v18, %v1286_v12  ;;  %5396 = vmatprep.mubr.bf16.mxu1 %v1311_v24  ;;  %v5681_v3 = vld [vmem:[#allocation4 + $0xd0] ss:$24 sps:$4 sm:$0xff]   ;;  %v5689_v6 = vld [vmem:[#allocation4 + $0x134] ss:$24 sps:$4 sm:$0xff]   ;;  %v5694_v12 = vld [vmem:[#allocation6] sm:$0xff]  }
 0x666   :  { %1619 = vmatpush1.bf16.msra.mxu0 %v5675_v62  ;;  %v5696_v14 = vld [vmem:[#allocation6 + $0x8] sm:$0xff]   ;;  %v5697_v15 = vld [vmem:[#allocation6 + $0x50] sm:$0xff]   ;;  %v5699_v18 = vld [vmem:[#allocation6 + $0x58] sm:$0xff]   ;;  %v1527_v62 = vrot.slane %v1522_v37, %v6434_v20 }
 0x667   :  { %v1309_v29 = vadd.f32 %v1305_v8, %v1301_v25  ;;  %v1302_v30 = vadd.f32 %v1298_v13, %v1294_v26  ;;  %1620 = vmatprep.subr.bf16.mxu0 %v5680_v63  ;;  %v5690_v8 = vld [vmem:[#allocation4 + $0x160] ss:$24 sps:$4 sm:$0xff]   ;;  %v5695_v13 = vld [vmem:[#allocation6 + $0x48] sm:$0xff]   ;;  %v5698_v16 = vld [vmem:[#allocation6 + $0x10] sm:$0xff]   ;;  %v1531_v63 = vrot.slane %v1522_v37, %v6437_v21 }
 0x668   :  { %v5701_v24 = vld [vmem:[#allocation6 + $0x60] sm:$0xff]   ;;  %v5703_v26 = vld [vmem:[#allocation6 + $0x68] sm:$0xff]  }
 0x669   :  { %v1310_v32 = vadd.f32 %v1306_v23, %v1302_v30  ;;  %v5700_v23 = vld [vmem:[#allocation6 + $0x18] sm:$0xff]   ;;  %v5702_v25 = vld [vmem:[#allocation6 + $0x20] sm:$0xff]  }
 0x66a   :  { %1621 = vmatpush1.bf16.msra.mxu0 %v5678_v1 }
 0x66b   :  { %v1312_v11 = vpack.c.bf16 %v1310_v32, %v1309_v29  ;;  %1622 = vmatprep.subr.bf16.mxu0 %v5683_v2 }
 0x66d   :  { %5397 = vmatmul.mubr.bf16.vlgmr.msra.gmra.mrb[24].mxu1 %v1312_v11 }
 0x66e   :  { %1623 = vmatpush1.bf16.msra.mxu0 %v5681_v3  ;;  %5087 = vmatpush3.bf16.msra.mxu1 %v5694_v12 }
 0x66f   :  { %1624 = vmatprep.subr.bf16.mxu0 %v5686_v4  ;;  %5088 = vmatprep.subr.bf16.mxu1 %v5695_v13 }
 0x672   :  { %1625 = vmatpush1.bf16.msra.mxu0 %v5684_v5  ;;  %5089 = vmatpush3.bf16.msra.mxu1 %v5696_v14 }
 0x673   :  { %1626 = vmatprep.subr.bf16.mxu0 %v5689_v6  ;;  %5090 = vmatprep.subr.bf16.mxu1 %v5697_v15 }
 0x676   :  { %1627 = vmatpush1.bf16.msra.mxu0 %v5687_v7  ;;  %5091 = vmatpush3.bf16.msra.mxu1 %v5698_v16 }
 0x677   :  { %1628 = vmatprep.subr.bf16.mxu0 %v5692_v9  ;;  %5092 = vmatprep.subr.bf16.mxu1 %v5699_v18 }
 0x67a   :  { %1629 = vmatpush1.bf16.msra.mxu0 %v5690_v8  ;;  %5093 = vmatpush3.bf16.msra.mxu1 %v5700_v23 }
 0x67b   :  { %5094 = vmatprep.subr.bf16.mxu1 %v5701_v24 }
 0x67e   :  { %5095 = vmatpush3.bf16.msra.mxu1 %v5702_v25 }
 0x67f   :  { %5096 = vmatprep.subr.bf16.mxu1 %v5703_v26 }
 0x740   :  { %v5398_v33 = vpop.f32.mrb[24].mxu1 }
 0x741   :  { %v1427_v36 = vadd.f32 %v5398_v33, %v4777_v17  ;;  %v1418_v27 = vpop.f32.mrb[25].mxu1 }
 0x742   :  { %v1419_v35 = vadd.f32 %v4777_v17, %v1418_v27  ;;  %v5399_v39 = vpop.f32.mrb[26].mxu1 }
 0x743   :  { %v1430_v40 = vadd.f32 %v5399_v39, %v4777_v17  ;;  %v1421_v41 = vpop.f32.mrb[27].mxu1  ;;  %v1435_v42 = vadd.f32 %v6417_v46, %v1427_v36 }
 0x744   :  { %v1422_v43 = vadd.f32 %v4777_v17, %v1421_v41  ;;  %v1433_v44 = vadd.f32 %v1419_v35, %v6419_v47 }
 0x745   :  { %v1436_v45 = vadd.f32 %v6421_v48, %v1430_v40 }
 0x746   :  { %1439 = vadd.xlane.f32.xlu0 %v1433_v44  ;;  %v1434_v49 = vadd.f32 %v1422_v43, %v6425_v50  ;;  %v4786_v43 = vld [vmem:[%s6905_s4 + $0x7] ss:$0 sm:$0xff] }
 0x748   :  { %1441 = vadd.xlane.f32.xlu1 %v1434_v49 }
 0x74a   :  { %1443 = vadd.xlane.f32.xlu0 %v1435_v42 }
 0x74e   :  { %1445 = vadd.xlane.f32.xlu0 %v1436_v45 }
 0x7d3   :  { %v1440_v46 = vpop.xlane.xlu0 %1439 }
 0x7d4   :  { %v1448_v19 = vmul.f32 0.0078125, %v1440_v46 }
 0x7d5   :  { %v1442_v55 = vpop.xlane.xlu1 %1441 }
 0x7d6   :  { %v6513_v47 = vsub.f32 %v1433_v44, %v1448_v19  ;;  %v1449_v48 = vmul.f32 0.0078125, %v1442_v55 }
 0x7d7   :  { %v1444_v56 = vpop.xlane.xlu0 %1443 }
 0x7d8   :  { %v6515_v57 = vsub.f32 %v1434_v49, %v1449_v48  ;;  %v1450_v50 = vmul.f32 0.0078125, %v1444_v56  ;;  %v1456_v22 = vmul.f32 %v6513_v47, %v6513_v47 }
 0x7da   :  { %v6519_v58 = vsub.f32 %v1435_v42, %v1450_v50  ;;  %1460 = vadd.xlane.f32.xlu1 %v1456_v22  ;;  %v1457_v28 = vmul.f32 %v6515_v57, %v6515_v57 }
 0x7db   :  { %v1446_v59 = vpop.xlane.xlu0 %1445 }
 0x7dc   :  { %v1451_v31 = vmul.f32 0.0078125, %v1446_v59  ;;  %1462 = vadd.xlane.f32.xlu0 %v1457_v28  ;;  %v1458_v60 = vmul.f32 %v6519_v58, %v6519_v58 }
 0x7de   :  { %v6525_v34 = vsub.f32 %v1436_v45, %v1451_v31  ;;  %1464 = vadd.xlane.f32.xlu1 %v1458_v60  ;;  %v5705_v31 = vld [vmem:[#allocation6 + $0x70] sm:$0xff]  }
 0x7df   :  { %v5706_v60 = vld [vmem:[#allocation6 + $0x30] sm:$0xff]  }
 0x7e0   :  { %v1459_v61 = vmul.f32 %v6525_v34, %v6525_v34 }
 0x7e2   :  { %1466 = vadd.xlane.f32.xlu0 %v1459_v61  ;;  %v5708_v61 = vld [vmem:[#allocation6 + $0x38] sm:$0xff]  }
 0x867   :  { %v1461_v29 = vpop.xlane.xlu1 %1460 }
 0x868   :  { %v1468_v30 = vmul.f32 0.0078125, %v1461_v29 }
 0x869   :  { %v1463_v32 = vpop.xlane.xlu0 %1462 }
 0x86a   :  { %v1472_v11 = vadd.f32 1e-05, %v1468_v30  ;;  %v1469_v17 = vmul.f32 0.0078125, %v1463_v32 }
 0x86b   :  { %v1465_v33 = vpop.xlane.xlu1 %1464 }
 0x86c   :  { %5901 = vrsqrt.f32 %v1472_v11  ;;  %v1473_v36 = vadd.f32 1e-05, %v1469_v17  ;;  %v1470_v27 = vmul.f32 0.0078125, %v1465_v33 }
 0x86e   :  { %5903 = vrsqrt.f32 %v1473_v36  ;;  %v1474_v35 = vadd.f32 1e-05, %v1470_v27 }
 0x86f   :  { %v1467_v39 = vpop.xlane.xlu0 %1466 }
 0x870   :  { %5905 = vrsqrt.f32 %v1474_v35  ;;  %v1471_v40 = vmul.f32 0.0078125, %v1467_v39  ;;  %v4804_v39 = vld [vmem:[%s6905_s4 + $0x6] ss:$0 sm:$0xff] }
 0x872   :  { %v1475_v41 = vadd.f32 1e-05, %v1471_v40 }
 0x874   :  { %5907 = vrsqrt.f32 %v1475_v41 }
 0x876   :  { %v5902_v42 = vpop.eup %5901 }
 0x877   :  { %v1480_v44 = vmul.f32 %v5902_v42, %v6513_v47 }
 0x878   :  { %v5904_v45 = vpop.eup %5903 }
 0x879   :  { %v1490_v49 = vmul.f32 %v4786_v43, %v1480_v44  ;;  %v1481_v51 = vmul.f32 %v5904_v45, %v6515_v57 }
 0x87a   :  { %v5906_v52 = vpop.eup %5905 }
 0x87b   :  { %v1491_v54 = vmul.f32 %v4786_v43, %v1481_v51  ;;  %v6537_v46 = vadd.f32 %v4787_v53, %v1490_v49  ;;  %v1482_v55 = vmul.f32 %v5906_v52, %v6519_v58  ;;  %v5704_v58 = vld [vmem:[#allocation6 + $0x28] sm:$0xff]  }
 0x87c   :  { %5097 = vmatpush3.bf16.msra.mxu1 %v5704_v58 }
 0x87d   :  { %v6539_v19 = vadd.f32 %v4787_v53, %v1491_v54  ;;  %v1492_v57 = vmul.f32 %v4786_v43, %v1482_v55  ;;  %5098 = vmatprep.subr.bf16.mxu1 %v5705_v31  ;;  %v5709_v31 = vld [vmem:[#allocation4 + $0x180] ss:$24 sps:$4 sm:$0xff]  }
 0x87e   :  { %v5908_v48 = vpop.eup %5907 }
 0x87f   :  { %v1504_v47 = vpack.c.bf16 %v6539_v19, %v6537_v46  ;;  %v1483_v56 = vmul.f32 %v5908_v48, %v6525_v34  ;;  %v6548_v28 = vadd.f32 %v4787_v53, %v1492_v57  ;;  %v5707_v34 = vld [vmem:[#allocation6 + $0x78] sm:$0xff]  }
 0x880   :  { %5099 = vmatpush3.bf16.msra.mxu1 %v5706_v60  ;;  %v5714_v60 = vld [vmem:[#allocation4 + $0x1b4] ss:$24 sps:$4 sm:$0xff]  }
 0x881   :  { %1647 = vmatmul.mubr.bf16.vlgmr.msra.gmra.mrb[24].mxu0 %v1504_v47  ;;  %v1493_v50 = vmul.f32 %v4786_v43, %v1483_v56  ;;  %5100 = vmatprep.subr.bf16.mxu1 %v5707_v34 }
 0x882   :  { %1656 = vmatprep.mubr.bf16.mxu0 %v6265_v0 }
 0x883   :  { %v6546_v22 = vadd.f32 %v4787_v53, %v1493_v50 }
 0x884   :  { %5101 = vmatpush3.bf16.msra.mxu1 %v5708_v61 }
 0x885   :  { %v1505_v59 = vpack.c.bf16 %v6546_v22, %v6548_v28 }
 0x889   :  { %1657 = vmatmul.mubr.bf16.gmra.mrb[28].mxu0 %v1505_v59 }
 0x88a   :  { %2146 = vmatprep.mubr.bf16.mxu0 %v6265_v0 }
 0x954   :  { %v1648_v1 = vpop.f32.mrb[24].mxu0 }
 0x955   :  { %v1649_v2 = vadd.f32 %v1648_v1, %v1527_v62  ;;  %v1650_v3 = vpop.f32.mrb[25].mxu0 }
 0x956   :  { %v1651_v4 = vadd.f32 %v1650_v3, %v1531_v63  ;;  %v1652_v5 = vpop.f32.mrb[26].mxu0 }
 0x957   :  { %v1653_v6 = vadd.f32 %v1652_v5, %v1527_v62  ;;  %v1654_v7 = vpop.f32.mrb[27].mxu0  ;;  %v1667_v9 = vmax.f32 %v1649_v2, 0.0 }
 0x958   :  { %v1655_v8 = vadd.f32 %v1654_v7, %v1531_v63  ;;  %v1668_v12 = vmax.f32 %v1651_v4, 0.0 }
 0x959   :  { %v1669_v10 = vmax.f32 %v1653_v6, 0.0 }
 0x95a   :  { %v1670_v13 = vmax.f32 %v1655_v8, 0.0 }
 0x95b   :  { %v1675_v14 = vpack.c.bf16 %v1669_v10, %v1667_v9  ;;  %v5717_v10 = vld [vmem:[#allocation4 + $0x1e4] ss:$24 sps:$4 sm:$0xff]  }
 0x95c   :  { %v1676_v15 = vpack.c.bf16 %v1670_v13, %v1668_v12  ;;  %v1658_v16 = vpop.f32.mrb[28].mxu0  ;;  %v5718_v12 = vld [vmem:[#allocation4 + $0x188] ss:$24 sps:$4 sm:$0xff]  }
 0x95d   :  { %v1659_v18 = vadd.f32 %v1658_v16, %v1527_v62  ;;  %v1660_v23 = vpop.f32.mrb[29].mxu0  ;;  %v5715_v13 = vld [vmem:[#allocation4 + $0x1e0] ss:$24 sps:$4 sm:$0xff]   ;;  %5400 = vmatprep.subr.bf16.mxu1 %v5718_v12  ;;  %v5719_v16 = vld [vmem:[#allocation4 + $0x210] ss:$24 sps:$4 sm:$0xff]  }
 0x95e   :  { %v1661_v24 = vadd.f32 %v1660_v23, %v1531_v63  ;;  %v1662_v25 = vpop.f32.mrb[30].mxu0  ;;  %1846 = vmatprep.mubr.bf16.mxu1 %v1676_v15  ;;  %v5722_v15 = vld [vmem:[#allocation4 + $0x1b8] ss:$24 sps:$4 sm:$0xff]   ;;  %v5726_v23 = vld [vmem:[#allocation4 + $0x1e8] ss:$24 sps:$4 sm:$0xff]  }
 0x95f   :  { %v1663_v26 = vadd.f32 %v1662_v25, %v1527_v62  ;;  %v1664_v29 = vpop.f32.mrb[31].mxu0  ;;  %1847 = vmatmul.mubr.bf16.vlgmr.msra.gmra.mrb[28].mxu1 %v1675_v14  ;;  %v1671_v32 = vmax.f32 %v1659_v18, 0.0  ;;  %v5721_v14 = vld [vmem:[#allocation4 + $0x214] ss:$24 sps:$4 sm:$0xff]   ;;  %v5725_v18 = vld [vmem:[#allocation4 + $0x244] ss:$24 sps:$4 sm:$0xff]  }
 0x960   :  { %v1665_v30 = vadd.f32 %v1664_v29, %v1531_v63  ;;  %v1672_v17 = vmax.f32 %v1661_v24, 0.0  ;;  %5401 = vmatpush3.bf16.msra.mxu1 %v5718_v12  ;;  %v5723_v24 = vld [vmem:[#allocation4 + $0x240] ss:$24 sps:$4 sm:$0xff]   ;;  %v5729_v25 = vld [vmem:[#allocation4 + $0x274] ss:$24 sps:$4 sm:$0xff]  }
 0x961   :  { %v1673_v11 = vmax.f32 %v1663_v26, 0.0  ;;  %5402 = vmatprep.subr.bf16.mxu1 %v5722_v15  ;;  %v5730_v26 = vld [vmem:[#allocation4 + $0x218] ss:$24 sps:$4 sm:$0xff]   ;;  %v5992_v12 = vld [vmem:[#allocation7 + $0xc8] sm:$0xff]  }
 0x962   :  { %v1674_v33 = vmax.f32 %v1665_v30, 0.0  ;;  %v5727_v29 = vld [vmem:[#allocation4 + $0x270] ss:$24 sps:$4 sm:$0xff]   ;;  %v5733_v30 = vld [vmem:[#allocation4 + $0x2a4] ss:$24 sps:$4 sm:$0xff]  }
 0x963   :  { %v1677_v36 = vpack.c.bf16 %v1673_v11, %v1671_v32  ;;  %v5734_v32 = vld [vmem:[#allocation4 + $0x248] ss:$24 sps:$4 sm:$0xff]  }
 0x964   :  { %v1678_v27 = vpack.c.bf16 %v1674_v33, %v1672_v17  ;;  %5403 = vmatpush3.bf16.msra.mxu1 %v5722_v15  ;;  %v5731_v11 = vld [vmem:[#allocation4 + $0x2a0] ss:$24 sps:$4 sm:$0xff]   ;;  %v5735_v17 = vld [vmem:[#allocation4 + $0x2d0] ss:$24 sps:$4 sm:$0xff]   ;;  %v5737_v33 = vld [vmem:[#allocation4 + $0x2d4] ss:$24 sps:$4 sm:$0xff]  }
 0x965   :  { %5404 = vmatprep.subr.bf16.mxu1 %v5726_v23  ;;  %v5995_v15 = vld [vmem:[#allocation7 + $0x60] sm:$0xff]  }
 0x966   :  { %1854 = vmatprep.mubr.bf16.mxu1 %v1678_v27  ;;  %v5739_v27 = vld [vmem:[#allocation4 + $0x2a8] ss:$24 sps:$4 sm:$0xff]  }
 0x967   :  { %1855 = vmatmul.mubr.bf16.gmra.mrb[32].mxu1 %v1677_v36  ;;  %v5738_v36 = vld [vmem:[#allocation4 + $0x278] ss:$24 sps:$4 sm:$0xff]  }
 0x968   :  { %5405 = vmatpush3.bf16.msra.mxu1 %v5726_v23  ;;  %v5998_v23 = vld [vmem:[#allocation7 + $0x90] sm:$0xff]  }
 0x969   :  { %5406 = vmatprep.subr.bf16.mxu1 %v5730_v26 }
 0x96c   :  { %5407 = vmatpush3.bf16.msra.mxu1 %v5730_v26  ;;  %v6001_v26 = vld [vmem:[#allocation7 + $0x28] sm:$0xff]  }
 0x96d   :  { %5408 = vmatprep.subr.bf16.mxu1 %v5734_v32 }
 0x970   :  { %5409 = vmatpush3.bf16.msra.mxu1 %v5734_v32  ;;  %v6004_v32 = vld [vmem:[#allocation7 + $0xe0] sm:$0xff]  }
 0x971   :  { %5410 = vmatprep.subr.bf16.mxu1 %v5738_v36 }
 0x974   :  { %5411 = vmatpush3.bf16.msra.mxu1 %v5738_v36  ;;  %v6008_v36 = vld [vmem:[#allocation7 + $0xe8] sm:$0xff]  }
 0x975   :  { %5412 = vmatprep.subr.bf16.mxu1 %v5739_v27 }
 0x978   :  { %5413 = vmatpush3.bf16.msra.mxu1 %v5739_v27  ;;  %v6009_v27 = vld [vmem:[#allocation7 + $0x38] sm:$0xff]  }
 0xa32   :  { %v5102_v35 = vpop.f32.mrb[28].mxu1 }
 0xa33   :  { %v5103_v40 = vpop.f32.mrb[29].mxu1 }
 0xa34   :  { %v5104_v41 = vadd.f32 %v5103_v40, %v5102_v35  ;;  %v5105_v42 = vpop.f32.mrb[30].mxu1  ;;  %v5983_v35 = vld [vmem:[#allocation7 + $0x40] sm:$0xff]  }
 0xa35   :  { %v5106_v43 = vpop.f32.mrb[31].mxu1  ;;  %v5984_v40 = vld [vmem:[#allocation7 + $0xc0] sm:$0xff]  }
 0xa36   :  { %v1849_v44 = vadd.f32 %v5104_v41, %v4804_v39  ;;  %v5107_v45 = vadd.f32 %v5106_v43, %v5105_v42 }
 0xa38   :  { %v1852_v49 = vadd.f32 %v5107_v45, %v4804_v39  ;;  %v1863_v51 = vadd.f32 %v1849_v44, %v6537_v46  ;;  %v5711_v46 = vld [vmem:[#allocation4 + $0x184] ss:$24 sps:$4 sm:$0xff]  }
 0xa39   :  { %2114 = vmatprep.subr.bf16.mxu0 %v5711_v46 }
 0xa3a   :  { %1869 = vadd.xlane.f32.xlu1 %v1863_v51  ;;  %v5108_v52 = vpop.f32.mrb[32].mxu1  ;;  %v1864_v53 = vadd.f32 %v1852_v49, %v6539_v19  ;;  %2115 = vmatpush1.bf16.msra.mxu0 %v5709_v31  ;;  %v5712_v19 = vld [vmem:[#allocation4 + $0x1b0] ss:$24 sps:$4 sm:$0xff]  }
 0xa3b   :  { %v5109_v54 = vpop.f32.mrb[33].mxu1  ;;  %2116 = vmatprep.subr.bf16.mxu0 %v5714_v60  ;;  %v4822_v31 = vld [vmem:[%s6905_s4 + $0xa] ss:$0 sm:$0xff] }
 0xa3c   :  { %v5110_v55 = vadd.f32 %v5109_v54, %v5108_v52  ;;  %1871 = vadd.xlane.f32.xlu0 %v1864_v53  ;;  %v5111_v48 = vpop.f32.mrb[34].mxu1 }
 0xa3d   :  { %v5112_v47 = vpop.f32.mrb[35].mxu1 }
 0xa3e   :  { %v1857_v56 = vadd.f32 %v5110_v55, %v4804_v39  ;;  %v5113_v57 = vadd.f32 %v5112_v47, %v5111_v48  ;;  %2117 = vmatpush1.bf16.msra.mxu0 %v5712_v19 }
 0xa3f   :  { %2118 = vmatprep.subr.bf16.mxu0 %v5717_v10  ;;  %v5991_v10 = vld [vmem:[#allocation7 + $0x58] sm:$0xff]  }
 0xa40   :  { %v1860_v50 = vadd.f32 %v5113_v57, %v4804_v39  ;;  %v1865_v59 = vadd.f32 %v1857_v56, %v6548_v28  ;;  %v5740_v39 = vld [vmem:[#allocation4 + $0x2d8] ss:$24 sps:$4 sm:$0xff]   ;;  %v4821_v56 = vld [vmem:[%s6905_s4 + $0x9] ss:$0 sm:$0xff] }
 0xa41   :  { %5414 = vmatprep.subr.bf16.mxu1 %v5740_v39 }
 0xa42   :  { %1873 = vadd.xlane.f32.xlu1 %v1865_v59  ;;  %v1866_v58 = vadd.f32 %v1860_v50, %v6546_v22  ;;  %2119 = vmatpush1.bf16.msra.mxu0 %v5715_v13  ;;  %v5993_v13 = vld [vmem:[#allocation7 + $0x18] sm:$0xff]  }
 0xa43   :  { %2120 = vmatprep.subr.bf16.mxu0 %v5721_v14  ;;  %5415 = vmatpush3.bf16.msra.mxu1 %v5740_v39  ;;  %v5994_v14 = vld [vmem:[#allocation7 + $0x88] sm:$0xff]   ;;  %v6011_v39 = vld [vmem:[#allocation7 + $0xf0] sm:$0xff]  }
 0xa44   :  { %1875 = vadd.xlane.f32.xlu0 %v1866_v58  ;;  %5152 = vmatprep.subr.bf16.mxu1 %v5984_v40  ;;  %v6012_v40 = vld [vmem:[#allocation9 + $0x4] ss:$16 sps:$4 sm:$0xff]  }
 0xa46   :  { %2121 = vmatpush1.bf16.msra.mxu0 %v5719_v16  ;;  %v5996_v16 = vld [vmem:[#allocation7 + $0xd0] sm:$0xff]  }
 0xa47   :  { %2122 = vmatprep.subr.bf16.mxu0 %v5725_v18  ;;  %v5997_v18 = vld [vmem:[#allocation7 + $0x20] sm:$0xff]  }
 0xa4a   :  { %2123 = vmatpush1.bf16.msra.mxu0 %v5723_v24  ;;  %v5999_v24 = vld [vmem:[#allocation7 + $0x68] sm:$0xff]  }
 0xa4b   :  { %2124 = vmatprep.subr.bf16.mxu0 %v5729_v25  ;;  %v6000_v25 = vld [vmem:[#allocation7 + $0xd8] sm:$0xff]  }
 0xa4e   :  { %2125 = vmatpush1.bf16.msra.mxu0 %v5727_v29  ;;  %v6002_v29 = vld [vmem:[#allocation7 + $0x98] sm:$0xff]  }
 0xa4f   :  { %2126 = vmatprep.subr.bf16.mxu0 %v5733_v30  ;;  %v6003_v30 = vld [vmem:[#allocation7 + $0x70] sm:$0xff]  }
 0xa52   :  { %2127 = vmatpush1.bf16.msra.mxu0 %v5731_v11  ;;  %v6005_v11 = vld [vmem:[#allocation7 + $0x30] sm:$0xff]  }
 0xa53   :  { %2128 = vmatprep.subr.bf16.mxu0 %v5737_v33  ;;  %v6007_v33 = vld [vmem:[#allocation7 + $0x78] sm:$0xff]  }
 0xa56   :  { %2129 = vmatpush1.bf16.msra.mxu0 %v5735_v17  ;;  %v6006_v17 = vld [vmem:[#allocation7 + $0xa0] sm:$0xff]  }
 0xa57   :  { %5124 = vmatprep.subr.bf16.mxu0 %v5983_v35  ;;  %v6010_v35 = vld [vmem:[#allocation7 + $0xa8] sm:$0xff]  }
 0xac7   :  { %v1870_v34 = vpop.xlane.xlu1 %1869 }
 0xac8   :  { %v1877_v61 = vmul.f32 0.0078125, %v1870_v34 }
 0xac9   :  { %v1872_v37 = vpop.xlane.xlu0 %1871 }
 0xaca   :  { %v6565_v62 = vsub.f32 %v1863_v51, %v1877_v61  ;;  %v1878_v63 = vmul.f32 0.0078125, %v1872_v37 }
 0xacc   :  { %v6567_v1 = vsub.f32 %v1864_v53, %v1878_v63  ;;  %v1885_v22 = vmul.f32 %v6565_v62, %v6565_v62 }
 0xace   :  { %1889 = vadd.xlane.f32.xlu1 %v1885_v22  ;;  %v1886_v28 = vmul.f32 %v6567_v1, %v6567_v1  ;;  %v5985_v22 = vld [vmem:[#allocation7] sm:$0xff]  }
 0xacf   :  { %v1874_v2 = vpop.xlane.xlu1 %1873 }
 0xad0   :  { %v1879_v3 = vmul.f32 0.0078125, %v1874_v2  ;;  %1891 = vadd.xlane.f32.xlu0 %v1886_v28  ;;  %v5986_v2 = vld [vmem:[#allocation7 + $0x48] sm:$0xff]  }
 0xad1   :  { %v1876_v4 = vpop.xlane.xlu0 %1875 }
 0xad2   :  { %v6573_v5 = vsub.f32 %v1865_v59, %v1879_v3  ;;  %v1880_v6 = vmul.f32 0.0078125, %v1876_v4 }
 0xad4   :  { %v6575_v7 = vsub.f32 %v1866_v58, %v1880_v6  ;;  %v1887_v8 = vmul.f32 %v6573_v5, %v6573_v5  ;;  %v5987_v6 = vld [vmem:[#allocation7 + $0x8] sm:$0xff]  }
 0xad6   :  { %1893 = vadd.xlane.f32.xlu1 %v1887_v8  ;;  %v1888_v9 = vmul.f32 %v6575_v7, %v6575_v7  ;;  %v5988_v8 = vld [vmem:[#allocation7 + $0x50] sm:$0xff]  }
 0xad8   :  { %1895 = vadd.xlane.f32.xlu0 %v1888_v9  ;;  %v5990_v9 = vld [vmem:[#allocation7 + $0x80] sm:$0xff]  }
 0xb5b   :  { %v1890_v41 = vpop.xlane.xlu1 %1889 }
 0xb5c   :  { %v1897_v42 = vmul.f32 0.0078125, %v1890_v41  ;;  %v6013_v41 = vld [vmem:[#allocation7 + $0xb0] sm:$0xff]  }
 0xb5d   :  { %v1892_v43 = vpop.xlane.xlu0 %1891 }
 0xb5e   :  { %v1901_v44 = vadd.f32 1e-05, %v1897_v42  ;;  %v1898_v45 = vmul.f32 0.0078125, %v1892_v43  ;;  %v6014_v42 = vld [vmem:[#allocation7 + $0xf8] sm:$0xff]  }
 0xb5f   :  { %v6015_v43 = vld [vmem:[#allocation7 + $0xb8] sm:$0xff]  }
 0xb60   :  { %5909 = vrsqrt.f32 %v1901_v44  ;;  %v1902_v49 = vadd.f32 1e-05, %v1898_v45  ;;  %v6016_v44 = vld [vmem:[#allocation9 + $0xc] ss:$16 sps:$4 sm:$0xff]  }
 0xb61   :  { %v6607_v45 = vld [vmem:[%s6905_s4 + $0xb] sm:$0x7] }
 0xb62   :  { %5911 = vrsqrt.f32 %v1902_v49  ;;  %v1974_v49 = vrot.slane %v6607_v45, %v6434_v20 }
 0xb63   :  { %v1894_v51 = vpop.xlane.xlu1 %1893 }
 0xb64   :  { %v1899_v52 = vmul.f32 0.0078125, %v1894_v51  ;;  %v1978_v51 = vrot.slane %v6607_v45, %v6437_v21 }
 0xb65   :  { %v1896_v53 = vpop.xlane.xlu0 %1895 }
 0xb66   :  { %v1903_v54 = vadd.f32 1e-05, %v1899_v52  ;;  %v1900_v55 = vmul.f32 0.0078125, %v1896_v53 }
 0xb68   :  { %5913 = vrsqrt.f32 %v1903_v54  ;;  %v1904_v48 = vadd.f32 1e-05, %v1900_v55 }
 0xb6a   :  { %v5910_v47 = vpop.eup %5909  ;;  %5915 = vrsqrt.f32 %v1904_v48 }
 0xb6b   :  { %v1909_v57 = vmul.f32 %v5910_v47, %v6565_v62 }
 0xb6c   :  { %v5912_v50 = vpop.eup %5911 }
 0xb6d   :  { %v1919_v59 = vmul.f32 %v4821_v56, %v1909_v57  ;;  %v1910_v58 = vmul.f32 %v5912_v50, %v6567_v1 }
 0xb6f   :  { %v1920_v46 = vmul.f32 %v4821_v56, %v1910_v58  ;;  %v6589_v60 = vadd.f32 %v4822_v31, %v1919_v59 }
 0xb71   :  { %v6591_v19 = vadd.f32 %v4822_v31, %v1920_v46 }
 0xb72   :  { %v5914_v34 = vpop.eup %5913 }
 0xb73   :  { %v1933_v61 = vpack.c.bf16 %v6591_v19, %v6589_v60  ;;  %v1911_v37 = vmul.f32 %v5914_v34, %v6573_v5 }
 0xb74   :  { %v5916_v62 = vpop.eup %5915 }
 0xb75   :  { %2147 = vmatmul.mubr.bf16.vlgmr.msra.gmra.mrb[32].mxu0 %v1933_v61  ;;  %5416 = vmatprep.mubr.bf16.mxu1 %v1933_v61  ;;  %v1912_v63 = vmul.f32 %v5916_v62, %v6575_v7  ;;  %v1921_v1 = vmul.f32 %v4821_v56, %v1911_v37  ;;  %v5989_v7 = vld [vmem:[#allocation7 + $0x10] sm:$0xff]  }
 0xb76   :  { %2156 = vmatprep.mubr.bf16.mxu0 %v6265_v0  ;;  %5125 = vmatpush3.bf16.msra.mxu0 %v5985_v22 }
 0xb77   :  { %v1922_v28 = vmul.f32 %v4821_v56, %v1912_v63  ;;  %5126 = vmatprep.subr.bf16.mxu0 %v5986_v2  ;;  %v6598_v3 = vadd.f32 %v4822_v31, %v1921_v1 }
 0xb79   :  { %v6600_v4 = vadd.f32 %v4822_v31, %v1922_v28 }
 0xb7a   :  { %5127 = vmatpush3.bf16.msra.mxu0 %v5987_v6 }
 0xb7b   :  { %v1934_v5 = vpack.c.bf16 %v6600_v4, %v6598_v3  ;;  %5128 = vmatprep.subr.bf16.mxu0 %v5988_v8 }
 0xb7d   :  { %2157 = vmatmul.mubr.bf16.gmra.mrb[36].mxu0 %v1934_v5  ;;  %5417 = vmatmul.mubr.bf16.vlgmr.msra.gmra.mrb[36].mxu1 %v1934_v5 }
 0xb7e   :  { %5129 = vmatpush3.bf16.msra.mxu0 %v5989_v7  ;;  %5153 = vmatpush3.bf16.msra.mxu1 %v5990_v9 }
 0xb7f   :  { %5130 = vmatprep.subr.bf16.mxu0 %v5991_v10  ;;  %5154 = vmatprep.subr.bf16.mxu1 %v5992_v12 }
 0xb82   :  { %5131 = vmatpush3.bf16.msra.mxu0 %v5993_v13  ;;  %5155 = vmatpush3.bf16.msra.mxu1 %v5994_v14  ;;  %v6017_v14 = vld [vmem:[#allocation9] ss:$16 sps:$4 sm:$0xff]  }
 0xb83   :  { %5132 = vmatprep.subr.bf16.mxu0 %v5995_v15  ;;  %5156 = vmatprep.subr.bf16.mxu1 %v5996_v16 }
 0xb86   :  { %5133 = vmatpush3.bf16.msra.mxu0 %v5997_v18  ;;  %5157 = vmatpush3.bf16.msra.mxu1 %v5998_v23 }
 0xb87   :  { %5134 = vmatprep.subr.bf16.mxu0 %v5999_v24  ;;  %5158 = vmatprep.subr.bf16.mxu1 %v6000_v25  ;;  %v6018_v24 = vld [vmem:[#allocation9 + $0x24] ss:$16 sps:$4 sm:$0xff]  }
 0xb8a   :  { %5135 = vmatpush3.bf16.msra.mxu0 %v6001_v26  ;;  %5159 = vmatpush3.bf16.msra.mxu1 %v6002_v29 }
 0xb8b   :  { %5136 = vmatprep.subr.bf16.mxu0 %v6003_v30  ;;  %5160 = vmatprep.subr.bf16.mxu1 %v6004_v32 }
 0xb8e   :  { %5137 = vmatpush3.bf16.msra.mxu0 %v6005_v11  ;;  %5161 = vmatpush3.bf16.msra.mxu1 %v6006_v17 }
 0xb8f   :  { %5138 = vmatprep.subr.bf16.mxu0 %v6007_v33  ;;  %5162 = vmatprep.subr.bf16.mxu1 %v6008_v36 }
 0xb92   :  { %5139 = vmatpush3.bf16.msra.mxu0 %v6009_v27  ;;  %5163 = vmatpush3.bf16.msra.mxu1 %v6010_v35  ;;  %v6019_v27 = vld [vmem:[#allocation9 + $0x20] ss:$16 sps:$4 sm:$0xff]  }
 0xb93   :  { %5164 = vmatprep.subr.bf16.mxu1 %v6011_v39  ;;  %2408 = vmatprep.subr.bf16.mxu0 %v6012_v40  ;;  %v6020_v39 = vld [vmem:[#allocation9 + $0x44] ss:$16 sps:$4 sm:$0xff]   ;;  %v6021_v40 = vld [vmem:[#allocation9 + $0x8] ss:$16 sps:$4 sm:$0xff]  }
 0xb96   :  { %5165 = vmatpush3.bf16.msra.mxu1 %v6013_v41  ;;  %v6022_v41 = vld [vmem:[#allocation9 + $0x2c] ss:$16 sps:$4 sm:$0xff]  }
 0xb97   :  { %5166 = vmatprep.subr.bf16.mxu1 %v6014_v42  ;;  %v6023_v42 = vld [vmem:[#allocation9 + $0x40] ss:$16 sps:$4 sm:$0xff]  }
 0xb9a   :  { %5167 = vmatpush3.bf16.msra.mxu1 %v6015_v43  ;;  %v6024_v43 = vld [vmem:[#allocation9 + $0x64] ss:$16 sps:$4 sm:$0xff]  }
 0xb9b   :  { %2461 = vmatprep.subr.bf16.mxu1 %v6016_v44  ;;  %v6025_v44 = vld [vmem:[#allocation9 + $0x28] ss:$16 sps:$4 sm:$0xff]  }
 0xc48   :  { %v2148_v52 = vpop.f32.mrb[32].mxu0 }
 0xc49   :  { %v2149_v53 = vadd.f32 %v2148_v52, %v1974_v49  ;;  %v2150_v54 = vpop.f32.mrb[33].mxu0  ;;  %v6028_v52 = vld [vmem:[#allocation9 + $0x84] ss:$16 sps:$4 sm:$0xff]  }
 0xc4a   :  { %v2151_v55 = vadd.f32 %v2150_v54, %v1978_v51  ;;  %v2152_v48 = vpop.f32.mrb[34].mxu0  ;;  %v6030_v54 = vld [vmem:[#allocation9 + $0x6c] ss:$16 sps:$4 sm:$0xff]  }
 0xc4b   :  { %v2153_v47 = vadd.f32 %v2152_v48, %v1974_v49  ;;  %v2154_v56 = vpop.f32.mrb[35].mxu0  ;;  %v6032_v48 = vld [vmem:[#allocation9 + $0xa4] ss:$16 sps:$4 sm:$0xff]  }
 0xc4c   :  { %v2216_v57 = vmul.f32 %v2151_v55, %v2149_v53  ;;  %v2155_v50 = vadd.f32 %v2154_v56, %v1978_v51  ;;  %v6034_v56 = vld [vmem:[#allocation9 + $0x8c] ss:$16 sps:$4 sm:$0xff]  }
 0xc4d   :  { %v2217_v59 = vmul.f32 %v2153_v47, %v2151_v55 }
 0xc4e   :  { %v2222_v58 = vmul.f32 %v2155_v50, %v2149_v53  ;;  %v2223_v31 = vmul.f32 %v2155_v50, %v2153_v47 }
 0xc4f   :  { %v2220_v46 = vpack.c.bf16 %v2217_v59, %v2216_v57  ;;  %v6035_v57 = vld [vmem:[#allocation9 + $0xa0] ss:$16 sps:$4 sm:$0xff]   ;;  %v6037_v59 = vld [vmem:[#allocation9 + $0x88] ss:$16 sps:$4 sm:$0xff]  }
 0xc50   :  { %v2158_v34 = vpop.f32.mrb[36].mxu0  ;;  %v6613_v61 = vpop.f32.mrb[36].mxu1  ;;  %v2226_v37 = vpack.c.bf16 %v2223_v31, %v2222_v58  ;;  %v6038_v58 = vld [vmem:[#allocation9 + $0xac] ss:$16 sps:$4 sm:$0xff]   ;;  %v6039_v31 = vld [vmem:[#allocation9 + $0xc0] ss:$16 sps:$4 sm:$0xff]  }
 0xc51   :  { %v2159_v62 = vadd.f32 %v2158_v34, %v1974_v49  ;;  %v2160_v63 = vpop.f32.mrb[37].mxu0  ;;  %v6615_v1 = vpop.f32.mrb[37].mxu1  ;;  %v6041_v34 = vld [vmem:[#allocation9 + $0xa8] ss:$16 sps:$4 sm:$0xff]  }
 0xc52   :  { %v2161_v22 = vadd.f32 %v2160_v63, %v1978_v51  ;;  %v2162_v28 = vpop.f32.mrb[38].mxu0  ;;  %v6617_v2 = vpop.f32.mrb[38].mxu1  ;;  %2272 = vmatprep.mubr.bf16.mxu0 %v2226_v37  ;;  %v6042_v37 = vld [vmem:[#allocation9 + $0xcc] ss:$16 sps:$4 sm:$0xff]   ;;  %v6044_v63 = vld [vmem:[#allocation9 + $0xc8] ss:$16 sps:$4 sm:$0xff]  }
 0xc53   :  { %v2163_v6 = vadd.f32 %v2162_v28, %v1974_v49  ;;  %v2164_v5 = vpop.f32.mrb[39].mxu0  ;;  %v6619_v8 = vpop.f32.mrb[39].mxu1  ;;  %2273 = vmatmul.mubr.bf16.vlgmr.msra.gmra.mrb[40].mxu0 %v2220_v46  ;;  %v2224_v7 = vmul.f32 %v2159_v62, %v2155_v50  ;;  %v2218_v9 = vmul.f32 %v2159_v62, %v2151_v55  ;;  %v6026_v49 = vld [vmem:[#allocation9 + $0x4c] ss:$16 sps:$4 sm:$0xff]   ;;  %v6040_v46 = vld [vmem:[#allocation9 + $0xe4] ss:$16 sps:$4 sm:$0xff]  }
 0xc54   :  { %v2228_v10 = vmul.f32 %v2161_v22, %v2149_v53  ;;  %v2229_v12 = vmul.f32 %v2161_v22, %v2153_v47  ;;  %v2165_v13 = vadd.f32 %v2164_v5, %v1978_v51  ;;  %2409 = vmatpush1.bf16.msra.mxu0 %v6017_v14  ;;  %v2230_v18 = vmul.f32 %v2161_v22, %v2159_v62  ;;  %v6027_v51 = vld [vmem:[#allocation9 + $0x60] ss:$16 sps:$4 sm:$0xff]   ;;  %v6046_v28 = vld [vmem:[#allocation9 + $0xe8] ss:$16 sps:$4 sm:$0xff]  }
 0xc55   :  { %v2225_v15 = vmul.f32 %v2163_v6, %v2155_v50  ;;  %v2219_v16 = vmul.f32 %v2163_v6, %v2151_v55  ;;  %v2231_v23 = vmul.f32 %v2163_v6, %v2161_v22  ;;  %2410 = vmatprep.subr.bf16.mxu0 %v6018_v24  ;;  %v6031_v55 = vld [vmem:[#allocation9 + $0x80] ss:$16 sps:$4 sm:$0xff]   ;;  %v6036_v50 = vld [vmem:[#allocation9 + $0xc4] ss:$16 sps:$4 sm:$0xff]   ;;  %v6045_v22 = vld [vmem:[#allocation9 + $0xec] ss:$16 sps:$4 sm:$0xff]  }
 0xc56   :  { %v2234_v25 = vmul.f32 %v2165_v13, %v2149_v53  ;;  %v2235_v26 = vmul.f32 %v2165_v13, %v2153_v47  ;;  %v2232_v29 = vpack.c.bf16 %v2229_v12, %v2228_v10  ;;  %v2236_v30 = vmul.f32 %v2165_v13, %v2159_v62  ;;  %v6029_v53 = vld [vmem:[#allocation9 + $0x48] ss:$16 sps:$4 sm:$0xff]   ;;  %v6043_v62 = vld [vmem:[#allocation9 + $0xe0] ss:$16 sps:$4 sm:$0xff]  }
 0xc57   :  { %v2227_v32 = vpack.c.bf16 %v2225_v15, %v2224_v7  ;;  %v2221_v11 = vpack.c.bf16 %v2219_v16, %v2218_v9  ;;  %v2237_v17 = vmul.f32 %v2165_v13, %v2163_v6  ;;  %v2233_v33 = vpack.c.bf16 %v2231_v23, %v2230_v18  ;;  %v6033_v47 = vld [vmem:[#allocation9 + $0x68] ss:$16 sps:$4 sm:$0xff]  }
 0xc58   :  { %v2238_v36 = vpack.c.bf16 %v2235_v26, %v2234_v25  ;;  %2411 = vmatpush1.bf16.msra.mxu0 %v6019_v27 }
 0xc59   :  { %2280 = vmatprep.mubr.bf16.mxu0 %v2227_v32  ;;  %v2239_v35 = vpack.c.bf16 %v2237_v17, %v2236_v30  ;;  %2412 = vmatprep.subr.bf16.mxu0 %v6020_v39 }
 0xc5a   :  { %2321 = vmatprep.mubr.bf16.mxu1 %v2238_v36 }
 0xc5b   :  { %2281 = vmatmul.mubr.bf16.gmra.mrb[44].mxu0 %v2221_v11  ;;  %2322 = vmatmul.mubr.bf16.vlgmr.msra.gmra.mrb[40].mxu1 %v2232_v29 }
 0xc5c   :  { %2329 = vmatprep.mubr.bf16.mxu1 %v2239_v35  ;;  %2462 = vmatpush1.bf16.msra.mxu1 %v6021_v40 }
 0xc5d   :  { %2463 = vmatprep.subr.bf16.mxu1 %v6022_v41  ;;  %2413 = vmatpush1.bf16.msra.mxu0 %v6023_v42 }
 0xc5e   :  { %2414 = vmatprep.subr.bf16.mxu0 %v6024_v43  ;;  %2440 = vmatprep.mubr.bf16.mxu0 %v6265_v0 }
 0xc60   :  { %2464 = vmatpush1.bf16.msra.mxu1 %v6025_v44 }
 0xc61   :  { %2465 = vmatprep.subr.bf16.mxu1 %v6026_v49  ;;  %2415 = vmatpush1.bf16.msra.mxu0 %v6027_v51 }
 0xc62   :  { %2416 = vmatprep.subr.bf16.mxu0 %v6028_v52 }
 0xc63   :  { %2330 = vmatmul.mubr.bf16.gmra.mrb[44].mxu1 %v2233_v33 }
 0xc64   :  { %2466 = vmatpush1.bf16.msra.mxu1 %v6029_v53  ;;  %2493 = vmatprep.mubr.bf16.mxu1 %v6265_v0 }
 0xc65   :  { %2467 = vmatprep.subr.bf16.mxu1 %v6030_v54  ;;  %2417 = vmatpush1.bf16.msra.mxu0 %v6031_v55 }
 0xc66   :  { %2418 = vmatprep.subr.bf16.mxu0 %v6032_v48 }
 0xc68   :  { %2468 = vmatpush1.bf16.msra.mxu1 %v6033_v47 }
 0xc69   :  { %2469 = vmatprep.subr.bf16.mxu1 %v6034_v56  ;;  %2419 = vmatpush1.bf16.msra.mxu0 %v6035_v57 }
 0xc6a   :  { %2420 = vmatprep.subr.bf16.mxu0 %v6036_v50 }
 0xc6c   :  { %2470 = vmatpush1.bf16.msra.mxu1 %v6037_v59 }
 0xc6d   :  { %2471 = vmatprep.subr.bf16.mxu1 %v6038_v58  ;;  %2421 = vmatpush1.bf16.msra.mxu0 %v6039_v31 }
 0xc6e   :  { %2422 = vmatprep.subr.bf16.mxu0 %v6040_v46 }
 0xc70   :  { %2472 = vmatpush1.bf16.msra.mxu1 %v6041_v34 }
 0xc71   :  { %2473 = vmatprep.subr.bf16.mxu1 %v6042_v37  ;;  %2423 = vmatpush1.bf16.msra.mxu0 %v6043_v62 }
 0xc74   :  { %2474 = vmatpush1.bf16.msra.mxu1 %v6044_v63 }
 0xc75   :  { %2475 = vmatprep.subr.bf16.mxu1 %v6045_v22 }
 0xc78   :  { %2476 = vmatpush1.bf16.msra.mxu1 %v6046_v28 }
 0xd26   :  { %v5140_v6 = vpop.f32.mrb[40].mxu0 }
 0xd27   :  { %v5141_v5 = vpop.f32.mrb[41].mxu0 }
 0xd28   :  { %v5142_v7 = vadd.f32 %v5141_v5, %v5140_v6  ;;  %v5143_v9 = vpop.f32.mrb[42].mxu0 }
 0xd29   :  { %v5144_v10 = vpop.f32.mrb[43].mxu0 }
 0xd2a   :  { %v5145_v12 = vadd.f32 %v5144_v10, %v5143_v9 }
 0xd2e   :  { %v5146_v13 = vpop.f32.mrb[44].mxu0  ;;  %v5168_v14 = vpop.f32.mrb[40].mxu1 }
 0xd2f   :  { %v5147_v15 = vpop.f32.mrb[45].mxu0  ;;  %v5169_v16 = vpop.f32.mrb[41].mxu1 }
 0xd30   :  { %v5148_v18 = vadd.f32 %v5147_v15, %v5146_v13  ;;  %v5170_v23 = vadd.f32 %v5169_v16, %v5168_v14  ;;  %v5149_v24 = vpop.f32.mrb[46].mxu0  ;;  %v5171_v25 = vpop.f32.mrb[42].mxu1 }
 0xd31   :  { %v5150_v26 = vpop.f32.mrb[47].mxu0  ;;  %v5172_v29 = vpop.f32.mrb[43].mxu1 }
 0xd32   :  { %v2324_v30 = vadd.f32 %v5170_v23, %v5142_v7  ;;  %v5151_v32 = vadd.f32 %v5150_v26, %v5149_v24  ;;  %v5173_v11 = vadd.f32 %v5172_v29, %v5171_v25  ;;  %v5741_v25 = vld [vmem:[#allocation4 + $0x18c] ss:$24 sps:$4 sm:$0xff]  }
 0xd33   :  { %5420 = vmatprep.subr.bf16.mxu0 %v5741_v25 }
 0xd34   :  { %v2327_v17 = vadd.f32 %v5173_v11, %v5145_v12  ;;  %2338 = vrot.lane.b32.xlu1 %v2324_v30, %s6256_s10 }
 0xd36   :  { %2340 = vrot.lane.b32.xlu0 %v2327_v17, %s6256_s10  ;;  %v5174_v33 = vpop.f32.mrb[44].mxu1 }
 0xd37   :  { %v5175_v36 = vpop.f32.mrb[45].mxu1 }
 0xd38   :  { %v5176_v27 = vadd.f32 %v5175_v36, %v5174_v33  ;;  %v5177_v35 = vpop.f32.mrb[46].mxu1 }
 0xd39   :  { %v5178_v39 = vpop.f32.mrb[47].mxu1 }
 0xd3a   :  { %v2332_v40 = vadd.f32 %v5176_v27, %v5148_v18  ;;  %v5179_v41 = vadd.f32 %v5178_v39, %v5177_v35 }
 0xd3c   :  { %v2335_v42 = vadd.f32 %v5179_v41, %v5151_v32  ;;  %2342 = vrot.lane.b32.xlu1 %v2332_v40, %s6256_s10 }
 0xd40   :  { %2344 = vrot.lane.b32.xlu1 %v2335_v42, %s6256_s10 }
 0xda6   :  { %v2339_v43 = vpop.permute.xlu1 %2338 }
 0xda7   :  { %v2346_v44 = vmax.f32 %v2324_v30, %v2339_v43 }
 0xda8   :  { %v2341_v49 = vpop.permute.xlu0 %2340 }
 0xda9   :  { %v2347_v51 = vmax.f32 %v2327_v17, %v2341_v49  ;;  %2350 = vrot.lane.b32.xlu0 %v2346_v44, %s6267_s14 }
 0xdab   :  { %2352 = vrot.lane.b32.xlu1 %v2347_v51, %s6267_s14 }
 0xdae   :  { %v2343_v52 = vpop.permute.xlu1 %2342 }
 0xdaf   :  { %v2348_v53 = vmax.f32 %v2332_v40, %v2343_v52 }
 0xdb1   :  { %2354 = vrot.lane.b32.xlu0 %v2348_v53, %s6267_s14 }
 0xdb2   :  { %v2345_v54 = vpop.permute.xlu1 %2344 }
 0xdb3   :  { %v2349_v55 = vmax.f32 %v2335_v42, %v2345_v54  ;;  %v5744_v54 = vld [vmem:[#allocation4 + $0x21c] ss:$24 sps:$4 sm:$0xff]  }
 0xdb5   :  { %2356 = vrot.lane.b32.xlu1 %v2349_v55, %s6267_s14 }
 0xe1b   :  { %v2351_v48 = vpop.permute.xlu0 %2350 }
 0xe1c   :  { %v2358_v47 = vmax.f32 %v2346_v44, %v2351_v48  ;;  %v5746_v48 = vld [vmem:[#allocation4 + $0x27c] ss:$24 sps:$4 sm:$0xff]  }
 0xe1d   :  { %v2353_v56 = vpop.permute.xlu1 %2352 }
 0xe1e   :  { %v2362_v57 = vsub.f32 %v2324_v30, %v2358_v47  ;;  %v2359_v50 = vmax.f32 %v2347_v51, %v2353_v56  ;;  %v5747_v47 = vld [vmem:[#allocation4 + $0x2ac] ss:$24 sps:$4 sm:$0xff]   ;;  %v5748_v56 = vld [vmem:[#allocation4 + $0x2dc] ss:$24 sps:$4 sm:$0xff]  }
 0xe20   :  { %v2366_v59 = vmul.f32 1.442695, %v2362_v57  ;;  %v2363_v58 = vsub.f32 %v2327_v17, %v2359_v50  ;;  %v1982_v57 = vrot.slane %v6607_v45, %v6498_v38 }
 0xe22   :  { %5917 = vpow2.f32 %v2366_v59  ;;  %v2368_v31 = vmul.f32 1.442695, %v2363_v58  ;;  %v2210_v50 = vadd.f32 %v6613_v61, %v1982_v57  ;;  %v2202_v59 = vadd.f32 %v6615_v1, %v1982_v57 }
 0xe23   :  { %v2355_v46 = vpop.permute.xlu0 %2354  ;;  %v2213_v58 = vadd.f32 %v6617_v2, %v1982_v57 }
 0xe24   :  { %5919 = vpow2.f32 %v2368_v31  ;;  %v2360_v34 = vmax.f32 %v2348_v53, %v2355_v46  ;;  %v5743_v53 = vld [vmem:[#allocation4 + $0x1ec] ss:$24 sps:$4 sm:$0xff]   ;;  %v2205_v31 = vadd.f32 %v6619_v8, %v1982_v57 }
 0xe26   :  { %v2364_v37 = vsub.f32 %v2332_v40, %v2360_v34 }
 0xe27   :  { %v2357_v62 = vpop.permute.xlu1 %2356 }
 0xe28   :  { %v2370_v63 = vmul.f32 1.442695, %v2364_v37  ;;  %v2361_v22 = vmax.f32 %v2349_v55, %v2357_v62  ;;  %v5745_v55 = vld [vmem:[#allocation4 + $0x24c] ss:$24 sps:$4 sm:$0xff]  }
 0xe2a   :  { %5921 = vpow2.f32 %v2370_v63  ;;  %v2365_v28 = vsub.f32 %v2335_v42, %v2361_v22  ;;  %v5742_v42 = vld [vmem:[#allocation4 + $0x1bc] ss:$24 sps:$4 sm:$0xff]  }
 0xe2c   :  { %v5918_v6 = vpop.eup %5917  ;;  %v2372_v5 = vmul.f32 1.442695, %v2365_v28 }
 0xe2d   :  { %2374 = vrot.lane.b32.xlu0 %v5918_v6, %s6256_s10 }
 0xe2e   :  { %v5920_v7 = vpop.eup %5919  ;;  %5923 = vpow2.f32 %v2372_v5 }
 0xe2f   :  { %2376 = vrot.lane.b32.xlu1 %v5920_v7, %s6256_s10 }
 0xe34   :  { %v5922_v9 = vpop.eup %5921 }
 0xe35   :  { %2378 = vrot.lane.b32.xlu0 %v5922_v9, %s6256_s10 }
 0xe38   :  { %v5924_v10 = vpop.eup %5923 }
 0xe39   :  { %2380 = vrot.lane.b32.xlu1 %v5924_v10, %s6256_s10 }
 0xe9f   :  { %v2375_v12 = vpop.permute.xlu0 %2374 }
 0xea0   :  { %v2382_v13 = vadd.f32 %v5918_v6, %v2375_v12 }
 0xea1   :  { %v2377_v14 = vpop.permute.xlu1 %2376 }
 0xea2   :  { %v2383_v15 = vadd.f32 %v5920_v7, %v2377_v14  ;;  %2386 = vrot.lane.b32.xlu0 %v2382_v13, %s6267_s14 }
 0xea4   :  { %2388 = vrot.lane.b32.xlu1 %v2383_v15, %s6267_s14 }
 0xea7   :  { %v2379_v16 = vpop.permute.xlu0 %2378 }
 0xea8   :  { %v2384_v18 = vadd.f32 %v5922_v9, %v2379_v16 }
 0xeaa   :  { %2390 = vrot.lane.b32.xlu0 %v2384_v18, %s6267_s14 }
 0xeab   :  { %v2381_v23 = vpop.permute.xlu1 %2380 }
 0xeac   :  { %v2385_v24 = vadd.f32 %v5924_v10, %v2381_v23 }
 0xeae   :  { %2392 = vrot.lane.b32.xlu1 %v2385_v24, %s6267_s14 }
 0xf14   :  { %v2387_v26 = vpop.permute.xlu0 %2386 }
 0xf15   :  { %v2394_v29 = vadd.f32 %v2387_v26, %v2382_v13 }
 0xf16   :  { %v2389_v30 = vpop.permute.xlu1 %2388 }
 0xf17   :  { %5925 = vrcp.f32 %v2394_v29  ;;  %v2395_v32 = vadd.f32 %v2389_v30, %v2383_v15 }
 0xf19   :  { %5927 = vrcp.f32 %v2395_v32 }
 0xf1c   :  { %v2391_v11 = vpop.permute.xlu0 %2390 }
 0xf1d   :  { %v2396_v17 = vadd.f32 %v2391_v11, %v2384_v18 }
 0xf1f   :  { %5929 = vrcp.f32 %v2396_v17 }
 0xf20   :  { %v2393_v33 = vpop.permute.xlu1 %2392 }
 0xf21   :  { %v5926_v36 = vpop.eup %5925  ;;  %v2397_v27 = vadd.f32 %v2393_v33, %v2385_v24 }
 0xf22   :  { %v2402_v39 = vmul.f32 %v5926_v36, %v5918_v6 }
 0xf23   :  { %v5928_v35 = vpop.eup %5927  ;;  %5931 = vrcp.f32 %v2397_v27 }
 0xf24   :  { %v2403_v40 = vmul.f32 %v5928_v35, %v5920_v7 }
 0xf26   :  { %v2406_v41 = vpack.c.bf16 %v2403_v40, %v2402_v39 }
 0xf28   :  { %2441 = vmatmul.mubr.bf16.vlgmr.msra.gmra.mrb[48].mxu0 %v2406_v41  ;;  %2494 = vmatmul.mubr.bf16.vlgmr.msra.gmra.mrb[48].mxu1 %v2406_v41 }
 0xf29   :  { %2450 = vmatprep.mubr.bf16.mxu0 %v6265_v0  ;;  %2503 = vmatprep.mubr.bf16.mxu1 %v6265_v0  ;;  %v5930_v43 = vpop.eup %5929 }
 0xf2a   :  { %5421 = vmatpush3.bf16.msra.mxu0 %v5741_v25  ;;  %v2404_v49 = vmul.f32 %v5930_v43, %v5922_v9 }
 0xf2b   :  { %5422 = vmatprep.subr.bf16.mxu0 %v5742_v42 }
 0xf2d   :  { %v5932_v44 = vpop.eup %5931 }
 0xf2e   :  { %v2405_v51 = vmul.f32 %v5932_v44, %v5924_v10  ;;  %5423 = vmatpush3.bf16.msra.mxu0 %v5742_v42 }
 0xf2f   :  { %5424 = vmatprep.subr.bf16.mxu0 %v5743_v53 }
 0xf30   :  { %v2407_v52 = vpack.c.bf16 %v2405_v51, %v2404_v49 }
 0xf32   :  { %2451 = vmatmul.mubr.bf16.gmra.mrb[52].mxu0 %v2407_v52  ;;  %2504 = vmatmul.mubr.bf16.gmra.mrb[52].mxu1 %v2407_v52 }
 0xf33   :  { %2876 = vmatprep.mubr.bf16.mxu1 %v6265_v0  ;;  %5425 = vmatpush3.bf16.msra.mxu0 %v5743_v53 }
 0xf34   :  { %5426 = vmatprep.subr.bf16.mxu0 %v5744_v54 }
 0xf37   :  { %5427 = vmatpush3.bf16.msra.mxu0 %v5744_v54  ;;  %v4849_v54 = vld [vmem:[%s6905_s4 + $0xe] ss:$0 sm:$0xff] }
 0xf38   :  { %5428 = vmatprep.subr.bf16.mxu0 %v5745_v55 }
 0xf3b   :  { %5429 = vmatpush3.bf16.msra.mxu0 %v5745_v55 }
 0xf3c   :  { %5430 = vmatprep.subr.bf16.mxu0 %v5746_v48 }
 0xf3f   :  { %5431 = vmatpush3.bf16.msra.mxu0 %v5746_v48 }
 0xf40   :  { %5432 = vmatprep.subr.bf16.mxu0 %v5747_v47 }
 0xf43   :  { %5433 = vmatpush3.bf16.msra.mxu0 %v5747_v47 }
 0xf44   :  { %5434 = vmatprep.subr.bf16.mxu0 %v5748_v56 }
 0xf47   :  { %5435 = vmatpush3.bf16.msra.mxu0 %v5748_v56 }
 0xffb   :  { %v2442_v46 = vpop.f32.mrb[48].mxu0  ;;  %v2495_v34 = vpop.f32.mrb[48].mxu1 }
 0xffc   :  { %v2514_v37 = vmul.f32 %v2442_v46, %v2202_v59  ;;  %v2526_v62 = vmul.f32 %v2495_v34, %v2210_v50  ;;  %v2444_v63 = vpop.f32.mrb[49].mxu0  ;;  %v2497_v22 = vpop.f32.mrb[49].mxu1 }
 0xffd   :  { %v2518_v28 = vmul.f32 %v2444_v63, %v2205_v31  ;;  %v2534_v6 = vmul.f32 %v2497_v22, %v2213_v58  ;;  %v2446_v5 = vpop.f32.mrb[50].mxu0  ;;  %v2499_v7 = vpop.f32.mrb[50].mxu1  ;;  %v5751_v63 = vld [vmem:[#allocation4 + $0x194] ss:$24 sps:$4 sm:$0xff]   ;;  %v5754_v22 = vld [vmem:[#allocation4 + $0x1c4] ss:$24 sps:$4 sm:$0xff]  }
 0xffe   :  { %v2515_v9 = vmul.f32 %v2446_v5, %v2202_v59  ;;  %v2527_v45 = vmul.f32 %v2499_v7, %v2210_v50  ;;  %v2448_v10 = vpop.f32.mrb[51].mxu0  ;;  %v2501_v61 = vpop.f32.mrb[51].mxu1  ;;  %2844 = vmatprep.subr.bf16.mxu1 %v5751_v63 }
 0xfff   :  { %v2522_v12 = vadd.f32 %v2518_v28, %v2514_v37  ;;  %v2519_v1 = vmul.f32 %v2448_v10, %v2205_v31  ;;  %v2535_v13 = vmul.f32 %v2501_v61, %v2213_v58  ;;  %v5752_v28 = vld [vmem:[#allocation4 + $0x1c0] ss:$24 sps:$4 sm:$0xff]  }
0x1001   :  { %v2530_v2 = vadd.f32 %v2526_v62, %v2522_v12  ;;  %v2523_v14 = vadd.f32 %v2519_v1, %v2515_v9  ;;  %v5749_v62 = vld [vmem:[#allocation4 + $0x190] ss:$24 sps:$4 sm:$0xff]  }
0x1002   :  { %2845 = vmatpush1.bf16.msra.mxu1 %v5749_v62 }
0x1003   :  { %v2538_v8 = vadd.f32 %v2534_v6, %v2530_v2  ;;  %v2531_v15 = vadd.f32 %v2527_v45, %v2523_v14  ;;  %2846 = vmatprep.subr.bf16.mxu1 %v5754_v22  ;;  %v4861_v22 = vld [vmem:[%s6905_s4 + $0x13] ss:$0 sm:$0xff] }
0x1005   :  { %v2539_v16 = vadd.f32 %v2535_v13, %v2531_v15  ;;  %v2452_v18 = vpop.f32.mrb[52].mxu0  ;;  %v2505_v23 = vpop.f32.mrb[52].mxu1  ;;  %v5755_v15 = vld [vmem:[#allocation4 + $0x1f0] ss:$24 sps:$4 sm:$0xff]  }
0x1006   :  { %v2516_v24 = vmul.f32 %v2452_v18, %v2202_v59  ;;  %v2528_v25 = vmul.f32 %v2505_v23, %v2210_v50  ;;  %v2454_v26 = vpop.f32.mrb[53].mxu0  ;;  %v2507_v29 = vpop.f32.mrb[53].mxu1  ;;  %2847 = vmatpush1.bf16.msra.mxu1 %v5752_v28  ;;  %v5758_v18 = vld [vmem:[#allocation4 + $0x220] ss:$24 sps:$4 sm:$0xff]   ;;  %v5763_v23 = vld [vmem:[#allocation4 + $0x254] ss:$24 sps:$4 sm:$0xff]  }
0x1007   :  { %v2520_v30 = vmul.f32 %v2454_v26, %v2205_v31  ;;  %v2536_v32 = vmul.f32 %v2507_v29, %v2213_v58  ;;  %v2456_v11 = vpop.f32.mrb[54].mxu0  ;;  %v2509_v17 = vpop.f32.mrb[54].mxu1  ;;  %v2542_v33 = vpack.c.bf16 %v2539_v16, %v2538_v8  ;;  %v5757_v8 = vld [vmem:[#allocation4 + $0x1f4] ss:$24 sps:$4 sm:$0xff]   ;;  %v5760_v16 = vld [vmem:[#allocation4 + $0x224] ss:$24 sps:$4 sm:$0xff]  }
0x1008   :  { %v2517_v36 = vmul.f32 %v2456_v11, %v2202_v59  ;;  %v2529_v27 = vmul.f32 %v2509_v17, %v2210_v50  ;;  %v2458_v35 = vpop.f32.mrb[55].mxu0  ;;  %v2511_v39 = vpop.f32.mrb[55].mxu1  ;;  %2848 = vmatprep.subr.bf16.mxu1 %v5757_v8  ;;  %v5764_v26 = vld [vmem:[#allocation4 + $0x280] ss:$24 sps:$4 sm:$0xff]   ;;  %v5769_v29 = vld [vmem:[#allocation4 + $0x2b4] ss:$24 sps:$4 sm:$0xff]  }
0x1009   :  { %v2524_v40 = vadd.f32 %v2520_v30, %v2516_v24  ;;  %v2521_v41 = vmul.f32 %v2458_v35, %v2205_v31  ;;  %v2537_v42 = vmul.f32 %v2511_v39, %v2213_v58  ;;  %5436 = vmatprep.mubr.bf16.mxu0 %v2542_v33  ;;  %v5761_v24 = vld [vmem:[#allocation4 + $0x250] ss:$24 sps:$4 sm:$0xff]   ;;  %v5772_v11 = vld [vmem:[#allocation4 + $0x2e4] ss:$24 sps:$4 sm:$0xff]  }
0x100a   :  { %2849 = vmatpush1.bf16.msra.mxu1 %v5755_v15  ;;  %v5767_v30 = vld [vmem:[#allocation4 + $0x2b0] ss:$24 sps:$4 sm:$0xff]   ;;  %v5773_v17 = vld [vmem:[#allocation6 + $0xc0] sm:$0xff]  }
0x100b   :  { %v2532_v43 = vadd.f32 %v2528_v25, %v2524_v40  ;;  %v2525_v44 = vadd.f32 %v2521_v41, %v2517_v36  ;;  %2850 = vmatprep.subr.bf16.mxu1 %v5760_v16  ;;  %v5766_v25 = vld [vmem:[#allocation4 + $0x284] ss:$24 sps:$4 sm:$0xff]   ;;  %v5775_v36 = vld [vmem:[#allocation6 + $0xc8] sm:$0xff]   ;;  %5190 = vmatprep.subr.bf16.mxu0 %v5773_v17  ;;  %v5777_v35 = vld [vmem:[#allocation6 + $0xd0] sm:$0xff]  }
0x100c   :  { %v5774_v33 = vld [vmem:[#allocation6 + $0x80] sm:$0xff]   ;;  %v5778_v39 = vld [vmem:[#allocation6 + $0x90] sm:$0xff]   ;;  %v5779_v40 = vld [vmem:[#allocation6 + $0xd8] sm:$0xff]  }
0x100d   :  { %v2540_v49 = vadd.f32 %v2536_v32, %v2532_v43  ;;  %v2533_v51 = vadd.f32 %v2529_v27, %v2525_v44  ;;  %v5770_v32 = vld [vmem:[#allocation4 + $0x2e0] ss:$24 sps:$4 sm:$0xff]   ;;  %v5776_v27 = vld [vmem:[#allocation6 + $0x88] sm:$0xff]  }
0x100e   :  { %2851 = vmatpush1.bf16.msra.mxu1 %v5758_v18  ;;  %v5780_v41 = vld [vmem:[#allocation6 + $0x98] sm:$0xff]   ;;  %v5782_v43 = vld [vmem:[#allocation6 + $0xa0] sm:$0xff]   ;;  %v5783_v44 = vld [vmem:[#allocation6 + $0xe8] sm:$0xff]  }
0x100f   :  { %v2541_v52 = vadd.f32 %v2537_v42, %v2533_v51  ;;  %2852 = vmatprep.subr.bf16.mxu1 %v5763_v23  ;;  %v5781_v42 = vld [vmem:[#allocation6 + $0xe0] sm:$0xff]   ;;  %v4862_v8 = vld [vmem:[%s6905_s4 + $0xf] sm:$0x3] }
0x1010   :  { %v2757_v15 = vrot.slane %v4862_v8, %v6434_v20  ;;  %v2761_v16 = vrot.slane %v4862_v8, %v6437_v21 }
0x1011   :  { %v2543_v53 = vpack.c.bf16 %v2541_v52, %v2540_v49 }
0x1012   :  { %2853 = vmatpush1.bf16.msra.mxu1 %v5761_v24 }
0x1013   :  { %5437 = vmatmul.mubr.bf16.vlgmr.msra.gmra.mrb[56].mxu0 %v2543_v53  ;;  %2854 = vmatprep.subr.bf16.mxu1 %v5766_v25 }
0x1014   :  { %5191 = vmatpush3.bf16.msra.mxu0 %v5774_v33 }
0x1015   :  { %5192 = vmatprep.subr.bf16.mxu0 %v5775_v36 }
0x1016   :  { %2855 = vmatpush1.bf16.msra.mxu1 %v5764_v26 }
0x1017   :  { %2856 = vmatprep.subr.bf16.mxu1 %v5769_v29 }
0x1018   :  { %5193 = vmatpush3.bf16.msra.mxu0 %v5776_v27 }
0x1019   :  { %5194 = vmatprep.subr.bf16.mxu0 %v5777_v35 }
0x101a   :  { %2857 = vmatpush1.bf16.msra.mxu1 %v5767_v30 }
0x101b   :  { %2858 = vmatprep.subr.bf16.mxu1 %v5772_v11 }
0x101c   :  { %5195 = vmatpush3.bf16.msra.mxu0 %v5778_v39 }
0x101d   :  { %5196 = vmatprep.subr.bf16.mxu0 %v5779_v40 }
0x101e   :  { %2859 = vmatpush1.bf16.msra.mxu1 %v5770_v32 }
0x1020   :  { %5197 = vmatpush3.bf16.msra.mxu0 %v5780_v41 }
0x1021   :  { %5198 = vmatprep.subr.bf16.mxu0 %v5781_v42 }
0x1024   :  { %5199 = vmatpush3.bf16.msra.mxu0 %v5782_v43 }
0x1025   :  { %5200 = vmatprep.subr.bf16.mxu0 %v5783_v44 }
0x10e6   :  { %v5438_v55 = vpop.f32.mrb[56].mxu0 }
0x10e7   :  { %v2649_v48 = vpop.f32.mrb[57].mxu0  ;;  %v2658_v50 = vadd.f32 %v5438_v55, %v4849_v54 }
0x10e8   :  { %v2650_v47 = vadd.f32 %v4849_v54, %v2649_v48  ;;  %v5439_v56 = vpop.f32.mrb[58].mxu0 }
0x10e9   :  { %v2652_v57 = vpop.f32.mrb[59].mxu0  ;;  %v2661_v46 = vadd.f32 %v5439_v56, %v4849_v54  ;;  %v2666_v34 = vadd.f32 %v2658_v50, %v6598_v3 }
0x10ea   :  { %v2653_v59 = vadd.f32 %v4849_v54, %v2652_v57  ;;  %v2664_v58 = vadd.f32 %v2650_v47, %v6589_v60 }
0x10eb   :  { %v2667_v37 = vadd.f32 %v2661_v46, %v6600_v4 }
0x10ec   :  { %2670 = vadd.xlane.f32.xlu0 %v2664_v58  ;;  %v2665_v31 = vadd.f32 %v2653_v59, %v6591_v19 }
0x10ee   :  { %2672 = vadd.xlane.f32.xlu1 %v2665_v31 }
0x10f0   :  { %2674 = vadd.xlane.f32.xlu0 %v2666_v34 }
0x10f4   :  { %2676 = vadd.xlane.f32.xlu0 %v2667_v37 }
0x1179   :  { %v2671_v60 = vpop.xlane.xlu0 %2670 }
0x117a   :  { %v2678_v6 = vmul.f32 0.0078125, %v2671_v60 }
0x117b   :  { %v2673_v5 = vpop.xlane.xlu1 %2672 }
0x117c   :  { %v6655_v19 = vsub.f32 %v2664_v58, %v2678_v6  ;;  %v2679_v7 = vmul.f32 0.0078125, %v2673_v5 }
0x117d   :  { %v2675_v9 = vpop.xlane.xlu0 %2674 }
0x117e   :  { %v6657_v3 = vsub.f32 %v2665_v31, %v2679_v7  ;;  %v2680_v45 = vmul.f32 0.0078125, %v2675_v9  ;;  %v2686_v4 = vmul.f32 %v6655_v19, %v6655_v19  ;;  %v4860_v31 = vld [vmem:[%s6905_s4 + $0x12] ss:$0 sm:$0xff] }
0x1180   :  { %v6661_v10 = vsub.f32 %v2666_v34, %v2680_v45  ;;  %2690 = vadd.xlane.f32.xlu1 %v2686_v4  ;;  %v2687_v61 = vmul.f32 %v6657_v3, %v6657_v3 }
0x1181   :  { %v2677_v12 = vpop.xlane.xlu0 %2676 }
0x1182   :  { %v2681_v1 = vmul.f32 0.0078125, %v2677_v12  ;;  %2692 = vadd.xlane.f32.xlu0 %v2687_v61  ;;  %v2688_v13 = vmul.f32 %v6661_v10, %v6661_v10 }
0x1184   :  { %v6667_v2 = vsub.f32 %v2667_v37, %v2681_v1  ;;  %2694 = vadd.xlane.f32.xlu1 %v2688_v13  ;;  %v5785_v1 = vld [vmem:[#allocation6 + $0xf0] sm:$0xff]  }
0x1185   :  { %v5786_v13 = vld [vmem:[#allocation6 + $0xb0] sm:$0xff]  }
0x1186   :  { %v2689_v14 = vmul.f32 %v6667_v2, %v6667_v2 }
0x1188   :  { %2696 = vadd.xlane.f32.xlu0 %v2689_v14  ;;  %v5788_v14 = vld [vmem:[#allocation6 + $0xb8] sm:$0xff]  }
0x120d   :  { %v2691_v49 = vpop.xlane.xlu1 %2690 }
0x120e   :  { %v2698_v51 = vmul.f32 0.0078125, %v2691_v49 }
0x120f   :  { %v2693_v52 = vpop.xlane.xlu0 %2692 }
0x1210   :  { %v2702_v53 = vadd.f32 1e-05, %v2698_v51  ;;  %v2699_v54 = vmul.f32 0.0078125, %v2693_v52 }
0x1211   :  { %v2695_v55 = vpop.xlane.xlu1 %2694 }
0x1212   :  { %5933 = vrsqrt.f32 %v2702_v53  ;;  %v2703_v48 = vadd.f32 1e-05, %v2699_v54  ;;  %v2700_v47 = vmul.f32 0.0078125, %v2695_v55 }
0x1214   :  { %5935 = vrsqrt.f32 %v2703_v48  ;;  %v2704_v56 = vadd.f32 1e-05, %v2700_v47 }
0x1215   :  { %v2697_v57 = vpop.xlane.xlu0 %2696 }
0x1216   :  { %5937 = vrsqrt.f32 %v2704_v56  ;;  %v2701_v50 = vmul.f32 0.0078125, %v2697_v57  ;;  %v4880_v57 = vld [vmem:[%s6905_s4 + $0x11] ss:$0 sm:$0xff] }
0x1218   :  { %v2705_v59 = vadd.f32 1e-05, %v2701_v50 }
0x121a   :  { %5939 = vrsqrt.f32 %v2705_v59 }
0x121c   :  { %v5934_v58 = vpop.eup %5933 }
0x121d   :  { %v2710_v46 = vmul.f32 %v5934_v58, %v6655_v19 }
0x121e   :  { %v5936_v34 = vpop.eup %5935 }
0x121f   :  { %v2720_v37 = vmul.f32 %v4860_v31, %v2710_v46  ;;  %v2711_v62 = vmul.f32 %v5936_v34, %v6657_v3 }
0x1220   :  { %v5938_v63 = vpop.eup %5937 }
0x1221   :  { %v2721_v28 = vmul.f32 %v4860_v31, %v2711_v62  ;;  %v6679_v60 = vadd.f32 %v4861_v22, %v2720_v37  ;;  %v2712_v5 = vmul.f32 %v5938_v63, %v6661_v10  ;;  %v5784_v10 = vld [vmem:[#allocation6 + $0xa8] sm:$0xff]  }
0x1222   :  { %5201 = vmatpush3.bf16.msra.mxu0 %v5784_v10 }
0x1223   :  { %v6681_v6 = vadd.f32 %v4861_v22, %v2721_v28  ;;  %v2722_v3 = vmul.f32 %v4860_v31, %v2712_v5  ;;  %5202 = vmatprep.subr.bf16.mxu0 %v5785_v1  ;;  %v5789_v1 = vld [vmem:[#allocation4 + $0x300] ss:$24 sps:$4 sm:$0xff]  }
0x1224   :  { %v5940_v7 = vpop.eup %5939 }
0x1225   :  { %v2734_v19 = vpack.c.bf16 %v6681_v6, %v6679_v60  ;;  %v2713_v9 = vmul.f32 %v5940_v7, %v6667_v2  ;;  %v6690_v61 = vadd.f32 %v4861_v22, %v2722_v3  ;;  %v5787_v2 = vld [vmem:[#allocation6 + $0xf8] sm:$0xff]  }
0x1226   :  { %5203 = vmatpush3.bf16.msra.mxu0 %v5786_v13  ;;  %v5794_v13 = vld [vmem:[#allocation4 + $0x334] ss:$24 sps:$4 sm:$0xff]  }
0x1227   :  { %2877 = vmatmul.mubr.bf16.vlgmr.msra.gmra.mrb[56].mxu1 %v2734_v19  ;;  %v2723_v45 = vmul.f32 %v4860_v31, %v2713_v9  ;;  %5204 = vmatprep.subr.bf16.mxu0 %v5787_v2 }
0x1228   :  { %2886 = vmatprep.mubr.bf16.mxu1 %v6265_v0 }
0x1229   :  { %v6688_v4 = vadd.f32 %v4861_v22, %v2723_v45 }
0x122a   :  { %5205 = vmatpush3.bf16.msra.mxu0 %v5788_v14 }
0x122b   :  { %v2735_v12 = vpack.c.bf16 %v6688_v4, %v6690_v61 }
0x122f   :  { %2887 = vmatmul.mubr.bf16.gmra.mrb[60].mxu1 %v2735_v12 }
0x1230   :  { %3377 = vmatprep.mubr.bf16.mxu1 %v6265_v0 }
0x12fa   :  { %v2878_v18 = vpop.f32.mrb[56].mxu1 }
0x12fb   :  { %v2879_v23 = vadd.f32 %v2878_v18, %v2757_v15  ;;  %v2880_v24 = vpop.f32.mrb[57].mxu1 }
0x12fc   :  { %v2881_v25 = vadd.f32 %v2880_v24, %v2761_v16  ;;  %v2882_v26 = vpop.f32.mrb[58].mxu1 }
0x12fd   :  { %v2883_v29 = vadd.f32 %v2882_v26, %v2757_v15  ;;  %v2884_v30 = vpop.f32.mrb[59].mxu1  ;;  %v2897_v11 = vmax.f32 %v2879_v23, 0.0 }
0x12fe   :  { %v2885_v32 = vadd.f32 %v2884_v30, %v2761_v16  ;;  %v2898_v33 = vmax.f32 %v2881_v25, 0.0 }
0x12ff   :  { %v2899_v17 = vmax.f32 %v2883_v29, 0.0 }
0x1300   :  { %v2900_v36 = vmax.f32 %v2885_v32, 0.0 }
0x1301   :  { %v2905_v27 = vpack.c.bf16 %v2899_v17, %v2897_v11  ;;  %v5797_v17 = vld [vmem:[#allocation4 + $0x364] ss:$24 sps:$4 sm:$0xff]  }
0x1302   :  { %v2906_v35 = vpack.c.bf16 %v2900_v36, %v2898_v33  ;;  %v2888_v39 = vpop.f32.mrb[60].mxu1  ;;  %v5798_v33 = vld [vmem:[#allocation4 + $0x308] ss:$24 sps:$4 sm:$0xff]  }
0x1303   :  { %v2889_v40 = vadd.f32 %v2888_v39, %v2757_v15  ;;  %v2890_v41 = vpop.f32.mrb[61].mxu1  ;;  %v5795_v36 = vld [vmem:[#allocation4 + $0x360] ss:$24 sps:$4 sm:$0xff]   ;;  %5440 = vmatprep.subr.bf16.mxu0 %v5798_v33  ;;  %v5799_v39 = vld [vmem:[#allocation4 + $0x390] ss:$24 sps:$4 sm:$0xff]  }
0x1304   :  { %v2891_v42 = vadd.f32 %v2890_v41, %v2761_v16  ;;  %v2892_v43 = vpop.f32.mrb[62].mxu1  ;;  %3077 = vmatprep.mubr.bf16.mxu0 %v2906_v35  ;;  %v5802_v35 = vld [vmem:[#allocation4 + $0x338] ss:$24 sps:$4 sm:$0xff]   ;;  %v5806_v41 = vld [vmem:[#allocation4 + $0x368] ss:$24 sps:$4 sm:$0xff]  }
0x1305   :  { %v2893_v44 = vadd.f32 %v2892_v43, %v2757_v15  ;;  %v2894_v49 = vpop.f32.mrb[63].mxu1  ;;  %3078 = vmatmul.mubr.bf16.vlgmr.msra.gmra.mrb[60].mxu0 %v2905_v27  ;;  %v2901_v52 = vmax.f32 %v2889_v40, 0.0  ;;  %v5801_v27 = vld [vmem:[#allocation4 + $0x394] ss:$24 sps:$4 sm:$0xff]   ;;  %v5805_v40 = vld [vmem:[#allocation4 + $0x3c4] ss:$24 sps:$4 sm:$0xff]  }
0x1306   :  { %v2895_v51 = vadd.f32 %v2894_v49, %v2761_v16  ;;  %v2902_v54 = vmax.f32 %v2891_v42, 0.0  ;;  %5441 = vmatpush3.bf16.msra.mxu0 %v5798_v33  ;;  %v5803_v42 = vld [vmem:[#allocation4 + $0x3c0] ss:$24 sps:$4 sm:$0xff]   ;;  %v5809_v43 = vld [vmem:[#allocation4 + $0x3f4] ss:$24 sps:$4 sm:$0xff]  }
0x1307   :  { %v2903_v53 = vmax.f32 %v2893_v44, 0.0  ;;  %5442 = vmatprep.subr.bf16.mxu0 %v5802_v35  ;;  %v5810_v44 = vld [vmem:[#allocation4 + $0x398] ss:$24 sps:$4 sm:$0xff]   ;;  %v6056_v33 = vld [vmem:[#allocation7 + $0xc8] sm:$0xff]  }
0x1308   :  { %v2904_v55 = vmax.f32 %v2895_v51, 0.0  ;;  %v5807_v49 = vld [vmem:[#allocation4 + $0x3f0] ss:$24 sps:$4 sm:$0xff]   ;;  %v5813_v51 = vld [vmem:[#allocation4 + $0x424] ss:$24 sps:$4 sm:$0xff]  }
0x1309   :  { %v2907_v48 = vpack.c.bf16 %v2903_v53, %v2901_v52  ;;  %v5814_v52 = vld [vmem:[#allocation4 + $0x3c8] ss:$24 sps:$4 sm:$0xff]  }
0x130a   :  { %v2908_v47 = vpack.c.bf16 %v2904_v55, %v2902_v54  ;;  %5443 = vmatpush3.bf16.msra.mxu0 %v5802_v35  ;;  %v5811_v53 = vld [vmem:[#allocation4 + $0x420] ss:$24 sps:$4 sm:$0xff]   ;;  %v5815_v54 = vld [vmem:[#allocation4 + $0x450] ss:$24 sps:$4 sm:$0xff]   ;;  %v5817_v55 = vld [vmem:[#allocation4 + $0x454] ss:$24 sps:$4 sm:$0xff]  }
0x130b   :  { %5444 = vmatprep.subr.bf16.mxu0 %v5806_v41  ;;  %v6059_v35 = vld [vmem:[#allocation7 + $0x60] sm:$0xff]  }
0x130c   :  { %3085 = vmatprep.mubr.bf16.mxu0 %v2908_v47  ;;  %v5819_v47 = vld [vmem:[#allocation4 + $0x428] ss:$24 sps:$4 sm:$0xff]  }
0x130d   :  { %3086 = vmatmul.mubr.bf16.gmra.mrb[64].mxu0 %v2907_v48  ;;  %v5818_v48 = vld [vmem:[#allocation4 + $0x3f8] ss:$24 sps:$4 sm:$0xff]  }
0x130e   :  { %5445 = vmatpush3.bf16.msra.mxu0 %v5806_v41  ;;  %v6062_v41 = vld [vmem:[#allocation7 + $0x90] sm:$0xff]  }
0x130f   :  { %5446 = vmatprep.subr.bf16.mxu0 %v5810_v44 }
0x1312   :  { %5447 = vmatpush3.bf16.msra.mxu0 %v5810_v44  ;;  %v6065_v44 = vld [vmem:[#allocation7 + $0x28] sm:$0xff]  }
0x1313   :  { %5448 = vmatprep.subr.bf16.mxu0 %v5814_v52 }
0x1316   :  { %5449 = vmatpush3.bf16.msra.mxu0 %v5814_v52  ;;  %v6068_v52 = vld [vmem:[#allocation7 + $0xe0] sm:$0xff]  }
0x1317   :  { %5450 = vmatprep.subr.bf16.mxu0 %v5818_v48 }
0x131a   :  { %5451 = vmatpush3.bf16.msra.mxu0 %v5818_v48  ;;  %v6072_v48 = vld [vmem:[#allocation7 + $0xe8] sm:$0xff]  }
0x131b   :  { %5452 = vmatprep.subr.bf16.mxu0 %v5819_v47 }
0x131e   :  { %5453 = vmatpush3.bf16.msra.mxu0 %v5819_v47  ;;  %v6073_v47 = vld [vmem:[#allocation7 + $0x38] sm:$0xff]  }
0x13d8   :  { %v5206_v56 = vpop.f32.mrb[60].mxu0 }
0x13d9   :  { %v5207_v50 = vpop.f32.mrb[61].mxu0 }
0x13da   :  { %v5208_v59 = vadd.f32 %v5207_v50, %v5206_v56  ;;  %v5209_v58 = vpop.f32.mrb[62].mxu0  ;;  %v6047_v56 = vld [vmem:[#allocation7 + $0x40] sm:$0xff]  }
0x13db   :  { %v5210_v31 = vpop.f32.mrb[63].mxu0  ;;  %v6048_v50 = vld [vmem:[#allocation7 + $0xc0] sm:$0xff]  }
0x13dc   :  { %v3080_v46 = vadd.f32 %v5208_v59, %v4880_v57  ;;  %v5211_v34 = vadd.f32 %v5210_v31, %v5209_v58 }
0x13de   :  { %v3083_v37 = vadd.f32 %v5211_v34, %v4880_v57  ;;  %v3094_v62 = vadd.f32 %v3080_v46, %v6679_v60  ;;  %v5791_v60 = vld [vmem:[#allocation4 + $0x304] ss:$24 sps:$4 sm:$0xff]  }
0x13df   :  { %3345 = vmatprep.subr.bf16.mxu1 %v5791_v60 }
0x13e0   :  { %3100 = vadd.xlane.f32.xlu1 %v3094_v62  ;;  %v5212_v63 = vpop.f32.mrb[64].mxu0  ;;  %v3095_v22 = vadd.f32 %v3083_v37, %v6681_v6  ;;  %3346 = vmatpush1.bf16.msra.mxu1 %v5789_v1  ;;  %v5792_v6 = vld [vmem:[#allocation4 + $0x330] ss:$24 sps:$4 sm:$0xff]   ;;  %v4900_v1 = vld [vmem:[%s6905_s4 + $0x15] ss:$0 sm:$0xff] }
0x13e1   :  { %v5213_v28 = vpop.f32.mrb[65].mxu0  ;;  %3347 = vmatprep.subr.bf16.mxu1 %v5794_v13 }
0x13e2   :  { %v5214_v5 = vadd.f32 %v5213_v28, %v5212_v63  ;;  %3102 = vadd.xlane.f32.xlu0 %v3095_v22  ;;  %v5215_v7 = vpop.f32.mrb[66].mxu0 }
0x13e3   :  { %v5216_v19 = vpop.f32.mrb[67].mxu0 }
0x13e4   :  { %v3088_v9 = vadd.f32 %v5214_v5, %v4880_v57  ;;  %v5217_v3 = vadd.f32 %v5216_v19, %v5215_v7  ;;  %3348 = vmatpush1.bf16.msra.mxu1 %v5792_v6 }
0x13e5   :  { %3349 = vmatprep.subr.bf16.mxu1 %v5797_v17  ;;  %v6055_v17 = vld [vmem:[#allocation7 + $0x58] sm:$0xff]  }
0x13e6   :  { %v3091_v45 = vadd.f32 %v5217_v3, %v4880_v57  ;;  %v3096_v12 = vadd.f32 %v3088_v9, %v6690_v61  ;;  %v5820_v57 = vld [vmem:[#allocation4 + $0x458] ss:$24 sps:$4 sm:$0xff]   ;;  %v4899_v9 = vld [vmem:[%s6905_s4 + $0x14] ss:$0 sm:$0xff] }
0x13e7   :  { %5454 = vmatprep.subr.bf16.mxu0 %v5820_v57 }
0x13e8   :  { %3104 = vadd.xlane.f32.xlu1 %v3096_v12  ;;  %v3097_v10 = vadd.f32 %v3091_v45, %v6688_v4  ;;  %3350 = vmatpush1.bf16.msra.mxu1 %v5795_v36  ;;  %v6057_v36 = vld [vmem:[#allocation7 + $0x18] sm:$0xff]  }
0x13e9   :  { %3351 = vmatprep.subr.bf16.mxu1 %v5801_v27  ;;  %5455 = vmatpush3.bf16.msra.mxu0 %v5820_v57  ;;  %v6058_v27 = vld [vmem:[#allocation7 + $0x88] sm:$0xff]   ;;  %v6075_v57 = vld [vmem:[#allocation7 + $0xf0] sm:$0xff]  }
0x13ea   :  { %3106 = vadd.xlane.f32.xlu0 %v3097_v10  ;;  %5256 = vmatprep.subr.bf16.mxu0 %v6048_v50  ;;  %v6076_v50 = vld [vmem:[#allocation9 + $0x4] ss:$16 sps:$4 sm:$0xff]  }
0x13ec   :  { %3352 = vmatpush1.bf16.msra.mxu1 %v5799_v39  ;;  %v6060_v39 = vld [vmem:[#allocation7 + $0xd0] sm:$0xff]  }
0x13ed   :  { %3353 = vmatprep.subr.bf16.mxu1 %v5805_v40  ;;  %v6061_v40 = vld [vmem:[#allocation7 + $0x20] sm:$0xff]  }
0x13f0   :  { %3354 = vmatpush1.bf16.msra.mxu1 %v5803_v42  ;;  %v6063_v42 = vld [vmem:[#allocation7 + $0x68] sm:$0xff]  }
0x13f1   :  { %3355 = vmatprep.subr.bf16.mxu1 %v5809_v43  ;;  %v6064_v43 = vld [vmem:[#allocation7 + $0xd8] sm:$0xff]  }
0x13f4   :  { %3356 = vmatpush1.bf16.msra.mxu1 %v5807_v49  ;;  %v6066_v49 = vld [vmem:[#allocation7 + $0x98] sm:$0xff]  }
0x13f5   :  { %3357 = vmatprep.subr.bf16.mxu1 %v5813_v51  ;;  %v6067_v51 = vld [vmem:[#allocation7 + $0x70] sm:$0xff]  }
0x13f8   :  { %3358 = vmatpush1.bf16.msra.mxu1 %v5811_v53  ;;  %v6069_v53 = vld [vmem:[#allocation7 + $0x30] sm:$0xff]  }
0x13f9   :  { %3359 = vmatprep.subr.bf16.mxu1 %v5817_v55  ;;  %v6071_v55 = vld [vmem:[#allocation7 + $0x78] sm:$0xff]  }
0x13fc   :  { %3360 = vmatpush1.bf16.msra.mxu1 %v5815_v54  ;;  %v6070_v54 = vld [vmem:[#allocation7 + $0xa0] sm:$0xff]  }
0x13fd   :  { %5228 = vmatprep.subr.bf16.mxu1 %v6047_v56  ;;  %v6074_v56 = vld [vmem:[#allocation7 + $0xa8] sm:$0xff]  }
0x146d   :  { %v3101_v2 = vpop.xlane.xlu1 %3100 }
0x146e   :  { %v3108_v14 = vmul.f32 0.0078125, %v3101_v2 }
0x146f   :  { %v3103_v8 = vpop.xlane.xlu0 %3102 }
0x1470   :  { %v6707_v15 = vsub.f32 %v3094_v62, %v3108_v14  ;;  %v3109_v16 = vmul.f32 0.0078125, %v3103_v8 }
0x1472   :  { %v6709_v18 = vsub.f32 %v3095_v22, %v3109_v16  ;;  %v3116_v4 = vmul.f32 %v6707_v15, %v6707_v15 }
0x1474   :  { %3120 = vadd.xlane.f32.xlu1 %v3116_v4  ;;  %v3117_v61 = vmul.f32 %v6709_v18, %v6709_v18  ;;  %v6049_v4 = vld [vmem:[#allocation7] sm:$0xff]  }
0x1475   :  { %v3105_v23 = vpop.xlane.xlu1 %3104 }
0x1476   :  { %v3110_v24 = vmul.f32 0.0078125, %v3105_v23  ;;  %3122 = vadd.xlane.f32.xlu0 %v3117_v61  ;;  %v6050_v23 = vld [vmem:[#allocation7 + $0x48] sm:$0xff]  }
0x1477   :  { %v3107_v25 = vpop.xlane.xlu0 %3106 }
0x1478   :  { %v6715_v26 = vsub.f32 %v3096_v12, %v3110_v24  ;;  %v3111_v29 = vmul.f32 0.0078125, %v3107_v25 }
0x147a   :  { %v6717_v30 = vsub.f32 %v3097_v10, %v3111_v29  ;;  %v3118_v32 = vmul.f32 %v6715_v26, %v6715_v26  ;;  %v6051_v29 = vld [vmem:[#allocation7 + $0x8] sm:$0xff]  }
0x147c   :  { %3124 = vadd.xlane.f32.xlu1 %v3118_v32  ;;  %v3119_v11 = vmul.f32 %v6717_v30, %v6717_v30  ;;  %v6052_v32 = vld [vmem:[#allocation7 + $0x50] sm:$0xff]  }
0x147e   :  { %3126 = vadd.xlane.f32.xlu0 %v3119_v11  ;;  %v6054_v11 = vld [vmem:[#allocation7 + $0x80] sm:$0xff]  }
0x1501   :  { %v3121_v59 = vpop.xlane.xlu1 %3120 }
0x1502   :  { %v3128_v58 = vmul.f32 0.0078125, %v3121_v59  ;;  %v6077_v59 = vld [vmem:[#allocation7 + $0xb0] sm:$0xff]  }
0x1503   :  { %v3123_v31 = vpop.xlane.xlu0 %3122 }
0x1504   :  { %v3132_v46 = vadd.f32 1e-05, %v3128_v58  ;;  %v3129_v34 = vmul.f32 0.0078125, %v3123_v31  ;;  %v6078_v58 = vld [vmem:[#allocation7 + $0xf8] sm:$0xff]  }
0x1505   :  { %v6079_v31 = vld [vmem:[#allocation7 + $0xb8] sm:$0xff]  }
0x1506   :  { %5941 = vrsqrt.f32 %v3132_v46  ;;  %v3133_v37 = vadd.f32 1e-05, %v3129_v34  ;;  %v6080_v46 = vld [vmem:[#allocation9 + $0xc] ss:$16 sps:$4 sm:$0xff]   ;;  %v6749_v34 = vld [vmem:[%s6905_s4 + $0x16] sm:$0x7] }
0x1508   :  { %5943 = vrsqrt.f32 %v3133_v37  ;;  %v3205_v37 = vrot.slane %v6749_v34, %v6434_v20 }
0x1509   :  { %v3125_v62 = vpop.xlane.xlu1 %3124 }
0x150a   :  { %v3130_v63 = vmul.f32 0.0078125, %v3125_v62  ;;  %v3209_v62 = vrot.slane %v6749_v34, %v6437_v21 }
0x150b   :  { %v3127_v22 = vpop.xlane.xlu0 %3126 }
0x150c   :  { %v3134_v28 = vadd.f32 1e-05, %v3130_v63  ;;  %v3131_v5 = vmul.f32 0.0078125, %v3127_v22 }
0x150e   :  { %5945 = vrsqrt.f32 %v3134_v28  ;;  %v3135_v7 = vadd.f32 1e-05, %v3131_v5 }
0x1510   :  { %v5942_v19 = vpop.eup %5941  ;;  %5947 = vrsqrt.f32 %v3135_v7 }
0x1511   :  { %v3140_v3 = vmul.f32 %v5942_v19, %v6707_v15 }
0x1512   :  { %v5944_v45 = vpop.eup %5943 }
0x1513   :  { %v3150_v12 = vmul.f32 %v4899_v9, %v3140_v3  ;;  %v3141_v10 = vmul.f32 %v5944_v45, %v6709_v18 }
0x1515   :  { %v3151_v60 = vmul.f32 %v4899_v9, %v3141_v10  ;;  %v6731_v13 = vadd.f32 %v4900_v1, %v3150_v12 }
0x1517   :  { %v6733_v6 = vadd.f32 %v4900_v1, %v3151_v60 }
0x1518   :  { %v5946_v2 = vpop.eup %5945 }
0x1519   :  { %v3164_v14 = vpack.c.bf16 %v6733_v6, %v6731_v13  ;;  %v3142_v8 = vmul.f32 %v5946_v2, %v6715_v26 }
0x151a   :  { %v5948_v15 = vpop.eup %5947 }
0x151b   :  { %3378 = vmatmul.mubr.bf16.vlgmr.msra.gmra.mrb[64].mxu1 %v3164_v14  ;;  %5456 = vmatprep.mubr.bf16.mxu0 %v3164_v14  ;;  %v3143_v16 = vmul.f32 %v5948_v15, %v6717_v30  ;;  %v3152_v18 = vmul.f32 %v4899_v9, %v3142_v8  ;;  %v6053_v30 = vld [vmem:[#allocation7 + $0x10] sm:$0xff]  }
0x151c   :  { %3387 = vmatprep.mubr.bf16.mxu1 %v6265_v0  ;;  %5229 = vmatpush3.bf16.msra.mxu1 %v6049_v4 }
0x151d   :  { %v3153_v61 = vmul.f32 %v4899_v9, %v3143_v16  ;;  %5230 = vmatprep.subr.bf16.mxu1 %v6050_v23  ;;  %v6740_v24 = vadd.f32 %v4900_v1, %v3152_v18 }
0x151f   :  { %v6742_v25 = vadd.f32 %v4900_v1, %v3153_v61 }
0x1520   :  { %5231 = vmatpush3.bf16.msra.mxu1 %v6051_v29 }
0x1521   :  { %v3165_v26 = vpack.c.bf16 %v6742_v25, %v6740_v24  ;;  %5232 = vmatprep.subr.bf16.mxu1 %v6052_v32 }
0x1523   :  { %3388 = vmatmul.mubr.bf16.gmra.mrb[68].mxu1 %v3165_v26  ;;  %5457 = vmatmul.mubr.bf16.vlgmr.msra.gmra.mrb[68].mxu0 %v3165_v26 }
0x1524   :  { %5233 = vmatpush3.bf16.msra.mxu1 %v6053_v30  ;;  %5257 = vmatpush3.bf16.msra.mxu0 %v6054_v11 }
0x1525   :  { %5234 = vmatprep.subr.bf16.mxu1 %v6055_v17  ;;  %5258 = vmatprep.subr.bf16.mxu0 %v6056_v33 }
0x1528   :  { %5235 = vmatpush3.bf16.msra.mxu1 %v6057_v36  ;;  %5259 = vmatpush3.bf16.msra.mxu0 %v6058_v27  ;;  %v6081_v27 = vld [vmem:[#allocation9] ss:$16 sps:$4 sm:$0xff]  }
0x1529   :  { %5236 = vmatprep.subr.bf16.mxu1 %v6059_v35  ;;  %5260 = vmatprep.subr.bf16.mxu0 %v6060_v39 }
0x152c   :  { %5237 = vmatpush3.bf16.msra.mxu1 %v6061_v40  ;;  %5261 = vmatpush3.bf16.msra.mxu0 %v6062_v41 }
0x152d   :  { %5238 = vmatprep.subr.bf16.mxu1 %v6063_v42  ;;  %5262 = vmatprep.subr.bf16.mxu0 %v6064_v43  ;;  %v6082_v42 = vld [vmem:[#allocation9 + $0x24] ss:$16 sps:$4 sm:$0xff]  }
0x1530   :  { %5239 = vmatpush3.bf16.msra.mxu1 %v6065_v44  ;;  %5263 = vmatpush3.bf16.msra.mxu0 %v6066_v49 }
0x1531   :  { %5240 = vmatprep.subr.bf16.mxu1 %v6067_v51  ;;  %5264 = vmatprep.subr.bf16.mxu0 %v6068_v52 }
0x1534   :  { %5241 = vmatpush3.bf16.msra.mxu1 %v6069_v53  ;;  %5265 = vmatpush3.bf16.msra.mxu0 %v6070_v54 }
0x1535   :  { %5242 = vmatprep.subr.bf16.mxu1 %v6071_v55  ;;  %5266 = vmatprep.subr.bf16.mxu0 %v6072_v48 }
0x1538   :  { %5243 = vmatpush3.bf16.msra.mxu1 %v6073_v47  ;;  %5267 = vmatpush3.bf16.msra.mxu0 %v6074_v56  ;;  %v6083_v47 = vld [vmem:[#allocation9 + $0x20] ss:$16 sps:$4 sm:$0xff]  }
0x1539   :  { %5268 = vmatprep.subr.bf16.mxu0 %v6075_v57  ;;  %3639 = vmatprep.subr.bf16.mxu1 %v6076_v50  ;;  %v6084_v57 = vld [vmem:[#allocation9 + $0x44] ss:$16 sps:$4 sm:$0xff]   ;;  %v6085_v50 = vld [vmem:[#allocation9 + $0x8] ss:$16 sps:$4 sm:$0xff]  }
0x153c   :  { %5269 = vmatpush3.bf16.msra.mxu0 %v6077_v59  ;;  %v6086_v59 = vld [vmem:[#allocation9 + $0x2c] ss:$16 sps:$4 sm:$0xff]  }
0x153d   :  { %5270 = vmatprep.subr.bf16.mxu0 %v6078_v58  ;;  %v6087_v58 = vld [vmem:[#allocation9 + $0x40] ss:$16 sps:$4 sm:$0xff]  }
0x1540   :  { %5271 = vmatpush3.bf16.msra.mxu0 %v6079_v31  ;;  %v6088_v31 = vld [vmem:[#allocation9 + $0x64] ss:$16 sps:$4 sm:$0xff]  }
0x1541   :  { %3692 = vmatprep.subr.bf16.mxu0 %v6080_v46  ;;  %v6089_v46 = vld [vmem:[#allocation9 + $0x28] ss:$16 sps:$4 sm:$0xff]  }
0x15ee   :  { %v3379_v63 = vpop.f32.mrb[64].mxu1 }
0x15ef   :  { %v3380_v22 = vadd.f32 %v3379_v63, %v3205_v37  ;;  %v3381_v28 = vpop.f32.mrb[65].mxu1  ;;  %v6092_v63 = vld [vmem:[#allocation9 + $0x84] ss:$16 sps:$4 sm:$0xff]  }
0x15f0   :  { %v3382_v5 = vadd.f32 %v3381_v28, %v3209_v62  ;;  %v3383_v7 = vpop.f32.mrb[66].mxu1  ;;  %v6094_v28 = vld [vmem:[#allocation9 + $0x6c] ss:$16 sps:$4 sm:$0xff]  }
0x15f1   :  { %v3384_v19 = vadd.f32 %v3383_v7, %v3205_v37  ;;  %v3385_v9 = vpop.f32.mrb[67].mxu1  ;;  %v6096_v7 = vld [vmem:[#allocation9 + $0xa4] ss:$16 sps:$4 sm:$0xff]  }
0x15f2   :  { %v3447_v3 = vmul.f32 %v3382_v5, %v3380_v22  ;;  %v3386_v45 = vadd.f32 %v3385_v9, %v3209_v62  ;;  %v6098_v9 = vld [vmem:[#allocation9 + $0x8c] ss:$16 sps:$4 sm:$0xff]  }
0x15f3   :  { %v3448_v12 = vmul.f32 %v3384_v19, %v3382_v5 }
0x15f4   :  { %v3453_v10 = vmul.f32 %v3386_v45, %v3380_v22  ;;  %v3454_v1 = vmul.f32 %v3386_v45, %v3384_v19 }
0x15f5   :  { %v3451_v60 = vpack.c.bf16 %v3448_v12, %v3447_v3  ;;  %v6099_v3 = vld [vmem:[#allocation9 + $0xa0] ss:$16 sps:$4 sm:$0xff]   ;;  %v6101_v12 = vld [vmem:[#allocation9 + $0x88] ss:$16 sps:$4 sm:$0xff]  }
0x15f6   :  { %v3389_v2 = vpop.f32.mrb[68].mxu1  ;;  %v6755_v14 = vpop.f32.mrb[68].mxu0  ;;  %v3457_v8 = vpack.c.bf16 %v3454_v1, %v3453_v10  ;;  %v6102_v10 = vld [vmem:[#allocation9 + $0xac] ss:$16 sps:$4 sm:$0xff]   ;;  %v6103_v1 = vld [vmem:[#allocation9 + $0xc0] ss:$16 sps:$4 sm:$0xff]  }
0x15f7   :  { %v3390_v15 = vadd.f32 %v3389_v2, %v3205_v37  ;;  %v3391_v16 = vpop.f32.mrb[69].mxu1  ;;  %v6757_v18 = vpop.f32.mrb[69].mxu0  ;;  %v6105_v2 = vld [vmem:[#allocation9 + $0xa8] ss:$16 sps:$4 sm:$0xff]  }
0x15f8   :  { %v3392_v4 = vadd.f32 %v3391_v16, %v3209_v62  ;;  %v3393_v61 = vpop.f32.mrb[70].mxu1  ;;  %v6759_v23 = vpop.f32.mrb[70].mxu0  ;;  %3503 = vmatprep.mubr.bf16.mxu1 %v3457_v8  ;;  %v6106_v8 = vld [vmem:[#allocation9 + $0xcc] ss:$16 sps:$4 sm:$0xff]   ;;  %v6108_v16 = vld [vmem:[#allocation9 + $0xc8] ss:$16 sps:$4 sm:$0xff]  }
0x15f9   :  { %v3394_v29 = vadd.f32 %v3393_v61, %v3205_v37  ;;  %v3395_v26 = vpop.f32.mrb[71].mxu1  ;;  %v6761_v32 = vpop.f32.mrb[71].mxu0  ;;  %3504 = vmatmul.mubr.bf16.vlgmr.msra.gmra.mrb[72].mxu1 %v3451_v60  ;;  %v3455_v30 = vmul.f32 %v3390_v15, %v3386_v45  ;;  %v3449_v11 = vmul.f32 %v3390_v15, %v3382_v5  ;;  %v6090_v37 = vld [vmem:[#allocation9 + $0x4c] ss:$16 sps:$4 sm:$0xff]   ;;  %v6104_v60 = vld [vmem:[#allocation9 + $0xe4] ss:$16 sps:$4 sm:$0xff]  }
0x15fa   :  { %v3459_v17 = vmul.f32 %v3392_v4, %v3380_v22  ;;  %v3460_v33 = vmul.f32 %v3392_v4, %v3384_v19  ;;  %v3396_v36 = vadd.f32 %v3395_v26, %v3209_v62  ;;  %3640 = vmatpush1.bf16.msra.mxu1 %v6081_v27  ;;  %v3461_v40 = vmul.f32 %v3392_v4, %v3390_v15  ;;  %v6091_v62 = vld [vmem:[#allocation9 + $0x60] ss:$16 sps:$4 sm:$0xff]   ;;  %v6110_v61 = vld [vmem:[#allocation9 + $0xe8] ss:$16 sps:$4 sm:$0xff]  }
0x15fb   :  { %v3456_v35 = vmul.f32 %v3394_v29, %v3386_v45  ;;  %v3450_v39 = vmul.f32 %v3394_v29, %v3382_v5  ;;  %v3462_v41 = vmul.f32 %v3394_v29, %v3392_v4  ;;  %3641 = vmatprep.subr.bf16.mxu1 %v6082_v42  ;;  %v6095_v5 = vld [vmem:[#allocation9 + $0x80] ss:$16 sps:$4 sm:$0xff]   ;;  %v6100_v45 = vld [vmem:[#allocation9 + $0xc4] ss:$16 sps:$4 sm:$0xff]   ;;  %v6109_v4 = vld [vmem:[#allocation9 + $0xec] ss:$16 sps:$4 sm:$0xff]  }
0x15fc   :  { %v3465_v43 = vmul.f32 %v3396_v36, %v3380_v22  ;;  %v3466_v44 = vmul.f32 %v3396_v36, %v3384_v19  ;;  %v3463_v49 = vpack.c.bf16 %v3460_v33, %v3459_v17  ;;  %v3467_v51 = vmul.f32 %v3396_v36, %v3390_v15  ;;  %v6093_v22 = vld [vmem:[#allocation9 + $0x48] ss:$16 sps:$4 sm:$0xff]   ;;  %v6107_v15 = vld [vmem:[#allocation9 + $0xe0] ss:$16 sps:$4 sm:$0xff]  }
0x15fd   :  { %v3458_v52 = vpack.c.bf16 %v3456_v35, %v3455_v30  ;;  %v3452_v53 = vpack.c.bf16 %v3450_v39, %v3449_v11  ;;  %v3468_v54 = vmul.f32 %v3396_v36, %v3394_v29  ;;  %v3464_v55 = vpack.c.bf16 %v3462_v41, %v3461_v40  ;;  %v6097_v19 = vld [vmem:[#allocation9 + $0x68] ss:$16 sps:$4 sm:$0xff]  }
0x15fe   :  { %v3469_v48 = vpack.c.bf16 %v3466_v44, %v3465_v43  ;;  %3642 = vmatpush1.bf16.msra.mxu1 %v6083_v47 }
0x15ff   :  { %3511 = vmatprep.mubr.bf16.mxu1 %v3458_v52  ;;  %v3470_v56 = vpack.c.bf16 %v3468_v54, %v3467_v51  ;;  %3643 = vmatprep.subr.bf16.mxu1 %v6084_v57 }
0x1600   :  { %3552 = vmatprep.mubr.bf16.mxu0 %v3469_v48 }
0x1601   :  { %3512 = vmatmul.mubr.bf16.gmra.mrb[76].mxu1 %v3452_v53  ;;  %3553 = vmatmul.mubr.bf16.vlgmr.msra.gmra.mrb[72].mxu0 %v3463_v49 }
0x1602   :  { %3560 = vmatprep.mubr.bf16.mxu0 %v3470_v56  ;;  %3693 = vmatpush1.bf16.msra.mxu0 %v6085_v50 }
0x1603   :  { %3694 = vmatprep.subr.bf16.mxu0 %v6086_v59  ;;  %3644 = vmatpush1.bf16.msra.mxu1 %v6087_v58 }
0x1604   :  { %3645 = vmatprep.subr.bf16.mxu1 %v6088_v31  ;;  %3671 = vmatprep.mubr.bf16.mxu1 %v6265_v0 }
0x1606   :  { %3695 = vmatpush1.bf16.msra.mxu0 %v6089_v46 }
0x1607   :  { %3696 = vmatprep.subr.bf16.mxu0 %v6090_v37  ;;  %3646 = vmatpush1.bf16.msra.mxu1 %v6091_v62 }
0x1608   :  { %3647 = vmatprep.subr.bf16.mxu1 %v6092_v63 }
0x1609   :  { %3561 = vmatmul.mubr.bf16.gmra.mrb[76].mxu0 %v3464_v55 }
0x160a   :  { %3697 = vmatpush1.bf16.msra.mxu0 %v6093_v22  ;;  %3724 = vmatprep.mubr.bf16.mxu0 %v6265_v0 }
0x160b   :  { %3698 = vmatprep.subr.bf16.mxu0 %v6094_v28  ;;  %3648 = vmatpush1.bf16.msra.mxu1 %v6095_v5 }
0x160c   :  { %3649 = vmatprep.subr.bf16.mxu1 %v6096_v7 }
0x160e   :  { %3699 = vmatpush1.bf16.msra.mxu0 %v6097_v19 }
0x160f   :  { %3700 = vmatprep.subr.bf16.mxu0 %v6098_v9  ;;  %3650 = vmatpush1.bf16.msra.mxu1 %v6099_v3 }
0x1610   :  { %3651 = vmatprep.subr.bf16.mxu1 %v6100_v45 }
0x1612   :  { %3701 = vmatpush1.bf16.msra.mxu0 %v6101_v12 }
0x1613   :  { %3702 = vmatprep.subr.bf16.mxu0 %v6102_v10  ;;  %3652 = vmatpush1.bf16.msra.mxu1 %v6103_v1 }
0x1614   :  { %3653 = vmatprep.subr.bf16.mxu1 %v6104_v60 }
0x1616   :  { %3703 = vmatpush1.bf16.msra.mxu0 %v6105_v2 }
0x1617   :  { %3704 = vmatprep.subr.bf16.mxu0 %v6106_v8  ;;  %3654 = vmatpush1.bf16.msra.mxu1 %v6107_v15 }
0x161a   :  { %3705 = vmatpush1.bf16.msra.mxu0 %v6108_v16 }
0x161b   :  { %3706 = vmatprep.subr.bf16.mxu0 %v6109_v4 }
0x161e   :  { %3707 = vmatpush1.bf16.msra.mxu0 %v6110_v61 }
0x16cc   :  { %v5244_v29 = vpop.f32.mrb[72].mxu1 }
0x16cd   :  { %v5245_v26 = vpop.f32.mrb[73].mxu1 }
0x16ce   :  { %v5246_v30 = vadd.f32 %v5245_v26, %v5244_v29  ;;  %v5247_v11 = vpop.f32.mrb[74].mxu1 }
0x16cf   :  { %v5248_v17 = vpop.f32.mrb[75].mxu1 }
0x16d0   :  { %v5249_v33 = vadd.f32 %v5248_v17, %v5247_v11 }
0x16d4   :  { %v5250_v36 = vpop.f32.mrb[76].mxu1  ;;  %v5272_v27 = vpop.f32.mrb[72].mxu0 }
0x16d5   :  { %v5251_v35 = vpop.f32.mrb[77].mxu1  ;;  %v5273_v39 = vpop.f32.mrb[73].mxu0 }
0x16d6   :  { %v5252_v40 = vadd.f32 %v5251_v35, %v5250_v36  ;;  %v5274_v41 = vadd.f32 %v5273_v39, %v5272_v27  ;;  %v5253_v42 = vpop.f32.mrb[78].mxu1  ;;  %v5275_v43 = vpop.f32.mrb[74].mxu0 }
0x16d7   :  { %v5254_v44 = vpop.f32.mrb[79].mxu1  ;;  %v5276_v49 = vpop.f32.mrb[75].mxu0 }
0x16d8   :  { %v3555_v51 = vadd.f32 %v5274_v41, %v5246_v30  ;;  %v5255_v52 = vadd.f32 %v5254_v44, %v5253_v42  ;;  %v5277_v53 = vadd.f32 %v5276_v49, %v5275_v43  ;;  %v5821_v43 = vld [vmem:[#allocation4 + $0x30c] ss:$24 sps:$4 sm:$0xff]  }
0x16d9   :  { %5460 = vmatprep.subr.bf16.mxu1 %v5821_v43 }
0x16da   :  { %v3558_v54 = vadd.f32 %v5277_v53, %v5249_v33  ;;  %3569 = vrot.lane.b32.xlu1 %v3555_v51, %s6256_s10 }
0x16dc   :  { %3571 = vrot.lane.b32.xlu0 %v3558_v54, %s6256_s10  ;;  %v5278_v55 = vpop.f32.mrb[76].mxu0 }
0x16dd   :  { %v5279_v48 = vpop.f32.mrb[77].mxu0 }
0x16de   :  { %v5280_v47 = vadd.f32 %v5279_v48, %v5278_v55  ;;  %v5281_v56 = vpop.f32.mrb[78].mxu0 }
0x16df   :  { %v5282_v57 = vpop.f32.mrb[79].mxu0 }
0x16e0   :  { %v3563_v50 = vadd.f32 %v5280_v47, %v5252_v40  ;;  %v5283_v59 = vadd.f32 %v5282_v57, %v5281_v56 }
0x16e2   :  { %v3566_v58 = vadd.f32 %v5283_v59, %v5255_v52  ;;  %3573 = vrot.lane.b32.xlu1 %v3563_v50, %s6256_s10 }
0x16e6   :  { %3575 = vrot.lane.b32.xlu1 %v3566_v58, %s6256_s10 }
0x174c   :  { %v3570_v31 = vpop.permute.xlu1 %3569 }
0x174d   :  { %v3577_v46 = vmax.f32 %v3555_v51, %v3570_v31 }
0x174e   :  { %v3572_v37 = vpop.permute.xlu0 %3571 }
0x174f   :  { %v3578_v62 = vmax.f32 %v3558_v54, %v3572_v37  ;;  %3581 = vrot.lane.b32.xlu0 %v3577_v46, %s6267_s14 }
0x1751   :  { %3583 = vrot.lane.b32.xlu1 %v3578_v62, %s6267_s14 }
0x1754   :  { %v3574_v63 = vpop.permute.xlu1 %3573 }
0x1755   :  { %v3579_v22 = vmax.f32 %v3563_v50, %v3574_v63 }
0x1757   :  { %3585 = vrot.lane.b32.xlu0 %v3579_v22, %s6267_s14 }
0x1758   :  { %v3576_v28 = vpop.permute.xlu1 %3575 }
0x1759   :  { %v3580_v5 = vmax.f32 %v3566_v58, %v3576_v28  ;;  %v5824_v28 = vld [vmem:[#allocation4 + $0x39c] ss:$24 sps:$4 sm:$0xff]  }
0x175b   :  { %3587 = vrot.lane.b32.xlu1 %v3580_v5, %s6267_s14 }
0x17c1   :  { %v3582_v7 = vpop.permute.xlu0 %3581 }
0x17c2   :  { %v3589_v19 = vmax.f32 %v3577_v46, %v3582_v7  ;;  %v5826_v7 = vld [vmem:[#allocation4 + $0x3fc] ss:$24 sps:$4 sm:$0xff]  }
0x17c3   :  { %v3584_v9 = vpop.permute.xlu1 %3583 }
0x17c4   :  { %v3593_v3 = vsub.f32 %v3555_v51, %v3589_v19  ;;  %v3590_v45 = vmax.f32 %v3578_v62, %v3584_v9  ;;  %v5827_v19 = vld [vmem:[#allocation4 + $0x42c] ss:$24 sps:$4 sm:$0xff]   ;;  %v5828_v9 = vld [vmem:[#allocation4 + $0x45c] ss:$24 sps:$4 sm:$0xff]  }
0x17c6   :  { %v3597_v12 = vmul.f32 1.442695, %v3593_v3  ;;  %v3594_v10 = vsub.f32 %v3558_v54, %v3590_v45  ;;  %v3213_v3 = vrot.slane %v6749_v34, %v6498_v38 }
0x17c8   :  { %5949 = vpow2.f32 %v3597_v12  ;;  %v3599_v1 = vmul.f32 1.442695, %v3594_v10  ;;  %v3441_v45 = vadd.f32 %v6755_v14, %v3213_v3  ;;  %v3433_v12 = vadd.f32 %v6757_v18, %v3213_v3 }
0x17c9   :  { %v3586_v60 = vpop.permute.xlu0 %3585  ;;  %v3444_v10 = vadd.f32 %v6759_v23, %v3213_v3 }
0x17ca   :  { %5951 = vpow2.f32 %v3599_v1  ;;  %v3591_v2 = vmax.f32 %v3579_v22, %v3586_v60  ;;  %v5823_v22 = vld [vmem:[#allocation4 + $0x36c] ss:$24 sps:$4 sm:$0xff]   ;;  %v3436_v1 = vadd.f32 %v6761_v32, %v3213_v3 }
0x17cc   :  { %v3595_v8 = vsub.f32 %v3563_v50, %v3591_v2 }
0x17cd   :  { %v3588_v15 = vpop.permute.xlu1 %3587 }
0x17ce   :  { %v3601_v16 = vmul.f32 1.442695, %v3595_v8  ;;  %v3592_v4 = vmax.f32 %v3580_v5, %v3588_v15  ;;  %v5825_v5 = vld [vmem:[#allocation4 + $0x3cc] ss:$24 sps:$4 sm:$0xff]  }
0x17d0   :  { %5953 = vpow2.f32 %v3601_v16  ;;  %v3596_v61 = vsub.f32 %v3566_v58, %v3592_v4  ;;  %v5822_v58 = vld [vmem:[#allocation4 + $0x33c] ss:$24 sps:$4 sm:$0xff]  }
0x17d2   :  { %v5950_v29 = vpop.eup %5949  ;;  %v3603_v26 = vmul.f32 1.442695, %v3596_v61 }
0x17d3   :  { %3605 = vrot.lane.b32.xlu0 %v5950_v29, %s6256_s10 }
0x17d4   :  { %v5952_v30 = vpop.eup %5951  ;;  %5955 = vpow2.f32 %v3603_v26 }
0x17d5   :  { %3607 = vrot.lane.b32.xlu1 %v5952_v30, %s6256_s10 }
0x17da   :  { %v5954_v11 = vpop.eup %5953 }
0x17db   :  { %3609 = vrot.lane.b32.xlu0 %v5954_v11, %s6256_s10 }
0x17de   :  { %v5956_v17 = vpop.eup %5955 }
0x17df   :  { %3611 = vrot.lane.b32.xlu1 %v5956_v17, %s6256_s10 }
0x1845   :  { %v3606_v33 = vpop.permute.xlu0 %3605 }
0x1846   :  { %v3613_v36 = vadd.f32 %v5950_v29, %v3606_v33 }
0x1847   :  { %v3608_v27 = vpop.permute.xlu1 %3607 }
0x1848   :  { %v3614_v35 = vadd.f32 %v5952_v30, %v3608_v27  ;;  %3617 = vrot.lane.b32.xlu0 %v3613_v36, %s6267_s14 }
0x184a   :  { %3619 = vrot.lane.b32.xlu1 %v3614_v35, %s6267_s14 }
0x184d   :  { %v3610_v39 = vpop.permute.xlu0 %3609 }
0x184e   :  { %v3615_v40 = vadd.f32 %v5954_v11, %v3610_v39 }
0x1850   :  { %3621 = vrot.lane.b32.xlu0 %v3615_v40, %s6267_s14 }
0x1851   :  { %v3612_v41 = vpop.permute.xlu1 %3611 }
0x1852   :  { %v3616_v42 = vadd.f32 %v5956_v17, %v3612_v41 }
0x1854   :  { %3623 = vrot.lane.b32.xlu1 %v3616_v42, %s6267_s14 }
0x18ba   :  { %v3618_v44 = vpop.permute.xlu0 %3617 }
0x18bb   :  { %v3625_v49 = vadd.f32 %v3618_v44, %v3613_v36 }
0x18bc   :  { %v3620_v51 = vpop.permute.xlu1 %3619 }
0x18bd   :  { %5957 = vrcp.f32 %v3625_v49  ;;  %v3626_v52 = vadd.f32 %v3620_v51, %v3614_v35 }
0x18bf   :  { %5959 = vrcp.f32 %v3626_v52 }
0x18c2   :  { %v3622_v53 = vpop.permute.xlu0 %3621 }
0x18c3   :  { %v3627_v54 = vadd.f32 %v3622_v53, %v3615_v40 }
0x18c5   :  { %5961 = vrcp.f32 %v3627_v54 }
0x18c6   :  { %v3624_v55 = vpop.permute.xlu1 %3623 }
0x18c7   :  { %v5958_v48 = vpop.eup %5957  ;;  %v3628_v47 = vadd.f32 %v3624_v55, %v3616_v42 }
0x18c8   :  { %v3633_v57 = vmul.f32 %v5958_v48, %v5950_v29 }
0x18c9   :  { %v5960_v56 = vpop.eup %5959  ;;  %5963 = vrcp.f32 %v3628_v47 }
0x18ca   :  { %v3634_v50 = vmul.f32 %v5960_v56, %v5952_v30 }
0x18cc   :  { %v3637_v59 = vpack.c.bf16 %v3634_v50, %v3633_v57 }
0x18ce   :  { %3672 = vmatmul.mubr.bf16.vlgmr.msra.gmra.mrb[80].mxu1 %v3637_v59  ;;  %3725 = vmatmul.mubr.bf16.vlgmr.msra.gmra.mrb[80].mxu0 %v3637_v59 }
0x18cf   :  { %3681 = vmatprep.mubr.bf16.mxu1 %v6265_v0  ;;  %3734 = vmatprep.mubr.bf16.mxu0 %v6265_v0  ;;  %v5962_v31 = vpop.eup %5961 }
0x18d0   :  { %5461 = vmatpush3.bf16.msra.mxu1 %v5821_v43  ;;  %v3635_v37 = vmul.f32 %v5962_v31, %v5954_v11 }
0x18d1   :  { %5462 = vmatprep.subr.bf16.mxu1 %v5822_v58 }
0x18d3   :  { %v5964_v46 = vpop.eup %5963 }
0x18d4   :  { %v3636_v62 = vmul.f32 %v5964_v46, %v5956_v17  ;;  %5463 = vmatpush3.bf16.msra.mxu1 %v5822_v58 }
0x18d5   :  { %5464 = vmatprep.subr.bf16.mxu1 %v5823_v22 }
0x18d6   :  { %v3638_v63 = vpack.c.bf16 %v3636_v62, %v3635_v37 }
0x18d8   :  { %3682 = vmatmul.mubr.bf16.gmra.mrb[84].mxu1 %v3638_v63  ;;  %3735 = vmatmul.mubr.bf16.gmra.mrb[84].mxu0 %v3638_v63 }
0x18d9   :  { %4107 = vmatprep.mubr.bf16.mxu0 %v6265_v0  ;;  %5465 = vmatpush3.bf16.msra.mxu1 %v5823_v22  ;;  %v4927_v22 = vld [vmem:[%s6905_s4 + $0x19] ss:$0 sm:$0xff] }
0x18da   :  { %5466 = vmatprep.subr.bf16.mxu1 %v5824_v28 }
0x18dd   :  { %5467 = vmatpush3.bf16.msra.mxu1 %v5824_v28 }
0x18de   :  { %5468 = vmatprep.subr.bf16.mxu1 %v5825_v5 }
0x18e1   :  { %5469 = vmatpush3.bf16.msra.mxu1 %v5825_v5 }
0x18e2   :  { %5470 = vmatprep.subr.bf16.mxu1 %v5826_v7 }
0x18e5   :  { %5471 = vmatpush3.bf16.msra.mxu1 %v5826_v7 }
0x18e6   :  { %5472 = vmatprep.subr.bf16.mxu1 %v5827_v19 }
0x18e9   :  { %5473 = vmatpush3.bf16.msra.mxu1 %v5827_v19 }
0x18ea   :  { %5474 = vmatprep.subr.bf16.mxu1 %v5828_v9 }
0x18ed   :  { %5475 = vmatpush3.bf16.msra.mxu1 %v5828_v9 }
0x19a1   :  { %v3673_v60 = vpop.f32.mrb[80].mxu1  ;;  %v3726_v2 = vpop.f32.mrb[80].mxu0 }
0x19a2   :  { %v3745_v8 = vmul.f32 %v3673_v60, %v3433_v12  ;;  %v3757_v15 = vmul.f32 %v3726_v2, %v3441_v45  ;;  %v3675_v16 = vpop.f32.mrb[81].mxu1  ;;  %v3728_v4 = vpop.f32.mrb[81].mxu0 }
0x19a3   :  { %v3749_v61 = vmul.f32 %v3675_v16, %v3436_v1  ;;  %v3765_v29 = vmul.f32 %v3728_v4, %v3444_v10  ;;  %v3677_v26 = vpop.f32.mrb[82].mxu1  ;;  %v3730_v30 = vpop.f32.mrb[82].mxu0  ;;  %v5834_v16 = vld [vmem:[#allocation4 + $0x344] ss:$24 sps:$4 sm:$0xff]   ;;  %v5832_v4 = vld [vmem:[#allocation4 + $0x340] ss:$24 sps:$4 sm:$0xff]  }
0x19a4   :  { %v3746_v11 = vmul.f32 %v3677_v26, %v3433_v12  ;;  %v3758_v38 = vmul.f32 %v3730_v30, %v3441_v45  ;;  %v3679_v34 = vpop.f32.mrb[83].mxu1  ;;  %v3732_v14 = vpop.f32.mrb[83].mxu0 }
0x19a5   :  { %v3753_v17 = vadd.f32 %v3749_v61, %v3745_v8  ;;  %v3750_v18 = vmul.f32 %v3679_v34, %v3436_v1  ;;  %v3766_v33 = vmul.f32 %v3732_v14, %v3444_v10  ;;  %v5829_v8 = vld [vmem:[#allocation4 + $0x310] ss:$24 sps:$4 sm:$0xff]  }
0x19a7   :  { %v3761_v23 = vadd.f32 %v3757_v15, %v3753_v17  ;;  %v3754_v36 = vadd.f32 %v3750_v18, %v3746_v11  ;;  %v5831_v15 = vld [vmem:[#allocation4 + $0x314] ss:$24 sps:$4 sm:$0xff]  }
0x19a8   :  { %4075 = vmatprep.subr.bf16.mxu0 %v5831_v15  ;;  %v4939_v15 = vld [vmem:[%s6905_s4 + $0x1e] ss:$0 sm:$0xff] }
0x19a9   :  { %v3769_v32 = vadd.f32 %v3765_v29, %v3761_v23  ;;  %v3762_v27 = vadd.f32 %v3758_v38, %v3754_v36  ;;  %4076 = vmatpush1.bf16.msra.mxu0 %v5829_v8  ;;  %v5837_v36 = vld [vmem:[#allocation4 + $0x374] ss:$24 sps:$4 sm:$0xff]  }
0x19aa   :  { %4077 = vmatprep.subr.bf16.mxu0 %v5834_v16 }
0x19ab   :  { %v3770_v35 = vadd.f32 %v3766_v33, %v3762_v27  ;;  %v3683_v39 = vpop.f32.mrb[84].mxu1  ;;  %v3736_v40 = vpop.f32.mrb[84].mxu0  ;;  %v5840_v27 = vld [vmem:[#allocation4 + $0x3a4] ss:$24 sps:$4 sm:$0xff]  }
0x19ac   :  { %v3747_v41 = vmul.f32 %v3683_v39, %v3433_v12  ;;  %v3759_v42 = vmul.f32 %v3736_v40, %v3441_v45  ;;  %v3685_v43 = vpop.f32.mrb[85].mxu1  ;;  %v3738_v44 = vpop.f32.mrb[85].mxu0  ;;  %v5843_v39 = vld [vmem:[#allocation4 + $0x3d4] ss:$24 sps:$4 sm:$0xff]   ;;  %v5841_v40 = vld [vmem:[#allocation4 + $0x3d0] ss:$24 sps:$4 sm:$0xff]  }
0x19ad   :  { %v3751_v49 = vmul.f32 %v3685_v43, %v3436_v1  ;;  %v3767_v51 = vmul.f32 %v3738_v44, %v3444_v10  ;;  %v3687_v52 = vpop.f32.mrb[86].mxu1  ;;  %v3740_v53 = vpop.f32.mrb[86].mxu0  ;;  %v3773_v54 = vpack.c.bf16 %v3770_v35, %v3769_v32  ;;  %4078 = vmatpush1.bf16.msra.mxu0 %v5832_v4  ;;  %v5835_v32 = vld [vmem:[#allocation4 + $0x370] ss:$24 sps:$4 sm:$0xff]   ;;  %v5838_v35 = vld [vmem:[#allocation4 + $0x3a0] ss:$24 sps:$4 sm:$0xff]  }
0x19ae   :  { %v3748_v55 = vmul.f32 %v3687_v52, %v3433_v12  ;;  %v3760_v48 = vmul.f32 %v3740_v53, %v3441_v45  ;;  %v3689_v47 = vpop.f32.mrb[87].mxu1  ;;  %v3742_v56 = vpop.f32.mrb[87].mxu0  ;;  %4079 = vmatprep.subr.bf16.mxu0 %v5837_v36  ;;  %v5849_v43 = vld [vmem:[#allocation4 + $0x434] ss:$24 sps:$4 sm:$0xff]   ;;  %v5847_v44 = vld [vmem:[#allocation4 + $0x430] ss:$24 sps:$4 sm:$0xff]  }
0x19af   :  { %v3755_v57 = vadd.f32 %v3751_v49, %v3747_v41  ;;  %v3752_v50 = vmul.f32 %v3689_v47, %v3436_v1  ;;  %v3768_v59 = vmul.f32 %v3742_v56, %v3444_v10  ;;  %5476 = vmatprep.mubr.bf16.mxu1 %v3773_v54  ;;  %v5846_v41 = vld [vmem:[#allocation4 + $0x404] ss:$24 sps:$4 sm:$0xff]   ;;  %v5850_v49 = vld [vmem:[#allocation4 + $0x460] ss:$24 sps:$4 sm:$0xff]   ;;  %v5855_v54 = vld [vmem:[#allocation6 + $0x148] sm:$0xff]  }
0x19b0   :  { %v5853_v52 = vld [vmem:[#allocation6 + $0x140] sm:$0xff]   ;;  %v5858_v47 = vld [vmem:[#allocation6 + $0x110] sm:$0xff]   ;;  %v5859_v56 = vld [vmem:[#allocation6 + $0x158] sm:$0xff]  }
0x19b1   :  { %v3763_v58 = vadd.f32 %v3759_v42, %v3755_v57  ;;  %v3756_v31 = vadd.f32 %v3752_v50, %v3748_v55  ;;  %4080 = vmatpush1.bf16.msra.mxu0 %v5835_v32  ;;  %v5844_v42 = vld [vmem:[#allocation4 + $0x400] ss:$24 sps:$4 sm:$0xff]   ;;  %5294 = vmatprep.subr.bf16.mxu1 %v5853_v52  ;;  %v5856_v55 = vld [vmem:[#allocation6 + $0x108] sm:$0xff]  }
0x19b2   :  { %4081 = vmatprep.subr.bf16.mxu0 %v5840_v27  ;;  %v5854_v53 = vld [vmem:[#allocation6 + $0x100] sm:$0xff]   ;;  %v5860_v57 = vld [vmem:[#allocation6 + $0x118] sm:$0xff]  }
0x19b3   :  { %v3771_v46 = vadd.f32 %v3767_v51, %v3763_v58  ;;  %v3764_v37 = vadd.f32 %v3760_v48, %v3756_v31  ;;  %v5852_v51 = vld [vmem:[#allocation4 + $0x464] ss:$24 sps:$4 sm:$0xff]   ;;  %v5857_v48 = vld [vmem:[#allocation6 + $0x150] sm:$0xff]   ;;  %v5863_v58 = vld [vmem:[#allocation6 + $0x168] sm:$0xff]  }
0x19b4   :  { %v5861_v50 = vld [vmem:[#allocation6 + $0x160] sm:$0xff]  }
0x19b5   :  { %v3772_v62 = vadd.f32 %v3768_v59, %v3764_v37  ;;  %4082 = vmatpush1.bf16.msra.mxu0 %v5838_v35  ;;  %v5862_v59 = vld [vmem:[#allocation6 + $0x120] sm:$0xff]  }
0x19b6   :  { %4083 = vmatprep.subr.bf16.mxu0 %v5843_v39 }
0x19b7   :  { %v3774_v63 = vpack.c.bf16 %v3772_v62, %v3771_v46 }
0x19b9   :  { %5477 = vmatmul.mubr.bf16.vlgmr.msra.gmra.mrb[88].mxu1 %v3774_v63  ;;  %4084 = vmatpush1.bf16.msra.mxu0 %v5841_v40 }
0x19ba   :  { %4085 = vmatprep.subr.bf16.mxu0 %v5846_v41  ;;  %5295 = vmatpush3.bf16.msra.mxu1 %v5854_v53 }
0x19bb   :  { %5296 = vmatprep.subr.bf16.mxu1 %v5855_v54 }
0x19bd   :  { %4086 = vmatpush1.bf16.msra.mxu0 %v5844_v42 }
0x19be   :  { %4087 = vmatprep.subr.bf16.mxu0 %v5849_v43  ;;  %5297 = vmatpush3.bf16.msra.mxu1 %v5856_v55 }
0x19bf   :  { %5298 = vmatprep.subr.bf16.mxu1 %v5857_v48 }
0x19c1   :  { %4088 = vmatpush1.bf16.msra.mxu0 %v5847_v44 }
0x19c2   :  { %4089 = vmatprep.subr.bf16.mxu0 %v5852_v51  ;;  %5299 = vmatpush3.bf16.msra.mxu1 %v5858_v47 }
0x19c3   :  { %5300 = vmatprep.subr.bf16.mxu1 %v5859_v56 }
0x19c5   :  { %4090 = vmatpush1.bf16.msra.mxu0 %v5850_v49 }
0x19c6   :  { %5301 = vmatpush3.bf16.msra.mxu1 %v5860_v57 }
0x19c7   :  { %5302 = vmatprep.subr.bf16.mxu1 %v5861_v50 }
0x19ca   :  { %5303 = vmatpush3.bf16.msra.mxu1 %v5862_v59 }
0x19cb   :  { %5304 = vmatprep.subr.bf16.mxu1 %v5863_v58 }
0x1a8c   :  { %v5478_v28 = vpop.f32.mrb[88].mxu1 }
0x1a8d   :  { %v3880_v5 = vpop.f32.mrb[89].mxu1  ;;  %v3889_v3 = vadd.f32 %v5478_v28, %v4927_v22 }
0x1a8e   :  { %v3881_v7 = vadd.f32 %v4927_v22, %v3880_v5  ;;  %v5479_v19 = vpop.f32.mrb[90].mxu1 }
0x1a8f   :  { %v3883_v9 = vpop.f32.mrb[91].mxu1  ;;  %v3892_v1 = vadd.f32 %v5479_v19, %v4927_v22  ;;  %v3897_v60 = vadd.f32 %v3889_v3, %v6740_v24 }
0x1a90   :  { %v3884_v45 = vadd.f32 %v4927_v22, %v3883_v9  ;;  %v3895_v12 = vadd.f32 %v3881_v7, %v6731_v13 }
0x1a91   :  { %v3898_v2 = vadd.f32 %v3892_v1, %v6742_v25 }
0x1a92   :  { %3901 = vadd.xlane.f32.xlu0 %v3895_v12  ;;  %v3896_v10 = vadd.f32 %v3884_v45, %v6733_v6 }
0x1a94   :  { %3903 = vadd.xlane.f32.xlu1 %v3896_v10 }
0x1a96   :  { %3905 = vadd.xlane.f32.xlu0 %v3897_v60 }
0x1a9a   :  { %3907 = vadd.xlane.f32.xlu0 %v3898_v2 }
0x1b1f   :  { %v3902_v13 = vpop.xlane.xlu0 %3901 }
0x1b20   :  { %v3909_v61 = vmul.f32 0.0078125, %v3902_v13 }
0x1b21   :  { %v3904_v29 = vpop.xlane.xlu1 %3903 }
0x1b22   :  { %v6797_v6 = vsub.f32 %v3895_v12, %v3909_v61  ;;  %v3910_v26 = vmul.f32 0.0078125, %v3904_v29  ;;  %v4938_v12 = vld [vmem:[%s6905_s4 + $0x1d] ss:$0 sm:$0xff] }
0x1b23   :  { %v3906_v30 = vpop.xlane.xlu0 %3905 }
0x1b24   :  { %v6799_v24 = vsub.f32 %v3896_v10, %v3910_v26  ;;  %v3911_v11 = vmul.f32 0.0078125, %v3906_v30  ;;  %v3917_v25 = vmul.f32 %v6797_v6, %v6797_v6 }
0x1b26   :  { %v6803_v38 = vsub.f32 %v3897_v60, %v3911_v11  ;;  %3921 = vadd.xlane.f32.xlu1 %v3917_v25  ;;  %v3918_v34 = vmul.f32 %v6799_v24, %v6799_v24 }
0x1b27   :  { %v3908_v14 = vpop.xlane.xlu0 %3907 }
0x1b28   :  { %v3912_v17 = vmul.f32 0.0078125, %v3908_v14  ;;  %3923 = vadd.xlane.f32.xlu0 %v3918_v34  ;;  %v3919_v18 = vmul.f32 %v6803_v38, %v6803_v38  ;;  %v5865_v14 = vld [vmem:[#allocation6 + $0x170] sm:$0xff]  }
0x1b2a   :  { %v6809_v33 = vsub.f32 %v3898_v2, %v3912_v17  ;;  %3925 = vadd.xlane.f32.xlu1 %v3919_v18  ;;  %v5866_v17 = vld [vmem:[#allocation6 + $0x130] sm:$0xff]   ;;  %v5867_v18 = vld [vmem:[#allocation6 + $0x178] sm:$0xff]  }
0x1b2c   :  { %v3920_v23 = vmul.f32 %v6809_v33, %v6809_v33 }
0x1b2e   :  { %3927 = vadd.xlane.f32.xlu0 %v3920_v23 }
0x1bb3   :  { %v3922_v31 = vpop.xlane.xlu1 %3921 }
0x1bb4   :  { %v3929_v46 = vmul.f32 0.0078125, %v3922_v31 }
0x1bb5   :  { %v3924_v37 = vpop.xlane.xlu0 %3923 }
0x1bb6   :  { %v3933_v62 = vadd.f32 1e-05, %v3929_v46  ;;  %v3930_v63 = vmul.f32 0.0078125, %v3924_v37 }
0x1bb7   :  { %v3926_v22 = vpop.xlane.xlu1 %3925 }
0x1bb8   :  { %5965 = vrsqrt.f32 %v3933_v62  ;;  %v3934_v28 = vadd.f32 1e-05, %v3930_v63  ;;  %v3931_v5 = vmul.f32 0.0078125, %v3926_v22  ;;  %v4958_v22 = vld [vmem:[%s6905_s4 + $0x1c] ss:$0 sm:$0xff] }
0x1bba   :  { %5967 = vrsqrt.f32 %v3934_v28  ;;  %v3935_v7 = vadd.f32 1e-05, %v3931_v5 }
0x1bbb   :  { %v3928_v19 = vpop.xlane.xlu0 %3927 }
0x1bbc   :  { %5969 = vrsqrt.f32 %v3935_v7  ;;  %v3932_v9 = vmul.f32 0.0078125, %v3928_v19 }
0x1bbe   :  { %v3936_v3 = vadd.f32 1e-05, %v3932_v9 }
0x1bc0   :  { %5971 = vrsqrt.f32 %v3936_v3 }
0x1bc2   :  { %v5966_v45 = vpop.eup %5965 }
0x1bc3   :  { %v3941_v10 = vmul.f32 %v5966_v45, %v6797_v6 }
0x1bc4   :  { %v5968_v1 = vpop.eup %5967 }
0x1bc5   :  { %v3951_v60 = vmul.f32 %v4938_v12, %v3941_v10  ;;  %v3942_v2 = vmul.f32 %v5968_v1, %v6799_v24 }
0x1bc6   :  { %v5970_v8 = vpop.eup %5969 }
0x1bc7   :  { %v3952_v16 = vmul.f32 %v4938_v12, %v3942_v2  ;;  %v6821_v4 = vadd.f32 %v4939_v15, %v3951_v60  ;;  %v3943_v61 = vmul.f32 %v5970_v8, %v6803_v38  ;;  %v5864_v38 = vld [vmem:[#allocation6 + $0x128] sm:$0xff]  }
0x1bc8   :  { %5305 = vmatpush3.bf16.msra.mxu1 %v5864_v38 }
0x1bc9   :  { %v6823_v13 = vadd.f32 %v4939_v15, %v3952_v16  ;;  %v3953_v30 = vmul.f32 %v4938_v12, %v3943_v61  ;;  %5306 = vmatprep.subr.bf16.mxu1 %v5865_v14 }
0x1bca   :  { %v5972_v29 = vpop.eup %5971 }
0x1bcb   :  { %v3965_v6 = vpack.c.bf16 %v6823_v13, %v6821_v4  ;;  %v3944_v26 = vmul.f32 %v5972_v29, %v6809_v33  ;;  %v6832_v25 = vadd.f32 %v4939_v15, %v3953_v30  ;;  %v5868_v33 = vld [vmem:[#allocation6 + $0x138] sm:$0xff]  }
0x1bcc   :  { %5307 = vmatpush3.bf16.msra.mxu1 %v5866_v17 }
0x1bcd   :  { %4108 = vmatmul.mubr.bf16.vlgmr.msra.gmra.mrb[88].mxu0 %v3965_v6  ;;  %v3954_v24 = vmul.f32 %v4938_v12, %v3944_v26  ;;  %5308 = vmatprep.subr.bf16.mxu1 %v5867_v18 }
0x1bce   :  { %4117 = vmatprep.mubr.bf16.mxu0 %v6265_v0  ;;  %v4940_v0 = vld [vmem:[%s6905_s4 + $0x1a] sm:$0x3] }
0x1bcf   :  { %v6830_v11 = vadd.f32 %v4939_v15, %v3954_v24  ;;  %v3988_v23 = vrot.slane %v4940_v0, %v6434_v20  ;;  %v3992_v36 = vrot.slane %v4940_v0, %v6437_v21 }
0x1bd0   :  { %5309 = vmatpush3.bf16.msra.mxu1 %v5868_v33 }
0x1bd1   :  { %v3966_v34 = vpack.c.bf16 %v6830_v11, %v6832_v25 }
0x1bd5   :  { %4118 = vmatmul.mubr.bf16.gmra.mrb[92].mxu0 %v3966_v34 }
0x1ca0   :  { %v4109_v32 = vpop.f32.mrb[88].mxu0 }
0x1ca1   :  { %v4110_v27 = vadd.f32 %v4109_v32, %v3988_v23  ;;  %v4111_v35 = vpop.f32.mrb[89].mxu0 }
0x1ca2   :  { %v4112_v39 = vadd.f32 %v4111_v35, %v3992_v36  ;;  %v4113_v40 = vpop.f32.mrb[90].mxu0  ;;  %v6268_v35 = vmov 0.0  }
0x1ca3   :  { %v4114_v41 = vadd.f32 %v4113_v40, %v3988_v23  ;;  %v4115_v42 = vpop.f32.mrb[91].mxu0  ;;  %v4128_v44 = vmax.f32 %v4110_v27, 0.0  ;;  %v5869_v27 = vld [vmem:[#allocation10] ss:$8 sps:$4 sm:$0xff]   ;;  %5480 = vmatprep.subr.bf16.mxu0 %v6268_v35  ;;  %5500 = vmatprep.subr.bf16.mxu1 %v6268_v35 }
0x1ca4   :  { %v4116_v43 = vadd.f32 %v4115_v42, %v3992_v36  ;;  %v4129_v51 = vmax.f32 %v4112_v39, 0.0  ;;  %5481 = vmatpush3.bf16.msra.mxu0 %v5869_v27  ;;  %v5870_v39 = vld [vmem:[#allocation10 + $0x10] ss:$8 sps:$4 sm:$0xff]   ;;  %v5871_v40 = vld [vmem:[#allocation10 + $0x20] ss:$8 sps:$4 sm:$0xff]   ;;  %5496 = vmatprep.mubr.msk.bf16.mxu0 %vm6269_vm6, %v6268_v35 }
0x1ca5   :  { %v4130_v49 = vmax.f32 %v4114_v41, 0.0  ;;  %5482 = vmatprep.subr.bf16.mxu0 %v6268_v35  ;;  %v5872_v41 = vld [vmem:[#allocation10 + $0x30] ss:$8 sps:$4 sm:$0xff]   ;;  %v5873_v42 = vld [vmem:[#allocation10 + $0x40] ss:$8 sps:$4 sm:$0xff]  }
0x1ca6   :  { %v4131_v52 = vmax.f32 %v4116_v43, 0.0  ;;  %v5874_v43 = vld [vmem:[#allocation10 + $0x50] ss:$8 sps:$4 sm:$0xff]  }
0x1ca7   :  { %v4136_v53 = vpack.c.bf16 %v4130_v49, %v4128_v44  ;;  %v5875_v44 = vld [vmem:[#allocation10 + $0x60] ss:$8 sps:$4 sm:$0xff]   ;;  %v5876_v49 = vld [vmem:[#allocation10 + $0x70] ss:$8 sps:$4 sm:$0xff]  }
0x1ca8   :  { %v4137_v54 = vpack.c.bf16 %v4131_v52, %v4129_v51  ;;  %v4119_v55 = vpop.f32.mrb[92].mxu0  ;;  %5483 = vmatpush3.bf16.msra.mxu0 %v5870_v39  ;;  %v5877_v51 = vld [vmem:[#allocation10 + $0x4] ss:$8 sps:$4 sm:$0xff]   ;;  %v5878_v52 = vld [vmem:[#allocation10 + $0x14] ss:$8 sps:$4 sm:$0xff]  }
0x1ca9   :  { %v4120_v48 = vadd.f32 %v4119_v55, %v3988_v23  ;;  %v4121_v47 = vpop.f32.mrb[93].mxu0  ;;  %5484 = vmatprep.subr.bf16.mxu0 %v6268_v35  ;;  %v5881_v55 = vld [vmem:[#allocation10 + $0x44] ss:$8 sps:$4 sm:$0xff]  }
0x1caa   :  { %v4122_v20 = vadd.f32 %v4121_v47, %v3992_v36  ;;  %v4123_v56 = vpop.f32.mrb[94].mxu0  ;;  %4308 = vmatprep.mubr.bf16.mxu1 %v4137_v54  ;;  %v5880_v54 = vld [vmem:[#allocation10 + $0x34] ss:$8 sps:$4 sm:$0xff]  }
0x1cab   :  { %v4124_v21 = vadd.f32 %v4123_v56, %v3988_v23  ;;  %v4125_v57 = vpop.f32.mrb[95].mxu0  ;;  %4309 = vmatmul.mubr.bf16.vlgmr.msra.gmra.mrb[92].mxu1 %v4136_v53  ;;  %v4132_v59 = vmax.f32 %v4120_v48, 0.0  ;;  %v5879_v53 = vld [vmem:[#allocation10 + $0x24] ss:$8 sps:$4 sm:$0xff]   ;;  %v5882_v48 = vld [vmem:[#allocation10 + $0x54] ss:$8 sps:$4 sm:$0xff]  }
0x1cac   :  { %v4126_v50 = vadd.f32 %v4125_v57, %v3992_v36  ;;  %v4133_v31 = vmax.f32 %v4122_v20, 0.0  ;;  %5485 = vmatpush3.bf16.msra.mxu0 %v5871_v40  ;;  %5501 = vmatpush3.bf16.msra.mxu1 %v5877_v51 }
0x1cad   :  { %v4134_v58 = vmax.f32 %v4124_v21, 0.0  ;;  %5486 = vmatprep.subr.bf16.mxu0 %v6268_v35  ;;  %5502 = vmatprep.subr.bf16.mxu1 %v6268_v35 }
0x1cae   :  { %v4135_v46 = vmax.f32 %v4126_v50, 0.0 }
0x1caf   :  { %v4138_v37 = vpack.c.bf16 %v4134_v58, %v4132_v59 }
0x1cb0   :  { %v4139_v62 = vpack.c.bf16 %v4135_v46, %v4133_v31  ;;  %5487 = vmatpush3.bf16.msra.mxu0 %v5872_v41  ;;  %5503 = vmatpush3.bf16.msra.mxu1 %v5878_v52 }
0x1cb1   :  { %5488 = vmatprep.subr.bf16.mxu0 %v6268_v35  ;;  %5504 = vmatprep.subr.bf16.mxu1 %v6268_v35 }
0x1cb2   :  { %4316 = vmatprep.mubr.bf16.mxu1 %v4139_v62 }
0x1cb3   :  { %4317 = vmatmul.mubr.bf16.gmra.mrb[96].mxu1 %v4138_v37 }
0x1cb4   :  { %5489 = vmatpush3.bf16.msra.mxu0 %v5873_v42  ;;  %5516 = vmatprep.mubr.msk.bf16.mxu1 %vm6269_vm6, %v6268_v35 }
0x1cb5   :  { %5490 = vmatprep.subr.bf16.mxu0 %v6268_v35  ;;  %5505 = vmatpush3.bf16.msra.mxu1 %v5879_v53 }
0x1cb6   :  { %5506 = vmatprep.subr.bf16.mxu1 %v6268_v35 }
0x1cb8   :  { %5491 = vmatpush3.bf16.msra.mxu0 %v5874_v43 }
0x1cb9   :  { %5492 = vmatprep.subr.bf16.mxu0 %v6268_v35  ;;  %5507 = vmatpush3.bf16.msra.mxu1 %v5880_v54 }
0x1cba   :  { %5508 = vmatprep.subr.bf16.mxu1 %v6268_v35 }
0x1cbc   :  { %5493 = vmatpush3.bf16.msra.mxu0 %v5875_v44 }
0x1cbd   :  { %5494 = vmatprep.subr.bf16.mxu0 %v6268_v35  ;;  %5509 = vmatpush3.bf16.msra.mxu1 %v5881_v55 }
0x1cbe   :  { %5510 = vmatprep.subr.bf16.mxu1 %v6268_v35 }
0x1cc0   :  { %5495 = vmatpush3.bf16.msra.mxu0 %v5876_v49 }
0x1cc1   :  { %5511 = vmatpush3.bf16.msra.mxu1 %v5882_v48  ;;  %v5883_v48 = vld [vmem:[#allocation10 + $0x64] ss:$8 sps:$4 sm:$0xff]  }
0x1cc2   :  { %5512 = vmatprep.subr.bf16.mxu1 %v6268_v35 }
0x1cc5   :  { %5513 = vmatpush3.bf16.msra.mxu1 %v5883_v48 }
0x1cc6   :  { %5514 = vmatprep.subr.bf16.mxu1 %v6268_v35 }
0x1d7e   :  { %v5310_v63 = vpop.f32.mrb[92].mxu1 }
0x1d7f   :  { %v5311_v28 = vpop.f32.mrb[93].mxu1 }
0x1d80   :  { %v5312_v5 = vadd.f32 %v5311_v28, %v5310_v63  ;;  %v5313_v7 = vpop.f32.mrb[94].mxu1 }
0x1d81   :  { %v5314_v19 = vpop.f32.mrb[95].mxu1 }
0x1d82   :  { %v4311_v9 = vadd.f32 %v5312_v5, %v4958_v22  ;;  %v5315_v3 = vadd.f32 %v5314_v19, %v5313_v7  ;;  %v4978_v7 = vld [vmem:[%s6905_s4 + $0x20] ss:$0 sm:$0xff] }
0x1d84   :  { %v4314_v45 = vadd.f32 %v5315_v3, %v4958_v22  ;;  %v4325_v12 = vadd.f32 %v4311_v9, %v6821_v4 }
0x1d86   :  { %4331 = vadd.xlane.f32.xlu1 %v4325_v12  ;;  %v5316_v10 = vpop.f32.mrb[96].mxu1  ;;  %v4326_v1 = vadd.f32 %v4314_v45, %v6823_v13 }
0x1d87   :  { %v5317_v60 = vpop.f32.mrb[97].mxu1 }
0x1d88   :  { %v5318_v2 = vadd.f32 %v5317_v60, %v5316_v10  ;;  %4333 = vadd.xlane.f32.xlu0 %v4326_v1  ;;  %v5319_v8 = vpop.f32.mrb[98].mxu1 }
0x1d89   :  { %v5320_v15 = vpop.f32.mrb[99].mxu1 }
0x1d8a   :  { %v4319_v16 = vadd.f32 %v5318_v2, %v4958_v22  ;;  %v5321_v61 = vadd.f32 %v5320_v15, %v5319_v8 }
0x1d8c   :  { %v4322_v29 = vadd.f32 %v5321_v61, %v4958_v22  ;;  %v4327_v6 = vadd.f32 %v4319_v16, %v6832_v25  ;;  %v4977_v22 = vld [vmem:[%s6905_s4 + $0x1f] ss:$0 sm:$0xff] }
0x1d8e   :  { %4335 = vadd.xlane.f32.xlu1 %v4327_v6  ;;  %v4328_v26 = vadd.f32 %v4322_v29, %v6830_v11 }
0x1d90   :  { %4337 = vadd.xlane.f32.xlu0 %v4328_v26 }
0x1e13   :  { %v4332_v30 = vpop.xlane.xlu1 %4331 }
0x1e14   :  { %v4339_v4 = vmul.f32 0.0078125, %v4332_v30 }
0x1e15   :  { %v4334_v24 = vpop.xlane.xlu0 %4333 }
0x1e16   :  { %v6848_v34 = vsub.f32 %v4325_v12, %v4339_v4  ;;  %v4340_v13 = vmul.f32 0.0078125, %v4334_v24 }
0x1e18   :  { %v6850_v38 = vsub.f32 %v4326_v1, %v4340_v13  ;;  %v4347_v14 = vmul.f32 %v6848_v34, %v6848_v34 }
0x1e1a   :  { %4351 = vadd.xlane.f32.xlu1 %v4347_v14  ;;  %v4348_v17 = vmul.f32 %v6850_v38, %v6850_v38 }
0x1e1b   :  { %v4336_v25 = vpop.xlane.xlu1 %4335 }
0x1e1c   :  { %v4341_v18 = vmul.f32 0.0078125, %v4336_v25  ;;  %4353 = vadd.xlane.f32.xlu0 %v4348_v17 }
0x1e1d   :  { %v4338_v11 = vpop.xlane.xlu0 %4337 }
0x1e1e   :  { %v6856_v33 = vsub.f32 %v4327_v6, %v4341_v18  ;;  %v4342_v0 = vmul.f32 0.0078125, %v4338_v11 }
0x1e20   :  { %v6858_v23 = vsub.f32 %v4328_v26, %v4342_v0  ;;  %v4349_v36 = vmul.f32 %v6856_v33, %v6856_v33 }
0x1e22   :  { %4355 = vadd.xlane.f32.xlu1 %v4349_v36  ;;  %v4350_v32 = vmul.f32 %v6858_v23, %v6858_v23 }
0x1e24   :  { %4357 = vadd.xlane.f32.xlu0 %v4350_v32 }
0x1ea7   :  { %v4352_v47 = vpop.xlane.xlu1 %4351 }
0x1ea8   :  { %v4359_v20 = vmul.f32 0.0078125, %v4352_v47  ;;  %v5884_v47 = vld [vmem:[#allocation10 + $0x74] ss:$8 sps:$4 sm:$0xff]  }
0x1ea9   :  { %v4354_v56 = vpop.xlane.xlu0 %4353  ;;  %5515 = vmatpush3.bf16.msra.mxu1 %v5884_v47 }
0x1eaa   :  { %v4363_v21 = vadd.f32 1e-05, %v4359_v20  ;;  %v4360_v57 = vmul.f32 0.0078125, %v4354_v56  ;;  %v4979_v20 = vld [vmem:[%s6909_s8] ss:$0 sm:$0xff] }
0x1eac   :  { %5973 = vrsqrt.f32 %v4363_v21  ;;  %v4364_v50 = vadd.f32 1e-05, %v4360_v57 }
0x1eae   :  { %5975 = vrsqrt.f32 %v4364_v50 }
0x1eaf   :  { %v4356_v59 = vpop.xlane.xlu1 %4355 }
0x1eb0   :  { %v4361_v58 = vmul.f32 0.0078125, %v4356_v59 }
0x1eb1   :  { %v4358_v31 = vpop.xlane.xlu0 %4357 }
0x1eb2   :  { %v4365_v46 = vadd.f32 1e-05, %v4361_v58  ;;  %v4362_v37 = vmul.f32 0.0078125, %v4358_v31 }
0x1eb4   :  { %5977 = vrsqrt.f32 %v4365_v46  ;;  %v4366_v62 = vadd.f32 1e-05, %v4362_v37  ;;  %v4991_v46 = vld [vmem:[%s6909_s8 + $0x1] ss:$0 sm:$0xff] }
0x1eb6   :  { %v5974_v63 = vpop.eup %5973  ;;  %5979 = vrsqrt.f32 %v4366_v62 }
0x1eb7   :  { %v4371_v28 = vmul.f32 %v5974_v63, %v6848_v34 }
0x1eb8   :  { %v5976_v5 = vpop.eup %5975 }
0x1eb9   :  { %v4381_v19 = vmul.f32 %v4977_v22, %v4371_v28  ;;  %v4372_v9 = vmul.f32 %v5976_v5, %v6850_v38 }
0x1ebb   :  { %v4391_v3 = vadd.f32 %v4978_v7, %v4381_v19  ;;  %v4382_v45 = vmul.f32 %v4977_v22, %v4372_v9 }
0x1ebd   :  { %v4395_v12 = vrot.slane %v4391_v3, 4  ;;  %v4392_v10 = vadd.f32 %v4978_v7, %v4382_v45 }
0x1ebe   :  { %v5978_v1 = vpop.eup %5977 }
0x1ebf   :  { %v4396_v60 = vadd.f32 %v4395_v12, %v4391_v3  ;;  %v4401_v2 = vrot.slane %v4392_v10, 4  ;;  %v4373_v8 = vmul.f32 %v5978_v1, %v6856_v33 }
0x1ec0   :  { %v5980_v15 = vpop.eup %5979 }
0x1ec1   :  { %v4397_v16 = vrot.slane %v4396_v60, 2  ;;  %v4402_v61 = vadd.f32 %v4401_v2, %v4392_v10  ;;  %v4383_v29 = vmul.f32 %v4977_v22, %v4373_v8  ;;  %v4374_v6 = vmul.f32 %v5980_v15, %v6858_v23 }
0x1ec3   :  { %v4403_v26 = vrot.slane %v4402_v61, 2  ;;  %v4393_v30 = vadd.f32 %v4978_v7, %v4383_v29  ;;  %v4384_v4 = vmul.f32 %v4977_v22, %v4374_v6  ;;  %v4398_v24 = vadd.f32 %v4397_v16, %v4396_v60 }
0x1ec5   :  { %v4404_v34 = vadd.f32 %v4403_v26, %v4402_v61  ;;  %v4407_v13 = vrot.slane %v4393_v30, 4  ;;  %v4394_v38 = vadd.f32 %v4978_v7, %v4384_v4  ;;  %v4399_v18 = vrot.slane %v4398_v24, 1 }
0x1ec7   :  { %v4405_v14 = vrot.slane %v4404_v34, 1  ;;  %v4408_v17 = vadd.f32 %v4407_v13, %v4393_v30  ;;  %v4413_v25 = vrot.slane %v4394_v38, 4  ;;  %v4400_v27 = vadd.f32 %v4399_v18, %v4398_v24 }
0x1ec9   :  { %v4409_v11 = vrot.slane %v4408_v17, 2  ;;  %v4414_v0 = vadd.f32 %v4413_v25, %v4394_v38  ;;  %v4406_v33 = vadd.f32 %v4405_v14, %v4404_v34  ;;  %v4420_v43 = vmul.f32 0.125, %v4400_v27 }
0x1ecb   :  { %v4410_v36 = vadd.f32 %v4409_v11, %v4408_v17  ;;  %v4415_v32 = vrot.slane %v4414_v0, 2  ;;  %v4421_v23 = vmul.f32 0.125, %v4406_v33 }
0x1ecd   :  { %v4411_v39 = vrot.slane %v4410_v36, 1  ;;  %v4416_v40 = vadd.f32 %v4415_v32, %v4414_v0  ;;  %v4429_v51 = vsel %vm4428_vm7, %v4421_v23, %v4420_v43 }
0x1ecf   :  { %v4412_v41 = vadd.f32 %v4411_v39, %v4410_v36  ;;  %v4417_v42 = vrot.slane %v4416_v40, 1 }
0x1ed1   :  { %v4422_v44 = vmul.f32 0.125, %v4412_v41  ;;  %v4418_v49 = vadd.f32 %v4417_v42, %v4416_v40 }
0x1ed3   :  { %v4423_v52 = vmul.f32 0.125, %v4418_v49  ;;  %v4431_v53 = vsel %vm4430_vm8, %v4422_v44, %v4429_v51 }
0x1ed5   :  { %v4433_v54 = vsel %vm4432_vm9, %v4423_v52, %v4431_v53 }
0x1ed6   :  { %v4989_v55 = vpack.c.bf16 %v4433_v54, %v4433_v54 }
0x1ed8   :  { %5497 = vmatmul.mubr.msk.bf16.vlgmr.msra.gmra.mrb[96].mxu0 %vm4988_vm11, %v4989_v55 }
0x1fab   :  { %v4543_v56 = vpop.f32.mrb[96].mxu0 }
0x1fac   :  { %v4544_v21 = vadd.f32 %v4979_v20, %v4543_v56  ;;  %v5498_v57 = vpop.f32.mrb[97].mxu0 }
0x1fad   :  { %v4546_v50 = vpop.f32.mrb[98].mxu0 }
0x1fae   :  { %v4549_v59 = vmax.f32 %v4544_v21, 0.0  ;;  %v5499_v58 = vpop.f32.mrb[99].mxu0 }
0x1fb0   :  { %v4550_v31 = vpack.c.bf16 %v4549_v59, %v4549_v59 }
0x1fb2   :  { %5517 = vmatmul.mubr.bf16.vlgmr.msra.gmra.mrb[100].mxu1 %v4550_v31 }
0x2085   :  { %v4656_v37 = vpop.f32.mrb[100].mxu1 }
0x2086   :  { %v4657_v35 = vadd.f32 %v4991_v46, %v4656_v37  ;;  %v5518_v62 = vpop.f32.mrb[101].mxu1 }
0x2087   :  { %v4659_v63 = vpop.f32.mrb[102].mxu1 }
0x2088   :  { %v4662_v22 = vmul.f32 %v4657_v35, %v4657_v35  ;;  %v5519_v28 = vpop.f32.mrb[103].mxu1 }
0x208a   :  { %4663 = vadd.xlane.f32.xlu1 %v4662_v22 }
0x2117   :  { %v4664_v5 = vpop.xlane.xlu1 %4663 }
0x2118   :  { %v4665_v7 = vmax.f32 %v4664_v5, 1e-24 }
0x211a   :  { %5981 = vrsqrt.f32 %v4665_v7 }
0x2124   :  { %v5982_v19 = vpop.eup %5981 }
0x2125   :  { %v4667_v9 = vmul.f32 %v5982_v19, %v4657_v35 }
0x2127   :  { %4668 = vst [vmem:[%s6910_s9] sm:$0xff] %v4667_v9 }
0x2128   :  { %4673 = vsyncpa [#allocation3], 1 }
0x2129   :  { %4674 = vsyncpa [#allocation5], 1 }
0x212a   :  { %4675 = vsyncpa [#allocation8], 1 }
0x212b   :  { %4676 = vsyncpa [#allocation11], 1 }

</bundles_post_ra>
